<compile_context>
chip_gen: v5e
topology: v5e:2x2
jax: 0.10.0
libtpu: 0.0.40
codegen_flags: <defaults>
</compile_context>

<pallas_src>
import math
import functools

import jax
import jax.numpy as jnp
from jax import lax
from jax.experimental import pallas as pl
from jax.experimental.pallas import tpu as pltpu

NEG_INF = -1e30                  # finite mask sentinel (avoids exp(-inf - -inf) = NaN)
MXU_DTYPE = jnp.bfloat16         # native MXU format on v5e/v6e/v7x
ACT_DTYPE = jnp.bfloat16         # inter-kernel activation storage dtype
VMEM_LIMIT = 32 * 1024 * 1024    # explicit scoped-VMEM budget (fits v5e/v6e/v7x)
ROW_TILE = 256                   # row-tile cap (v7x-safe)


def _layernorm(y, g, b, eps=1e-5):
    mean = jnp.mean(y, axis=-1, keepdims=True)
    var = jnp.mean(jnp.square(y - mean), axis=-1, keepdims=True)
    return (y - mean) * lax.rsqrt(var + eps) * g + b


def _mha(q, k, v, mask, woutr_ref, nhead):
    """Multi-head attention with the output projection folded into the head loop.

    q [Tq,E] f32 (already 1/sqrt(dh)-scaled), k/v [Tk,E] f32, mask additive f32 broadcastable to
    [Tq,Tk], woutr_ref bf16 [H, dh, E].  Returns f32 [Tq, E] = concat_h(softmax(qk^T)v) @ Wout^T.
    """
    e = q.shape[-1]
    dh = e // nhead
    qb, kb, vb = q.astype(MXU_DTYPE), k.astype(MXU_DTYPE), v.astype(MXU_DTYPE)
    acc = None
    for h in range(nhead):
        sl = slice(h * dh, (h + 1) * dh)
        # q_h @ k_h^T without an explicit transpose (contract last dims) -> f32 scores.
        s = lax.dot_general(qb[:, sl], kb[:, sl], (((1,), (1,)), ((), ())),
                            preferred_element_type=jnp.float32) + mask
        mx = jnp.max(s, axis=-1, keepdims=True)
        p = jnp.exp(s - mx)
        p = p * pl.reciprocal(jnp.sum(p, axis=-1, keepdims=True), approx=True)
        o_h = jnp.dot(p.astype(MXU_DTYPE), vb[:, sl],
                      preferred_element_type=jnp.float32)              # [Tq, dh]
        part = jnp.dot(o_h.astype(MXU_DTYPE), woutr_ref[h],
                       preferred_element_type=jnp.float32)             # [Tq, E]
        acc = part if acc is None else acc + part
    return acc


def _ffn_add_ln(x, w1_ref, b1_ref, w2_ref, b2_ref, gw_ref, gb_ref):
    """LayerNorm(x + W2(ReLU(W1 x + b1)) + b2) with bf16 MXU weights and f32 math."""
    h = jnp.maximum(jnp.dot(x.astype(MXU_DTYPE), w1_ref[...],
                            preferred_element_type=jnp.float32) + b1_ref[...], 0.0)
    y = jnp.dot(h.astype(MXU_DTYPE), w2_ref[...],
                preferred_element_type=jnp.float32) + b2_ref[...] + x
    return _layernorm(y, gw_ref[...], gb_ref[...])


# ----------------------------- fused per-layer kernels (grid over batch) -----------------------------

def enc_block_kernel(x_ref, pad_ref, am_ref,
                     wqkv_ref, bqkv_ref, woutr_ref, bout_ref, n1w_ref, n1b_ref,
                     w1_ref, b1_ref, w2_ref, b2_ref, n2w_ref, n2b_ref,
                     o_ref, *, nhead):
    # Whole encoder layer: self-attn (fused QKV + out-proj) + add + LN1 + FFN + add + LN2.
    x = x_ref[...]                                        # [S, E] bf16
    xf = x.astype(jnp.float32)
    e = x.shape[-1]
    qkv = jnp.dot(x, wqkv_ref[...], preferred_element_type=jnp.float32) + bqkv_ref[...]
    mask = am_ref[...] + pad_ref[...]                     # [S,S] + [1,S] (built on VPU, no B*S*S DMA)
    attn = _mha(qkv[:, :e], qkv[:, e:2 * e], qkv[:, 2 * e:], mask, woutr_ref, nhead) + bout_ref[...]
    x1 = _layernorm(attn + xf, n1w_ref[...], n1b_ref[...])
    out = _ffn_add_ln(x1, w1_ref, b1_ref, w2_ref, b2_ref, n2w_ref, n2b_ref)
    o_ref[...] = out.astype(o_ref.dtype)


def dec_self_block_kernel(x_ref, pad_ref, am_ref,
                          wqkv_ref, bqkv_ref, woutr_ref, bout_ref, n1w_ref, n1b_ref,
                          o_ref, *, nhead):
    # Decoder self-attention block: QKV + MHA + out-proj + add + LN1.
    x = x_ref[...]                                        # [T, E] bf16
    xf = x.astype(jnp.float32)
    e = x.shape[-1]
    qkv = jnp.dot(x, wqkv_ref[...], preferred_element_type=jnp.float32) + bqkv_ref[...]
    mask = am_ref[...] + pad_ref[...]                     # causal + tgt padding
    attn = _mha(qkv[:, :e], qkv[:, e:2 * e], qkv[:, 2 * e:], mask, woutr_ref, nhead) + bout_ref[...]
    o_ref[...] = _layernorm(attn + xf, n1w_ref[...], n1b_ref[...]).astype(o_ref.dtype)


def dec_cross_ffn_block_kernel(x_ref, mem_ref, pad_ref,
                               wq_ref, bq_ref, wkv_ref, bkv_ref, woutr_ref, bout_ref,
                               n2w_ref, n2b_ref, w1_ref, b1_ref, w2_ref, b2_ref,
                               n3w_ref, n3b_ref, o_ref, *, nhead):
    # Decoder cross-attention block + FFN: Q proj + KV proj (memory) + MHA + out-proj + add + LN2
    # + FFN + add + LN3 in a single call.
    x = x_ref[...]                                        # [T, E] bf16
    mem = mem_ref[...]                                    # [S, E] bf16
    xf = x.astype(jnp.float32)
    e = x.shape[-1]
    q = jnp.dot(x, wq_ref[...], preferred_element_type=jnp.float32) + bq_ref[...]
    kv = jnp.dot(mem, wkv_ref[...], preferred_element_type=jnp.float32) + bkv_ref[...]
    mask = pad_ref[...]                                   # memory key-padding only ([1, S])
    attn = _mha(q, kv[:, :e], kv[:, e:], mask, woutr_ref, nhead) + bout_ref[...]
    x2 = _layernorm(attn + xf, n2w_ref[...], n2b_ref[...])
    out = _ffn_add_ln(x2, w1_ref, b1_ref, w2_ref, b2_ref, n3w_ref, n3b_ref)
    o_ref[...] = out.astype(o_ref.dtype)


# ----------------------------- small row-wise kernels -----------------------------

def ln_kernel(x_ref, g_ref, be_ref, o_ref):
    o_ref[...] = _layernorm(x_ref[...].astype(jnp.float32),
                            g_ref[...], be_ref[...]).astype(o_ref.dtype)


def ln_linear_kernel(x_ref, g_ref, be_ref, wt_ref, b_ref, o_ref):
    # generator fused with the decoder final LayerNorm; output lane-dense (padded vocab).
    y = _layernorm(x_ref[...].astype(jnp.float32), g_ref[...], be_ref[...])
    o_ref[...] = jnp.dot(y.astype(MXU_DTYPE), wt_ref[...],
                         preferred_element_type=jnp.float32) + b_ref[...]


# ----------------------------- pallas_call wrappers -----------------------------

def _batch_block_call(kernel, bat_args, const_args, out_seq, out_cols, out_dtype):
    """Grid over batch; batch-tiled args get a squeezed leading dim, weights are whole blocks."""
    b = bat_args[0].shape[0]
    in_specs = [pl.BlockSpec((None,) + a.shape[1:],
                             lambda i, n=a.ndim - 1: (i,) + (0,) * n) for a in bat_args]
    in_specs += [pl.BlockSpec(a.shape, lambda i, n=a.ndim: (0,) * n) for a in const_args]
    return pl.pallas_call(
        kernel,
        out_shape=jax.ShapeDtypeStruct((b, out_seq, out_cols), out_dtype),
        grid=(b,),
        in_specs=in_specs,
        out_specs=pl.BlockSpec((None, out_seq, out_cols), lambda i: (i, 0, 0)),
        compiler_params=pltpu.CompilerParams(
            dimension_semantics=("parallel",),
            vmem_limit_bytes=VMEM_LIMIT),
    )(*bat_args, *const_args)


def _rowwise_call(kernel, x, const_args, out_cols, out_dtype):
    m = x.shape[0]
    tm = m if m <= ROW_TILE else ROW_TILE
    in_specs = [pl.BlockSpec((tm, x.shape[1]), lambda i: (i, 0))]
    in_specs += [pl.BlockSpec(a.shape, lambda i, n=a.ndim: (0,) * n) for a in const_args]
    return pl.pallas_call(
        kernel,
        out_shape=jax.ShapeDtypeStruct((m, out_cols), out_dtype),
        grid=(pl.cdiv(m, tm),),
        in_specs=in_specs,
        out_specs=pl.BlockSpec((tm, out_cols), lambda i: (i, 0)),
        compiler_params=pltpu.CompilerParams(
            dimension_semantics=("parallel",),
            vmem_limit_bytes=VMEM_LIMIT),
    )(x, *const_args)


def pallas_layernorm(x, g, be):
    return _rowwise_call(ln_kernel, x, [g, be], x.shape[1], ACT_DTYPE)


def pallas_ln_linear(x, g, be, wt, b):
    return _rowwise_call(ln_linear_kernel, x, [g, be, wt, b], wt.shape[1], jnp.float32)


# ----------------------------- model glue (tiny XLA ops) -----------------------------

def _attn2d_mask(attn_mask, tq, tk):
    """Clamped additive 2-D attention mask [Tq, Tk] (tiny; combined per-batch inside kernels)."""
    if attn_mask is None:
        return jnp.zeros((tq, tk), jnp.float32)
    if attn_mask.dtype == jnp.bool_:
        return jnp.where(attn_mask, NEG_INF, 0.0).astype(jnp.float32)
    return jnp.maximum(attn_mask.astype(jnp.float32), NEG_INF)


def _pad_additive(padding_mask, b, tk):
    """Per-batch additive key-padding row [B, 1, Tk] (never materialize [B, Tq, Tk])."""
    if padding_mask is None:
        return jnp.zeros((b, 1, tk), jnp.float32)
    if padding_mask.dtype == jnp.bool_:
        add = jnp.where(padding_mask, NEG_INF, 0.0)
    else:
        add = jnp.maximum(padding_mask.astype(jnp.float32), NEG_INF)
    return add.astype(jnp.float32).reshape(b, 1, tk)


def embed_and_posenc(tokens, table, pos, emb_size):
    # Trivial gather + elementwise: done in XLA (a Pallas call here is pure launch overhead).
    s = tokens.shape[0]
    e = table[tokens.T] * math.sqrt(emb_size)                # batch-first gather -> [B, S, E]
    return (e + pos[None, :s, :]).astype(ACT_DTYPE)


def encoder_layer(x, p, nhead, am, pad):                     # x [B, S, E] bf16
    b, s, e = x.shape
    return _batch_block_call(
        functools.partial(enc_block_kernel, nhead=nhead),
        [x, pad],
        [am, p["wqkv_t"], p["bqkv"], p["wout_r"], p["bout"], p["norm1_w"], p["norm1_b"],
         p["w1_t"], p["b1"], p["w2_t"], p["b2"], p["norm2_w"], p["norm2_b"]],
        s, e, ACT_DTYPE)


def decoder_layer(x, memory, p, nhead, tgt_am, tgt_pad, mem_pad):
    b, t, e = x.shape
    x1 = _batch_block_call(
        functools.partial(dec_self_block_kernel, nhead=nhead),
        [x, tgt_pad],
        [tgt_am, p["sa_wqkv_t"], p["sa_bqkv"], p["sa_wout_r"], p["sa_bout"],
         p["norm1_w"], p["norm1_b"]],
        t, e, ACT_DTYPE)
    x3 = _batch_block_call(
        functools.partial(dec_cross_ffn_block_kernel, nhead=nhead),
        [x1, memory, mem_pad],
        [p["ca_wq_t"], p["ca_bq"], p["ca_wkv_t"], p["ca_bkv"], p["ca_wout_r"], p["ca_bout"],
         p["norm2_w"], p["norm2_b"], p["w1_t"], p["b1"], p["w2_t"], p["b2"],
         p["norm3_w"], p["norm3_b"]],
        t, e, ACT_DTYPE)
    return x3


def seq2seq_transformer_forward(params, src, trg, src_mask, tgt_mask,
                                src_padding_mask, tgt_padding_mask,
                                memory_key_padding_mask, *, nhead, tgt_vocab):
    e = params["pos"].shape[-1]
    s, b = src.shape
    t = trg.shape[0]

    src_x = embed_and_posenc(src, params["src_emb"], params["pos"], e)   # [B, S, E]
    tgt_x = embed_and_posenc(trg, params["tgt_emb"], params["pos"], e)   # [B, T, E]

    src_am = _attn2d_mask(src_mask, s, s)
    tgt_am = _attn2d_mask(tgt_mask, t, t)
    src_pad = _pad_additive(src_padding_mask, b, s)
    tgt_pad = _pad_additive(tgt_padding_mask, b, t)
    mem_pad = _pad_additive(memory_key_padding_mask, b, s)

    # encoder (one fused pallas_call per layer)
    x = src_x
    for p in params["enc_layers"]:
        x = encoder_layer(x, p, nhead, src_am, src_pad)
    memory = pallas_layernorm(x.reshape(b * s, e),
                              params["enc_norm_w"], params["enc_norm_b"]).reshape(b, s, e)

    # decoder (two fused pallas_calls per layer)
    y = tgt_x
    for p in params["dec_layers"]:
        y = decoder_layer(y, memory, p, nhead, tgt_am, tgt_pad, mem_pad)

    # decoder final LayerNorm fused into the generator; vocab padded to x128, sliced back here.
    logits = pallas_ln_linear(y.reshape(b * t, e),
                              params["dec_norm_w"], params["dec_norm_b"],
                              params["gen_wt"], params["gen_b"])
    logits = logits[:, :tgt_vocab]
    return logits.reshape(b, t, tgt_vocab).transpose(1, 0, 2)            # PyTorch [T, B, V]


# ----------------------------- parameters -----------------------------

def make_pos_embedding(emb_size, maxlen=5000):
    den = jnp.exp(-jnp.arange(0, emb_size, 2, dtype=jnp.float32)
                  * (math.log(10000.0) / emb_size))
    pos = jnp.arange(0, maxlen, dtype=jnp.float32).reshape(maxlen, 1)
    pe = jnp.zeros((maxlen, emb_size), jnp.float32)
    pe = pe.at[:, 0::2].set(jnp.sin(pos * den))
    pe = pe.at[:, 1::2].set(jnp.cos(pos * den))
    return pe                                            # [maxlen, E]


def init_params(key, num_enc, num_dec, emb, nhead, src_vocab, tgt_vocab, ff):
    """PyTorch-layout parameters (nn.Linear weight is [out, in], MHA in_proj is [3E, E])."""
    keys = iter(jax.random.split(key, 512))

    def w(shape, scale=0.02):
        return jax.random.normal(next(keys), shape, jnp.float32) * scale

    zeros = lambda n: jnp.zeros((n,), jnp.float32)
    ones = lambda n: jnp.ones((n,), jnp.float32)

    def mha():
        return dict(in_proj_weight=w((3 * emb, emb)), in_proj_bias=zeros(3 * emb),
                    out_proj_weight=w((emb, emb)), out_proj_bias=zeros(emb))

    def enc_layer():
        return dict(self_attn=mha(),
                    lin1_w=w((ff, emb)), lin1_b=zeros(ff),
                    lin2_w=w((emb, ff)), lin2_b=zeros(emb),
                    norm1_w=ones(emb), norm1_b=zeros(emb),
                    norm2_w=ones(emb), norm2_b=zeros(emb))

    def dec_layer():
        return dict(self_attn=mha(), cross_attn=mha(),
                    lin1_w=w((ff, emb)), lin1_b=zeros(ff),
                    lin2_w=w((emb, ff)), lin2_b=zeros(emb),
                    norm1_w=ones(emb), norm1_b=zeros(emb),
                    norm2_w=ones(emb), norm2_b=zeros(emb),
                    norm3_w=ones(emb), norm3_b=zeros(emb))

    return dict(
        src_emb=w((src_vocab, emb), 1.0),
        tgt_emb=w((tgt_vocab, emb), 1.0),
        pos=make_pos_embedding(emb),
        enc_layers=[enc_layer() for _ in range(num_enc)],
        dec_layers=[dec_layer() for _ in range(num_dec)],
        enc_norm_w=ones(emb), enc_norm_b=zeros(emb),
        dec_norm_w=ones(emb), dec_norm_b=zeros(emb),
        gen_w=w((tgt_vocab, emb)), gen_b=zeros(tgt_vocab),
    )


def prepare_params(raw, nhead):
    """One-time conversion: pre-transpose + pre-cast all MXU weights to bf16, fold 1/sqrt(dh)
    into Wq/bq, reshape the out-proj to [H, dh, E] for the per-head fold, split cross-attn
    in_proj into Q + packed KV, pad the generator vocab to a multiple of 128, and reshape
    biases/LN params (kept f32) to [1, N]."""
    e = raw["pos"].shape[-1]
    scale = 1.0 / math.sqrt(e // nhead)
    bf = lambda a: a.astype(MXU_DTYPE)
    row = lambda a: a.reshape(1, -1).astype(jnp.float32)

    def out_reshaped(wout):                       # [E,E] (out,in) -> W^T reshaped [H, dh, E]
        return bf(wout.T.reshape(nhead, e // nhead, e))

    def prep_self(mp):
        wq = mp["in_proj_weight"][:e] * scale
        bq = mp["in_proj_bias"][:e] * scale
        wkv = mp["in_proj_weight"][e:]
        bkv = mp["in_proj_bias"][e:]
        return dict(wqkv_t=bf(jnp.concatenate([wq, wkv], axis=0).T),
                    bqkv=row(jnp.concatenate([bq, bkv], axis=0)),
                    wout_r=out_reshaped(mp["out_proj_weight"]),
                    bout=row(mp["out_proj_bias"]))

    def prep_cross(mp):
        return dict(wq_t=bf((mp["in_proj_weight"][:e] * scale).T),
                    bq=row(mp["in_proj_bias"][:e] * scale),
                    wkv_t=bf(mp["in_proj_weight"][e:].T),
                    bkv=row(mp["in_proj_bias"][e:]),
                    wout_r=out_reshaped(mp["out_proj_weight"]),
                    bout=row(mp["out_proj_bias"]))

    def common(lp):
        return dict(w1_t=bf(lp["lin1_w"].T), b1=row(lp["lin1_b"]),
                    w2_t=bf(lp["lin2_w"].T), b2=row(lp["lin2_b"]),
                    norm1_w=row(lp["norm1_w"]), norm1_b=row(lp["norm1_b"]),
                    norm2_w=row(lp["norm2_w"]), norm2_b=row(lp["norm2_b"]))

    def prep_enc(lp):
        d = prep_self(lp["self_attn"]); d.update(common(lp)); return d

    def prep_dec(lp):
        sa = prep_self(lp["self_attn"]); ca = prep_cross(lp["cross_attn"])
        d = dict(sa_wqkv_t=sa["wqkv_t"], sa_bqkv=sa["bqkv"],
                 sa_wout_r=sa["wout_r"], sa_bout=sa["bout"],
                 ca_wq_t=ca["wq_t"], ca_bq=ca["bq"],
                 ca_wkv_t=ca["wkv_t"], ca_bkv=ca["bkv"],
                 ca_wout_r=ca["wout_r"], ca_bout=ca["bout"])
        d.update(common(lp))
        d.update(norm3_w=row(lp["norm3_w"]), norm3_b=row(lp["norm3_b"]))
        return d

    # generator: pad vocab to a multiple of 128 for lane-dense stores (sliced back outside).
    v = raw["gen_w"].shape[0]
    vpad = ((v + 127) // 128) * 128
    gen_wt = jnp.zeros((e, vpad), MXU_DTYPE).at[:, :v].set(bf(raw["gen_w"].T))
    gen_b = jnp.zeros((1, vpad), jnp.float32).at[:, :v].set(raw["gen_b"])

    return dict(
        src_emb=raw["src_emb"], tgt_emb=raw["tgt_emb"], pos=raw["pos"],
        enc_layers=[prep_enc(lp) for lp in raw["enc_layers"]],
        dec_layers=[prep_dec(lp) for lp in raw["dec_layers"]],
        enc_norm_w=row(raw["enc_norm_w"]), enc_norm_b=row(raw["enc_norm_b"]),
        dec_norm_w=row(raw["dec_norm_w"]), dec_norm_b=row(raw["dec_norm_b"]),
        gen_wt=gen_wt, gen_b=gen_b,
    )


# ----------------------------- main -----------------------------

if __name__ == "__main__":
    NUM_ENC, NUM_DEC = 2, 2
    EMB, NHEAD, FF = 32, 4, 64
    SRC_VOCAB, TGT_VOCAB = 20, 24
    S, T, B = 8, 6, 2

    raw_params = init_params(jax.random.PRNGKey(0), NUM_ENC, NUM_DEC,
                             EMB, NHEAD, SRC_VOCAB, TGT_VOCAB, FF)
    params = prepare_params(raw_params, NHEAD)      # one-time transpose/cast/scale/split/pad

    k1, k2 = jax.random.split(jax.random.PRNGKey(0), 2)
    src = jax.random.randint(k1, (S, B), 0, SRC_VOCAB)               # [S, B] tokens
    trg = jax.random.randint(k2, (T, B), 0, TGT_VOCAB)               # [T, B] tokens
    src_mask = jnp.zeros((S, S), jnp.float32)
    tgt_mask = jnp.where(jnp.triu(jnp.ones((T, T), bool), k=1),      # PyTorch-style -inf mask
                         -jnp.inf, 0.0).astype(jnp.float32)          # (clamped to -1e30 inside)
    src_padding_mask = jnp.zeros((B, S), bool)
    tgt_padding_mask = jnp.zeros((B, T), bool)
    memory_key_padding_mask = src_padding_mask

    fwd = jax.jit(seq2seq_transformer_forward, static_argnames=("nhead", "tgt_vocab"))
    out = fwd(params, src, trg, src_mask, tgt_mask,
              src_padding_mask, tgt_padding_mask, memory_key_padding_mask,
              nhead=NHEAD, tgt_vocab=TGT_VOCAB)
    jax.block_until_ready(out)

    assert out.shape == (T, B, TGT_VOCAB), out.shape
    assert bool(jnp.all(jnp.isfinite(out)))
    print("KERNEL_OK")
</pallas_src>

<mosaic_0001>
module attributes {stable_mosaic.version = 11 : i64} {
  func.func @ln_kernel(%arg0: i32, %arg1: memref<16x32xbf16, #tpu.memory_space<vmem>>, %arg2: memref<1x32xf32, #tpu.memory_space<vmem>>, %arg3: memref<1x32xf32, #tpu.memory_space<vmem>>, %arg4: memref<16x32xbf16, #tpu.memory_space<vmem>>) attributes {dimension_semantics = [#tpu.dimension_semantics<parallel>], iteration_bounds = array<i64: 1>, scalar_prefetch = 0 : i64, scratch_operands = 0 : i64, tpu.core_type = #tpu.core_type<tc>, window_params = [{transform_indices = @transform_0, window_bounds = array<i64: 16, 32>}, {pipeline_mode = #tpu.pipeline_mode<synchronous>, transform_indices = @transform_1, window_bounds = array<i64: 1, 32>}, {pipeline_mode = #tpu.pipeline_mode<synchronous>, transform_indices = @transform_2, window_bounds = array<i64: 1, 32>}, {transform_indices = @transform_3, window_bounds = array<i64: 16, 32>}]} {
    %c0 = arith.constant 0 : index
    %c0_0 = arith.constant 0 : index
    %0 = vector.load %arg1[%c0, %c0_0] : memref<16x32xbf16, #tpu.memory_space<vmem>>, vector<16x32xbf16>
    %1 = arith.extf %0 : vector<16x32xbf16> to vector<16x32xf32>
    %c0_1 = arith.constant 0 : index
    %c0_2 = arith.constant 0 : index
    %2 = vector.load %arg2[%c0_1, %c0_2] : memref<1x32xf32, #tpu.memory_space<vmem>>, vector<1x32xf32>
    %c0_3 = arith.constant 0 : index
    %c0_4 = arith.constant 0 : index
    %3 = vector.load %arg3[%c0_3, %c0_4] : memref<1x32xf32, #tpu.memory_space<vmem>>, vector<1x32xf32>
    %cst = arith.constant dense<0.000000e+00> : vector<16xf32>
    %4 = vector.multi_reduction <add>, %1, %cst [1] : vector<16x32xf32> to vector<16xf32>
    %5 = vector.shape_cast %4 : vector<16xf32> to vector<16x1xf32>
    %cst_5 = arith.constant 3.200000e+01 : f32
    %6 = vector.broadcast %cst_5 : f32 to vector<16x1xf32>
    %7 = arith.divf %5, %6 : vector<16x1xf32>
    %8 = vector.broadcast %7 : vector<16x1xf32> to vector<16x32xf32>
    %9 = arith.subf %1, %8 : vector<16x32xf32>
    %10 = arith.mulf %9, %9 : vector<16x32xf32>
    %cst_6 = arith.constant dense<0.000000e+00> : vector<16xf32>
    %11 = vector.multi_reduction <add>, %10, %cst_6 [1] : vector<16x32xf32> to vector<16xf32>
    %12 = vector.shape_cast %11 : vector<16xf32> to vector<16x1xf32>
    %cst_7 = arith.constant 3.200000e+01 : f32
    %13 = vector.broadcast %cst_7 : f32 to vector<16x1xf32>
    %14 = arith.divf %12, %13 : vector<16x1xf32>
    %15 = vector.broadcast %7 : vector<16x1xf32> to vector<16x32xf32>
    %16 = arith.subf %1, %15 : vector<16x32xf32>
    %cst_8 = arith.constant 9.99999974E-6 : f32
    %17 = vector.broadcast %cst_8 : f32 to vector<16x1xf32>
    %18 = arith.addf %14, %17 : vector<16x1xf32>
    %19 = math.rsqrt %18 : vector<16x1xf32>
    %20 = vector.broadcast %19 : vector<16x1xf32> to vector<16x32xf32>
    %21 = arith.mulf %16, %20 : vector<16x32xf32>
    %22 = vector.broadcast %2 : vector<1x32xf32> to vector<16x32xf32>
    %23 = arith.mulf %21, %22 : vector<16x32xf32>
    %24 = vector.broadcast %3 : vector<1x32xf32> to vector<16x32xf32>
    %25 = arith.addf %23, %24 : vector<16x32xf32>
    %26 = arith.truncf %25 : vector<16x32xf32> to vector<16x32xbf16>
    %c0_9 = arith.constant 0 : index
    %c0_10 = arith.constant 0 : index
    %27 = vector.load %arg4[%c0_9, %c0_10] : memref<16x32xbf16, #tpu.memory_space<vmem>>, vector<16x32xbf16>
    tpu.vector_store %arg4[%c0_9, %c0_10], %26 {strides = array<i32>} : memref<16x32xbf16, #tpu.memory_space<vmem>>, vector<16x32xbf16>,
    return
  }
  func.func @transform_0(%arg0: i32) -> (i32, i32) {
    %c0_i32 = arith.constant 0 : i32
    %c0_i32_0 = arith.constant 0 : i32
    return %arg0, %c0_i32 : i32, i32
  }
  func.func @transform_1(%arg0: i32) -> (i32, i32) {
    %c0_i32 = arith.constant 0 : i32
    %c0_i32_0 = arith.constant 0 : i32
    %c0_i32_1 = arith.constant 0 : i32
    return %c0_i32, %c0_i32_0 : i32, i32
  }
  func.func @transform_2(%arg0: i32) -> (i32, i32) {
    %c0_i32 = arith.constant 0 : i32
    %c0_i32_0 = arith.constant 0 : i32
    %c0_i32_1 = arith.constant 0 : i32
    return %c0_i32, %c0_i32_0 : i32, i32
  }
  func.func @transform_3(%arg0: i32) -> (i32, i32) {
    %c0_i32 = arith.constant 0 : i32
    %c0_i32_0 = arith.constant 0 : i32
    return %arg0, %c0_i32 : i32, i32
  }
}

module attributes {stable_mosaic.version = 11 : i64} {
  func.func @enc_block_kernel(%arg0: i32, %arg1: memref<1x8x32xbf16, #tpu.memory_space<vmem>>, %arg2: memref<1x1x8xf32, #tpu.memory_space<vmem>>, %arg3: memref<8x8xf32, #tpu.memory_space<vmem>>, %arg4: memref<32x96xbf16, #tpu.memory_space<vmem>>, %arg5: memref<1x96xf32, #tpu.memory_space<vmem>>, %arg6: memref<4x8x32xbf16, #tpu.memory_space<vmem>>, %arg7: memref<1x32xf32, #tpu.memory_space<vmem>>, %arg8: memref<1x32xf32, #tpu.memory_space<vmem>>, %arg9: memref<1x32xf32, #tpu.memory_space<vmem>>, %arg10: memref<32x64xbf16, #tpu.memory_space<vmem>>, %arg11: memref<1x64xf32, #tpu.memory_space<vmem>>, %arg12: memref<64x32xbf16, #tpu.memory_space<vmem>>, %arg13: memref<1x32xf32, #tpu.memory_space<vmem>>, %arg14: memref<1x32xf32, #tpu.memory_space<vmem>>, %arg15: memref<1x32xf32, #tpu.memory_space<vmem>>, %arg16: memref<1x8x32xbf16, #tpu.memory_space<vmem>>) attributes {dimension_semantics = [#tpu.dimension_semantics<parallel>], iteration_bounds = array<i64: 2>, scalar_prefetch = 0 : i64, scratch_operands = 0 : i64, tpu.core_type = #tpu.core_type<tc>, window_params = [{transform_indices = @transform_0, window_bounds = array<i64: 1, 8, 32>}, {transform_indices = @transform_1, window_bounds = array<i64: 1, 1, 8>}, {pipeline_mode = #tpu.pipeline_mode<synchronous>, transform_indices = @transform_2, window_bounds = array<i64: 8, 8>}, {pipeline_mode = #tpu.pipeline_mode<synchronous>, transform_indices = @transform_3, window_bounds = array<i64: 32, 96>}, {pipeline_mode = #tpu.pipeline_mode<synchronous>, transform_indices = @transform_4, window_bounds = array<i64: 1, 96>}, {pipeline_mode = #tpu.pipeline_mode<synchronous>, transform_indices = @transform_5, window_bounds = array<i64: 4, 8, 32>}, {pipeline_mode = #tpu.pipeline_mode<synchronous>, transform_indices = @transform_6, window_bounds = array<i64: 1, 32>}, {pipeline_mode = #tpu.pipeline_mode<synchronous>, transform_indices = @transform_7, window_bounds = array<i64: 1, 32>}, {pipeline_mode = #tpu.pipeline_mode<synchronous>, transform_indices = @transform_8, window_bounds = array<i64: 1, 32>}, {pipeline_mode = #tpu.pipeline_mode<synchronous>, transform_indices = @transform_9, window_bounds = array<i64: 32, 64>}, {pipeline_mode = #tpu.pipeline_mode<synchronous>, transform_indices = @transform_10, window_bounds = array<i64: 1, 64>}, {pipeline_mode = #tpu.pipeline_mode<synchronous>, transform_indices = @transform_11, window_bounds = array<i64: 64, 32>}, {pipeline_mode = #tpu.pipeline_mode<synchronous>, transform_indices = @transform_12, window_bounds = array<i64: 1, 32>}, {pipeline_mode = #tpu.pipeline_mode<synchronous>, transform_indices = @transform_13, window_bounds = array<i64: 1, 32>}, {pipeline_mode = #tpu.pipeline_mode<synchronous>, transform_indices = @transform_14, window_bounds = array<i64: 1, 32>}, {transform_indices = @transform_15, window_bounds = array<i64: 1, 8, 32>}]} {
    %c0 = arith.constant 0 : index
    %c0_0 = arith.constant 0 : index
    %c0_1 = arith.constant 0 : index
    %0 = vector.load %arg1[%c0, %c0_0, %c0_1] : memref<1x8x32xbf16, #tpu.memory_space<vmem>>, vector<1x8x32xbf16>
    %1 = vector.shape_cast %0 : vector<1x8x32xbf16> to vector<8x32xbf16>
    %2 = arith.extf %1 : vector<8x32xbf16> to vector<8x32xf32>
    %c0_2 = arith.constant 0 : index
    %c0_3 = arith.constant 0 : index
    %3 = vector.load %arg4[%c0_2, %c0_3] : memref<32x96xbf16, #tpu.memory_space<vmem>>, vector<32x96xbf16>
    %cst = arith.constant dense<0.000000e+00> : vector<8x96xf32>
    %4 = tpu.matmul %1, %3, %cst {dimension_numbers = #tpu.dot_dimension_numbers<[1], [0], [0], [1], [0, 0, 1, 1], [], []>} : vector<8x32xbf16>, vector<32x96xbf16>, vector<8x96xf32> -> vector<8x96xf32>
    %c0_4 = arith.constant 0 : index
    %c0_5 = arith.constant 0 : index
    %5 = vector.load %arg5[%c0_4, %c0_5] : memref<1x96xf32, #tpu.memory_space<vmem>>, vector<1x96xf32>
    %6 = vector.broadcast %5 : vector<1x96xf32> to vector<8x96xf32>
    %7 = arith.addf %4, %6 : vector<8x96xf32>
    %c0_6 = arith.constant 0 : index
    %c0_7 = arith.constant 0 : index
    %8 = vector.load %arg3[%c0_6, %c0_7] : memref<8x8xf32, #tpu.memory_space<vmem>>, vector<8x8xf32>
    %c0_8 = arith.constant 0 : index
    %c0_9 = arith.constant 0 : index
    %c0_10 = arith.constant 0 : index
    %9 = vector.load %arg2[%c0_8, %c0_9, %c0_10] : memref<1x1x8xf32, #tpu.memory_space<vmem>>, vector<1x1x8xf32>
    %10 = vector.shape_cast %9 : vector<1x1x8xf32> to vector<1x8xf32>
    %11 = vector.broadcast %10 : vector<1x8xf32> to vector<8x8xf32>
    %12 = arith.addf %8, %11 : vector<8x8xf32>
    %13 = vector.extract_strided_slice %7 {offsets = [0, 0], sizes = [8, 32], strides = [1, 1]} : vector<8x96xf32> to vector<8x32xf32>
    %14 = vector.extract_strided_slice %7 {offsets = [0, 32], sizes = [8, 32], strides = [1, 1]} : vector<8x96xf32> to vector<8x32xf32>
    %15 = vector.extract_strided_slice %7 {offsets = [0, 64], sizes = [8, 32], strides = [1, 1]} : vector<8x96xf32> to vector<8x32xf32>
    %16 = arith.truncf %13 : vector<8x32xf32> to vector<8x32xbf16>
    %17 = arith.truncf %14 : vector<8x32xf32> to vector<8x32xbf16>
    %18 = arith.truncf %15 : vector<8x32xf32> to vector<8x32xbf16>
    %19 = vector.extract_strided_slice %16 {offsets = [0, 0], sizes = [8, 8], strides = [1, 1]} : vector<8x32xbf16> to vector<8x8xbf16>
    %20 = vector.extract_strided_slice %17 {offsets = [0, 0], sizes = [8, 8], strides = [1, 1]} : vector<8x32xbf16> to vector<8x8xbf16>
    %cst_11 = arith.constant dense<0.000000e+00> : vector<8x8xf32>
    %21 = tpu.matmul %19, %20, %cst_11 {dimension_numbers = #tpu.dot_dimension_numbers<[1], [1], [0], [0], [0, 0, 1, 0], [], []>} : vector<8x8xbf16>, vector<8x8xbf16>, vector<8x8xf32> -> vector<8x8xf32>
    %22 = arith.addf %21, %12 : vector<8x8xf32>
    %cst_12 = arith.constant dense<0xFF800000> : vector<8xf32>
    %23 = vector.multi_reduction <maximumf>, %22, %cst_12 [1] : vector<8x8xf32> to vector<8xf32>
    %24 = vector.shape_cast %23 : vector<8xf32> to vector<8x1xf32>
    %25 = vector.broadcast %24 : vector<8x1xf32> to vector<8x8xf32>
    %26 = arith.subf %22, %25 : vector<8x8xf32>
    %27 = math.exp %26 : vector<8x8xf32>
    %cst_13 = arith.constant dense<0.000000e+00> : vector<8xf32>
    %28 = vector.multi_reduction <add>, %27, %cst_13 [1] : vector<8x8xf32> to vector<8xf32>
    %29 = vector.shape_cast %28 : vector<8xf32> to vector<8x1xf32>
    %30 = tpu.reciprocal %29 {approx = true} : vector<8x1xf32> -> vector<8x1xf32>
    %31 = vector.broadcast %30 : vector<8x1xf32> to vector<8x8xf32>
    %32 = arith.mulf %27, %31 : vector<8x8xf32>
    %33 = arith.truncf %32 : vector<8x8xf32> to vector<8x8xbf16>
    %34 = vector.extract_strided_slice %18 {offsets = [0, 0], sizes = [8, 8], strides = [1, 1]} : vector<8x32xbf16> to vector<8x8xbf16>
    %cst_14 = arith.constant dense<0.000000e+00> : vector<8x8xf32>
    %35 = tpu.matmul %33, %34, %cst_14 {dimension_numbers = #tpu.dot_dimension_numbers<[1], [0], [0], [1], [0, 0, 1, 1], [], []>} : vector<8x8xbf16>, vector<8x8xbf16>, vector<8x8xf32> -> vector<8x8xf32>
    %36 = arith.truncf %35 : vector<8x8xf32> to vector<8x8xbf16>
    %c0_15 = arith.constant 0 : index
    %c0_16 = arith.constant 0 : index
    %c0_17 = arith.constant 0 : index
    %37 = vector.load %arg6[%c0_15, %c0_16, %c0_17] : memref<4x8x32xbf16, #tpu.memory_space<vmem>>, vector<1x8x32xbf16>
    %38 = vector.shape_cast %37 : vector<1x8x32xbf16> to vector<8x32xbf16>
    %cst_18 = arith.constant dense<0.000000e+00> : vector<8x32xf32>
    %39 = tpu.matmul %36, %38, %cst_18 {dimension_numbers = #tpu.dot_dimension_numbers<[1], [0], [0], [1], [0, 0, 1, 1], [], []>} : vector<8x8xbf16>, vector<8x32xbf16>, vector<8x32xf32> -> vector<8x32xf32>
    %40 = vector.extract_strided_slice %16 {offsets = [0, 8], sizes = [8, 8], strides = [1, 1]} : vector<8x32xbf16> to vector<8x8xbf16>
    %41 = vector.extract_strided_slice %17 {offsets = [0, 8], sizes = [8, 8], strides = [1, 1]} : vector<8x32xbf16> to vector<8x8xbf16>
    %cst_19 = arith.constant dense<0.000000e+00> : vector<8x8xf32>
    %42 = tpu.matmul %40, %41, %cst_19 {dimension_numbers = #tpu.dot_dimension_numbers<[1], [1], [0], [0], [0, 0, 1, 0], [], []>} : vector<8x8xbf16>, vector<8x8xbf16>, vector<8x8xf32> -> vector<8x8xf32>
    %43 = arith.addf %42, %12 : vector<8x8xf32>
    %cst_20 = arith.constant dense<0xFF800000> : vector<8xf32>
    %44 = vector.multi_reduction <maximumf>, %43, %cst_20 [1] : vector<8x8xf32> to vector<8xf32>
    %45 = vector.shape_cast %44 : vector<8xf32> to vector<8x1xf32>
    %46 = vector.broadcast %45 : vector<8x1xf32> to vector<8x8xf32>
    %47 = arith.subf %43, %46 : vector<8x8xf32>
    %48 = math.exp %47 : vector<8x8xf32>
    %cst_21 = arith.constant dense<0.000000e+00> : vector<8xf32>
    %49 = vector.multi_reduction <add>, %48, %cst_21 [1] : vector<8x8xf32> to vector<8xf32>
    %50 = vector.shape_cast %49 : vector<8xf32> to vector<8x1xf32>
    %51 = tpu.reciprocal %50 {approx = true} : vector<8x1xf32> -> vector<8x1xf32>
    %52 = vector.broadcast %51 : vector<8x1xf32> to vector<8x8xf32>
    %53 = arith.mulf %48, %52 : vector<8x8xf32>
    %54 = arith.truncf %53 : vector<8x8xf32> to vector<8x8xbf16>
    %55 = vector.extract_strided_slice %18 {offsets = [0, 8], sizes = [8, 8], strides = [1, 1]} : vector<8x32xbf16> to vector<8x8xbf16>
    %cst_22 = arith.constant dense<0.000000e+00> : vector<8x8xf32>
    %56 = tpu.matmul %54, %55, %cst_22 {dimension_numbers = #tpu.dot_dimension_numbers<[1], [0], [0], [1], [0, 0, 1, 1], [], []>} : vector<8x8xbf16>, vector<8x8xbf16>, vector<8x8xf32> -> vector<8x8xf32>
    %57 = arith.truncf %56 : vector<8x8xf32> to vector<8x8xbf16>
    %c1 = arith.constant 1 : index
    %c0_23 = arith.constant 0 : index
    %c0_24 = arith.constant 0 : index
    %58 = vector.load %arg6[%c1, %c0_23, %c0_24] : memref<4x8x32xbf16, #tpu.memory_space<vmem>>, vector<1x8x32xbf16>
    %59 = vector.shape_cast %58 : vector<1x8x32xbf16> to vector<8x32xbf16>
    %cst_25 = arith.constant dense<0.000000e+00> : vector<8x32xf32>
    %60 = tpu.matmul %57, %59, %cst_25 {dimension_numbers = #tpu.dot_dimension_numbers<[1], [0], [0], [1], [0, 0, 1, 1], [], []>} : vector<8x8xbf16>, vector<8x32xbf16>, vector<8x32xf32> -> vector<8x32xf32>
    %61 = arith.addf %39, %60 : vector<8x32xf32>
    %62 = vector.extract_strided_slice %16 {offsets = [0, 16], sizes = [8, 8], strides = [1, 1]} : vector<8x32xbf16> to vector<8x8xbf16>
    %63 = vector.extract_strided_slice %17 {offsets = [0, 16], sizes = [8, 8], strides = [1, 1]} : vector<8x32xbf16> to vector<8x8xbf16>
    %cst_26 = arith.constant dense<0.000000e+00> : vector<8x8xf32>
    %64 = tpu.matmul %62, %63, %cst_26 {dimension_numbers = #tpu.dot_dimension_numbers<[1], [1], [0], [0], [0, 0, 1, 0], [], []>} : vector<8x8xbf16>, vector<8x8xbf16>, vector<8x8xf32> -> vector<8x8xf32>
    %65 = arith.addf %64, %12 : vector<8x8xf32>
    %cst_27 = arith.constant dense<0xFF800000> : vector<8xf32>
    %66 = vector.multi_reduction <maximumf>, %65, %cst_27 [1] : vector<8x8xf32> to vector<8xf32>
    %67 = vector.shape_cast %66 : vector<8xf32> to vector<8x1xf32>
    %68 = vector.broadcast %67 : vector<8x1xf32> to vector<8x8xf32>
    %69 = arith.subf %65, %68 : vector<8x8xf32>
    %70 = math.exp %69 : vector<8x8xf32>
    %cst_28 = arith.constant dense<0.000000e+00> : vector<8xf32>
    %71 = vector.multi_reduction <add>, %70, %cst_28 [1] : vector<8x8xf32> to vector<8xf32>
    %72 = vector.shape_cast %71 : vector<8xf32> to vector<8x1xf32>
    %73 = tpu.reciprocal %72 {approx = true} : vector<8x1xf32> -> vector<8x1xf32>
    %74 = vector.broadcast %73 : vector<8x1xf32> to vector<8x8xf32>
    %75 = arith.mulf %70, %74 : vector<8x8xf32>
    %76 = arith.truncf %75 : vector<8x8xf32> to vector<8x8xbf16>
    %77 = vector.extract_strided_slice %18 {offsets = [0, 16], sizes = [8, 8], strides = [1, 1]} : vector<8x32xbf16> to vector<8x8xbf16>
    %cst_29 = arith.constant dense<0.000000e+00> : vector<8x8xf32>
    %78 = tpu.matmul %76, %77, %cst_29 {dimension_numbers = #tpu.dot_dimension_numbers<[1], [0], [0], [1], [0, 0, 1, 1], [], []>} : vector<8x8xbf16>, vector<8x8xbf16>, vector<8x8xf32> -> vector<8x8xf32>
    %79 = arith.truncf %78 : vector<8x8xf32> to vector<8x8xbf16>
    %c2 = arith.constant 2 : index
    %c0_30 = arith.constant 0 : index
    %c0_31 = arith.constant 0 : index
    %80 = vector.load %arg6[%c2, %c0_30, %c0_31] : memref<4x8x32xbf16, #tpu.memory_space<vmem>>, vector<1x8x32xbf16>
    %81 = vector.shape_cast %80 : vector<1x8x32xbf16> to vector<8x32xbf16>
    %cst_32 = arith.constant dense<0.000000e+00> : vector<8x32xf32>
    %82 = tpu.matmul %79, %81, %cst_32 {dimension_numbers = #tpu.dot_dimension_numbers<[1], [0], [0], [1], [0, 0, 1, 1], [], []>} : vector<8x8xbf16>, vector<8x32xbf16>, vector<8x32xf32> -> vector<8x32xf32>
    %83 = arith.addf %61, %82 : vector<8x32xf32>
    %84 = vector.extract_strided_slice %16 {offsets = [0, 24], sizes = [8, 8], strides = [1, 1]} : vector<8x32xbf16> to vector<8x8xbf16>
    %85 = vector.extract_strided_slice %17 {offsets = [0, 24], sizes = [8, 8], strides = [1, 1]} : vector<8x32xbf16> to vector<8x8xbf16>
    %cst_33 = arith.constant dense<0.000000e+00> : vector<8x8xf32>
    %86 = tpu.matmul %84, %85, %cst_33 {dimension_numbers = #tpu.dot_dimension_numbers<[1], [1], [0], [0], [0, 0, 1, 0], [], []>} : vector<8x8xbf16>, vector<8x8xbf16>, vector<8x8xf32> -> vector<8x8xf32>
    %87 = arith.addf %86, %12 : vector<8x8xf32>
    %cst_34 = arith.constant dense<0xFF800000> : vector<8xf32>
    %88 = vector.multi_reduction <maximumf>, %87, %cst_34 [1] : vector<8x8xf32> to vector<8xf32>
    %89 = vector.shape_cast %88 : vector<8xf32> to vector<8x1xf32>
    %90 = vector.broadcast %89 : vector<8x1xf32> to vector<8x8xf32>
    %91 = arith.subf %87, %90 : vector<8x8xf32>
    %92 = math.exp %91 : vector<8x8xf32>
    %cst_35 = arith.constant dense<0.000000e+00> : vector<8xf32>
    %93 = vector.multi_reduction <add>, %92, %cst_35 [1] : vector<8x8xf32> to vector<8xf32>
    %94 = vector.shape_cast %93 : vector<8xf32> to vector<8x1xf32>
    %95 = tpu.reciprocal %94 {approx = true} : vector<8x1xf32> -> vector<8x1xf32>
    %96 = vector.broadcast %95 : vector<8x1xf32> to vector<8x8xf32>
    %97 = arith.mulf %92, %96 : vector<8x8xf32>
    %98 = arith.truncf %97 : vector<8x8xf32> to vector<8x8xbf16>
    %99 = vector.extract_strided_slice %18 {offsets = [0, 24], sizes = [8, 8], strides = [1, 1]} : vector<8x32xbf16> to vector<8x8xbf16>
    %cst_36 = arith.constant dense<0.000000e+00> : vector<8x8xf32>
    %100 = tpu.matmul %98, %99, %cst_36 {dimension_numbers = #tpu.dot_dimension_numbers<[1], [0], [0], [1], [0, 0, 1, 1], [], []>} : vector<8x8xbf16>, vector<8x8xbf16>, vector<8x8xf32> -> vector<8x8xf32>
    %101 = arith.truncf %100 : vector<8x8xf32> to vector<8x8xbf16>
    %c3 = arith.constant 3 : index
    %c0_37 = arith.constant 0 : index
    %c0_38 = arith.constant 0 : index
    %102 = vector.load %arg6[%c3, %c0_37, %c0_38] : memref<4x8x32xbf16, #tpu.memory_space<vmem>>, vector<1x8x32xbf16>
    %103 = vector.shape_cast %102 : vector<1x8x32xbf16> to vector<8x32xbf16>
    %cst_39 = arith.constant dense<0.000000e+00> : vector<8x32xf32>
    %104 = tpu.matmul %101, %103, %cst_39 {dimension_numbers = #tpu.dot_dimension_numbers<[1], [0], [0], [1], [0, 0, 1, 1], [], []>} : vector<8x8xbf16>, vector<8x32xbf16>, vector<8x32xf32> -> vector<8x32xf32>
    %105 = arith.addf %83, %104 : vector<8x32xf32>
    %c0_40 = arith.constant 0 : index
    %c0_41 = arith.constant 0 : index
    %106 = vector.load %arg7[%c0_40, %c0_41] : memref<1x32xf32, #tpu.memory_space<vmem>>, vector<1x32xf32>
    %107 = vector.broadcast %106 : vector<1x32xf32> to vector<8x32xf32>
    %108 = arith.addf %105, %107 : vector<8x32xf32>
    %109 = arith.addf %108, %2 : vector<8x32xf32>
    %c0_42 = arith.constant 0 : index
    %c0_43 = arith.constant 0 : index
    %110 = vector.load %arg8[%c0_42, %c0_43] : memref<1x32xf32, #tpu.memory_space<vmem>>, vector<1x32xf32>
    %c0_44 = arith.constant 0 : index
    %c0_45 = arith.constant 0 : index
    %111 = vector.load %arg9[%c0_44, %c0_45] : memref<1x32xf32, #tpu.memory_space<vmem>>, vector<1x32xf32>
    %cst_46 = arith.constant dense<0.000000e+00> : vector<8xf32>
    %112 = vector.multi_reduction <add>, %109, %cst_46 [1] : vector<8x32xf32> to vector<8xf32>
    %113 = vector.shape_cast %112 : vector<8xf32> to vector<8x1xf32>
    %cst_47 = arith.constant 3.200000e+01 : f32
    %114 = vector.broadcast %cst_47 : f32 to vector<8x1xf32>
    %115 = arith.divf %113, %114 : vector<8x1xf32>
    %116 = vector.broadcast %115 : vector<8x1xf32> to vector<8x32xf32>
    %117 = arith.subf %109, %116 : vector<8x32xf32>
    %118 = arith.mulf %117, %117 : vector<8x32xf32>
    %cst_48 = arith.constant dense<0.000000e+00> : vector<8xf32>
    %119 = vector.multi_reduction <add>, %118, %cst_48 [1] : vector<8x32xf32> to vector<8xf32>
    %120 = vector.shape_cast %119 : vector<8xf32> to vector<8x1xf32>
    %cst_49 = arith.constant 3.200000e+01 : f32
    %121 = vector.broadcast %cst_49 : f32 to vector<8x1xf32>
    %122 = arith.divf %120, %121 : vector<8x1xf32>
    %123 = vector.broadcast %115 : vector<8x1xf32> to vector<8x32xf32>
    %124 = arith.subf %109, %123 : vector<8x32xf32>
    %cst_50 = arith.constant 9.99999974E-6 : f32
    %125 = vector.broadcast %cst_50 : f32 to vector<8x1xf32>
    %126 = arith.addf %122, %125 : vector<8x1xf32>
    %127 = math.rsqrt %126 : vector<8x1xf32>
    %128 = vector.broadcast %127 : vector<8x1xf32> to vector<8x32xf32>
    %129 = arith.mulf %124, %128 : vector<8x32xf32>
    %130 = vector.broadcast %110 : vector<1x32xf32> to vector<8x32xf32>
    %131 = arith.mulf %129, %130 : vector<8x32xf32>
    %132 = vector.broadcast %111 : vector<1x32xf32> to vector<8x32xf32>
    %133 = arith.addf %131, %132 : vector<8x32xf32>
    %134 = arith.truncf %133 : vector<8x32xf32> to vector<8x32xbf16>
    %c0_51 = arith.constant 0 : index
    %c0_52 = arith.constant 0 : index
    %135 = vector.load %arg10[%c0_51, %c0_52] : memref<32x64xbf16, #tpu.memory_space<vmem>>, vector<32x64xbf16>
    %cst_53 = arith.constant dense<0.000000e+00> : vector<8x64xf32>
    %136 = tpu.matmul %134, %135, %cst_53 {dimension_numbers = #tpu.dot_dimension_numbers<[1], [0], [0], [1], [0, 0, 1, 1], [], []>} : vector<8x32xbf16>, vector<32x64xbf16>, vector<8x64xf32> -> vector<8x64xf32>
    %c0_54 = arith.constant 0 : index
    %c0_55 = arith.constant 0 : index
    %137 = vector.load %arg11[%c0_54, %c0_55] : memref<1x64xf32, #tpu.memory_space<vmem>>, vector<1x64xf32>
    %138 = vector.broadcast %137 : vector<1x64xf32> to vector<8x64xf32>
    %139 = arith.addf %136, %138 : vector<8x64xf32>
    %cst_56 = arith.constant 0.000000e+00 : f32
    %140 = vector.broadcast %cst_56 : f32 to vector<8x64xf32>
    %141 = arith.maximumf %139, %140 : vector<8x64xf32>
    %142 = arith.truncf %141 : vector<8x64xf32> to vector<8x64xbf16>
    %c0_57 = arith.constant 0 : index
    %c0_58 = arith.constant 0 : index
    %143 = vector.load %arg12[%c0_57, %c0_58] : memref<64x32xbf16, #tpu.memory_space<vmem>>, vector<64x32xbf16>
    %cst_59 = arith.constant dense<0.000000e+00> : vector<8x32xf32>
    %144 = tpu.matmul %142, %143, %cst_59 {dimension_numbers = #tpu.dot_dimension_numbers<[1], [0], [0], [1], [0, 0, 1, 1], [], []>} : vector<8x64xbf16>, vector<64x32xbf16>, vector<8x32xf32> -> vector<8x32xf32>
    %c0_60 = arith.constant 0 : index
    %c0_61 = arith.constant 0 : index
    %145 = vector.load %arg13[%c0_60, %c0_61] : memref<1x32xf32, #tpu.memory_space<vmem>>, vector<1x32xf32>
    %146 = vector.broadcast %145 : vector<1x32xf32> to vector<8x32xf32>
    %147 = arith.addf %144, %146 : vector<8x32xf32>
    %148 = arith.addf %147, %133 : vector<8x32xf32>
    %c0_62 = arith.constant 0 : index
    %c0_63 = arith.constant 0 : index
    %149 = vector.load %arg14[%c0_62, %c0_63] : memref<1x32xf32, #tpu.memory_space<vmem>>, vector<1x32xf32>
    %c0_64 = arith.constant 0 : index
    %c0_65 = arith.constant 0 : index
    %150 = vector.load %arg15[%c0_64, %c0_65] : memref<1x32xf32, #tpu.memory_space<vmem>>, vector<1x32xf32>
    %cst_66 = arith.constant dense<0.000000e+00> : vector<8xf32>
    %151 = vector.multi_reduction <add>, %148, %cst_66 [1] : vector<8x32xf32> to vector<8xf32>
    %152 = vector.shape_cast %151 : vector<8xf32> to vector<8x1xf32>
    %cst_67 = arith.constant 3.200000e+01 : f32
    %153 = vector.broadcast %cst_67 : f32 to vector<8x1xf32>
    %154 = arith.divf %152, %153 : vector<8x1xf32>
    %155 = vector.broadcast %154 : vector<8x1xf32> to vector<8x32xf32>
    %156 = arith.subf %148, %155 : vector<8x32xf32>
    %157 = arith.mulf %156, %156 : vector<8x32xf32>
    %cst_68 = arith.constant dense<0.000000e+00> : vector<8xf32>
    %158 = vector.multi_reduction <add>, %157, %cst_68 [1] : vector<8x32xf32> to vector<8xf32>
    %159 = vector.shape_cast %158 : vector<8xf32> to vector<8x1xf32>
    %cst_69 = arith.constant 3.200000e+01 : f32
    %160 = vector.broadcast %cst_69 : f32 to vector<8x1xf32>
    %161 = arith.divf %159, %160 : vector<8x1xf32>
    %162 = vector.broadcast %154 : vector<8x1xf32> to vector<8x32xf32>
    %163 = arith.subf %148, %162 : vector<8x32xf32>
    %cst_70 = arith.constant 9.99999974E-6 : f32
    %164 = vector.broadcast %cst_70 : f32 to vector<8x1xf32>
    %165 = arith.addf %161, %164 : vector<8x1xf32>
    %166 = math.rsqrt %165 : vector<8x1xf32>
    %167 = vector.broadcast %166 : vector<8x1xf32> to vector<8x32xf32>
    %168 = arith.mulf %163, %167 : vector<8x32xf32>
    %169 = vector.broadcast %149 : vector<1x32xf32> to vector<8x32xf32>
    %170 = arith.mulf %168, %169 : vector<8x32xf32>
    %171 = vector.broadcast %150 : vector<1x32xf32> to vector<8x32xf32>
    %172 = arith.addf %170, %171 : vector<8x32xf32>
    %173 = arith.truncf %172 : vector<8x32xf32> to vector<8x32xbf16>
    %c0_71 = arith.constant 0 : index
    %c0_72 = arith.constant 0 : index
    %c0_73 = arith.constant 0 : index
    %174 = vector.load %arg16[%c0_71, %c0_72, %c0_73] : memref<1x8x32xbf16, #tpu.memory_space<vmem>>, vector<1x8x32xbf16>
    %175 = vector.shape_cast %174 : vector<1x8x32xbf16> to vector<8x32xbf16>
    %176 = vector.shape_cast %173 : vector<8x32xbf16> to vector<1x8x32xbf16>
    tpu.vector_store %arg16[%c0_71, %c0_72, %c0_73], %176 {strides = array<i32>} : memref<1x8x32xbf16, #tpu.memory_space<vmem>>, vector<1x8x32xbf16>,
    return
  }
  func.func @transform_0(%arg0: i32) -> (i32, i32, i32) {
    %c0_i32 = arith.constant 0 : i32
    %c0_i32_0 = arith.constant 0 : i32
    %c0_i32_1 = arith.constant 0 : i32
    return %arg0, %c0_i32, %c0_i32_0 : i32, i32, i32
  }
  func.func @transform_1(%arg0: i32) -> (i32, i32, i32) {
    %c0_i32 = arith.constant 0 : i32
    %c0_i32_0 = arith.constant 0 : i32
    %c0_i32_1 = arith.constant 0 : i32
    return %arg0, %c0_i32, %c0_i32_0 : i32, i32, i32
  }
  func.func @transform_2(%arg0: i32) -> (i32, i32) {
    %c0_i32 = arith.constant 0 : i32
    %c0_i32_0 = arith.constant 0 : i32
    %c0_i32_1 = arith.constant 0 : i32
    return %c0_i32, %c0_i32_0 : i32, i32
  }
  func.func @transform_3(%arg0: i32) -> (i32, i32) {
    %c0_i32 = arith.constant 0 : i32
    %c0_i32_0 = arith.constant 0 : i32
    %c0_i32_1 = arith.constant 0 : i32
    return %c0_i32, %c0_i32_0 : i32, i32
  }
  func.func @transform_4(%arg0: i32) -> (i32, i32) {
    %c0_i32 = arith.constant 0 : i32
    %c0_i32_0 = arith.constant 0 : i32
    %c0_i32_1 = arith.constant 0 : i32
    return %c0_i32, %c0_i32_0 : i32, i32
  }
  func.func @transform_5(%arg0: i32) -> (i32, i32, i32) {
    %c0_i32 = arith.constant 0 : i32
    %c0_i32_0 = arith.constant 0 : i32
    %c0_i32_1 = arith.constant 0 : i32
    %c0_i32_2 = arith.constant 0 : i32
    return %c0_i32, %c0_i32_0, %c0_i32_1 : i32, i32, i32
  }
  func.func @transform_6(%arg0: i32) -> (i32, i32) {
    %c0_i32 = arith.constant 0 : i32
    %c0_i32_0 = arith.constant 0 : i32
    %c0_i32_1 = arith.constant 0 : i32
    return %c0_i32, %c0_i32_0 : i32, i32
  }
  func.func @transform_7(%arg0: i32) -> (i32, i32) {
    %c0_i32 = arith.constant 0 : i32
    %c0_i32_0 = arith.constant 0 : i32
    %c0_i32_1 = arith.constant 0 : i32
    return %c0_i32, %c0_i32_0 : i32, i32
  }
  func.func @transform_8(%arg0: i32) -> (i32, i32) {
    %c0_i32 = arith.constant 0 : i32
    %c0_i32_0 = arith.constant 0 : i32
    %c0_i32_1 = arith.constant 0 : i32
    return %c0_i32, %c0_i32_0 : i32, i32
  }
  func.func @transform_9(%arg0: i32) -> (i32, i32) {
    %c0_i32 = arith.constant 0 : i32
    %c0_i32_0 = arith.constant 0 : i32
    %c0_i32_1 = arith.constant 0 : i32
    return %c0_i32, %c0_i32_0 : i32, i32
  }
  func.func @transform_10(%arg0: i32) -> (i32, i32) {
    %c0_i32 = arith.constant 0 : i32
    %c0_i32_0 = arith.constant 0 : i32
    %c0_i32_1 = arith.constant 0 : i32
    return %c0_i32, %c0_i32_0 : i32, i32
  }
  func.func @transform_11(%arg0: i32) -> (i32, i32) {
    %c0_i32 = arith.constant 0 : i32
    %c0_i32_0 = arith.constant 0 : i32
    %c0_i32_1 = arith.constant 0 : i32
    return %c0_i32, %c0_i32_0 : i32, i32
  }
  func.func @transform_12(%arg0: i32) -> (i32, i32) {
    %c0_i32 = arith.constant 0 : i32
    %c0_i32_0 = arith.constant 0 : i32
    %c0_i32_1 = arith.constant 0 : i32
    return %c0_i32, %c0_i32_0 : i32, i32
  }
  func.func @transform_13(%arg0: i32) -> (i32, i32) {
    %c0_i32 = arith.constant 0 : i32
    %c0_i32_0 = arith.constant 0 : i32
    %c0_i32_1 = arith.constant 0 : i32
    return %c0_i32, %c0_i32_0 : i32, i32
  }
  func.func @transform_14(%arg0: i32) -> (i32, i32) {
    %c0_i32 = arith.constant 0 : i32
    %c0_i32_0 = arith.constant 0 : i32
    %c0_i32_1 = arith.constant 0 : i32
    return %c0_i32, %c0_i32_0 : i32, i32
  }
  func.func @transform_15(%arg0: i32) -> (i32, i32, i32) {
    %c0_i32 = arith.constant 0 : i32
    %c0_i32_0 = arith.constant 0 : i32
    %c0_i32_1 = arith.constant 0 : i32
    return %arg0, %c0_i32, %c0_i32_0 : i32, i32, i32
  }
}

module attributes {stable_mosaic.version = 11 : i64} {
  func.func @dec_cross_ffn_block_kernel(%arg0: i32, %arg1: memref<1x6x32xbf16, #tpu.memory_space<vmem>>, %arg2: memref<1x8x32xbf16, #tpu.memory_space<vmem>>, %arg3: memref<1x1x8xf32, #tpu.memory_space<vmem>>, %arg4: memref<32x32xbf16, #tpu.memory_space<vmem>>, %arg5: memref<1x32xf32, #tpu.memory_space<vmem>>, %arg6: memref<32x64xbf16, #tpu.memory_space<vmem>>, %arg7: memref<1x64xf32, #tpu.memory_space<vmem>>, %arg8: memref<4x8x32xbf16, #tpu.memory_space<vmem>>, %arg9: memref<1x32xf32, #tpu.memory_space<vmem>>, %arg10: memref<1x32xf32, #tpu.memory_space<vmem>>, %arg11: memref<1x32xf32, #tpu.memory_space<vmem>>, %arg12: memref<32x64xbf16, #tpu.memory_space<vmem>>, %arg13: memref<1x64xf32, #tpu.memory_space<vmem>>, %arg14: memref<64x32xbf16, #tpu.memory_space<vmem>>, %arg15: memref<1x32xf32, #tpu.memory_space<vmem>>, %arg16: memref<1x32xf32, #tpu.memory_space<vmem>>, %arg17: memref<1x32xf32, #tpu.memory_space<vmem>>, %arg18: memref<1x6x32xbf16, #tpu.memory_space<vmem>>) attributes {dimension_semantics = [#tpu.dimension_semantics<parallel>], iteration_bounds = array<i64: 2>, scalar_prefetch = 0 : i64, scratch_operands = 0 : i64, tpu.core_type = #tpu.core_type<tc>, window_params = [{transform_indices = @transform_0, window_bounds = array<i64: 1, 6, 32>}, {transform_indices = @transform_1, window_bounds = array<i64: 1, 8, 32>}, {transform_indices = @transform_2, window_bounds = array<i64: 1, 1, 8>}, {pipeline_mode = #tpu.pipeline_mode<synchronous>, transform_indices = @transform_3, window_bounds = array<i64: 32, 32>}, {pipeline_mode = #tpu.pipeline_mode<synchronous>, transform_indices = @transform_4, window_bounds = array<i64: 1, 32>}, {pipeline_mode = #tpu.pipeline_mode<synchronous>, transform_indices = @transform_5, window_bounds = array<i64: 32, 64>}, {pipeline_mode = #tpu.pipeline_mode<synchronous>, transform_indices = @transform_6, window_bounds = array<i64: 1, 64>}, {pipeline_mode = #tpu.pipeline_mode<synchronous>, transform_indices = @transform_7, window_bounds = array<i64: 4, 8, 32>}, {pipeline_mode = #tpu.pipeline_mode<synchronous>, transform_indices = @transform_8, window_bounds = array<i64: 1, 32>}, {pipeline_mode = #tpu.pipeline_mode<synchronous>, transform_indices = @transform_9, window_bounds = array<i64: 1, 32>}, {pipeline_mode = #tpu.pipeline_mode<synchronous>, transform_indices = @transform_10, window_bounds = array<i64: 1, 32>}, {pipeline_mode = #tpu.pipeline_mode<synchronous>, transform_indices = @transform_11, window_bounds = array<i64: 32, 64>}, {pipeline_mode = #tpu.pipeline_mode<synchronous>, transform_indices = @transform_12, window_bounds = array<i64: 1, 64>}, {pipeline_mode = #tpu.pipeline_mode<synchronous>, transform_indices = @transform_13, window_bounds = array<i64: 64, 32>}, {pipeline_mode = #tpu.pipeline_mode<synchronous>, transform_indices = @transform_14, window_bounds = array<i64: 1, 32>}, {pipeline_mode = #tpu.pipeline_mode<synchronous>, transform_indices = @transform_15, window_bounds = array<i64: 1, 32>}, {pipeline_mode = #tpu.pipeline_mode<synchronous>, transform_indices = @transform_16, window_bounds = array<i64: 1, 32>}, {transform_indices = @transform_17, window_bounds = array<i64: 1, 6, 32>}]} {
    %c0 = arith.constant 0 : index
    %c0_0 = arith.constant 0 : index
    %c0_1 = arith.constant 0 : index
    %0 = vector.load %arg1[%c0, %c0_0, %c0_1] : memref<1x6x32xbf16, #tpu.memory_space<vmem>>, vector<1x6x32xbf16>
    %1 = vector.shape_cast %0 : vector<1x6x32xbf16> to vector<6x32xbf16>
    %c0_2 = arith.constant 0 : index
    %c0_3 = arith.constant 0 : index
    %c0_4 = arith.constant 0 : index
    %2 = vector.load %arg2[%c0_2, %c0_3, %c0_4] : memref<1x8x32xbf16, #tpu.memory_space<vmem>>, vector<1x8x32xbf16>
    %3 = vector.shape_cast %2 : vector<1x8x32xbf16> to vector<8x32xbf16>
    %4 = arith.extf %1 : vector<6x32xbf16> to vector<6x32xf32>
    %c0_5 = arith.constant 0 : index
    %c0_6 = arith.constant 0 : index
    %5 = vector.load %arg4[%c0_5, %c0_6] : memref<32x32xbf16, #tpu.memory_space<vmem>>, vector<32x32xbf16>
    %cst = arith.constant dense<0.000000e+00> : vector<6x32xf32>
    %6 = tpu.matmul %1, %5, %cst {dimension_numbers = #tpu.dot_dimension_numbers<[1], [0], [0], [1], [0, 0, 1, 1], [], []>} : vector<6x32xbf16>, vector<32x32xbf16>, vector<6x32xf32> -> vector<6x32xf32>
    %c0_7 = arith.constant 0 : index
    %c0_8 = arith.constant 0 : index
    %7 = vector.load %arg5[%c0_7, %c0_8] : memref<1x32xf32, #tpu.memory_space<vmem>>, vector<1x32xf32>
    %8 = vector.broadcast %7 : vector<1x32xf32> to vector<6x32xf32>
    %9 = arith.addf %6, %8 : vector<6x32xf32>
    %c0_9 = arith.constant 0 : index
    %c0_10 = arith.constant 0 : index
    %10 = vector.load %arg6[%c0_9, %c0_10] : memref<32x64xbf16, #tpu.memory_space<vmem>>, vector<32x64xbf16>
    %cst_11 = arith.constant dense<0.000000e+00> : vector<8x64xf32>
    %11 = tpu.matmul %3, %10, %cst_11 {dimension_numbers = #tpu.dot_dimension_numbers<[1], [0], [0], [1], [0, 0, 1, 1], [], []>} : vector<8x32xbf16>, vector<32x64xbf16>, vector<8x64xf32> -> vector<8x64xf32>
    %c0_12 = arith.constant 0 : index
    %c0_13 = arith.constant 0 : index
    %12 = vector.load %arg7[%c0_12, %c0_13] : memref<1x64xf32, #tpu.memory_space<vmem>>, vector<1x64xf32>
    %13 = vector.broadcast %12 : vector<1x64xf32> to vector<8x64xf32>
    %14 = arith.addf %11, %13 : vector<8x64xf32>
    %c0_14 = arith.constant 0 : index
    %c0_15 = arith.constant 0 : index
    %c0_16 = arith.constant 0 : index
    %15 = vector.load %arg3[%c0_14, %c0_15, %c0_16] : memref<1x1x8xf32, #tpu.memory_space<vmem>>, vector<1x1x8xf32>
    %16 = vector.shape_cast %15 : vector<1x1x8xf32> to vector<1x8xf32>
    %17 = vector.extract_strided_slice %14 {offsets = [0, 0], sizes = [8, 32], strides = [1, 1]} : vector<8x64xf32> to vector<8x32xf32>
    %18 = vector.extract_strided_slice %14 {offsets = [0, 32], sizes = [8, 32], strides = [1, 1]} : vector<8x64xf32> to vector<8x32xf32>
    %19 = arith.truncf %9 : vector<6x32xf32> to vector<6x32xbf16>
    %20 = arith.truncf %17 : vector<8x32xf32> to vector<8x32xbf16>
    %21 = arith.truncf %18 : vector<8x32xf32> to vector<8x32xbf16>
    %22 = vector.extract_strided_slice %19 {offsets = [0, 0], sizes = [6, 8], strides = [1, 1]} : vector<6x32xbf16> to vector<6x8xbf16>
    %23 = vector.extract_strided_slice %20 {offsets = [0, 0], sizes = [8, 8], strides = [1, 1]} : vector<8x32xbf16> to vector<8x8xbf16>
    %cst_17 = arith.constant dense<0.000000e+00> : vector<6x8xf32>
    %24 = tpu.matmul %22, %23, %cst_17 {dimension_numbers = #tpu.dot_dimension_numbers<[1], [1], [0], [0], [0, 0, 1, 0], [], []>} : vector<6x8xbf16>, vector<8x8xbf16>, vector<6x8xf32> -> vector<6x8xf32>
    %25 = vector.broadcast %16 : vector<1x8xf32> to vector<6x8xf32>
    %26 = arith.addf %24, %25 : vector<6x8xf32>
    %cst_18 = arith.constant dense<0xFF800000> : vector<6xf32>
    %27 = vector.multi_reduction <maximumf>, %26, %cst_18 [1] : vector<6x8xf32> to vector<6xf32>
    %28 = vector.shape_cast %27 : vector<6xf32> to vector<6x1xf32>
    %29 = vector.broadcast %28 : vector<6x1xf32> to vector<6x8xf32>
    %30 = arith.subf %26, %29 : vector<6x8xf32>
    %31 = math.exp %30 : vector<6x8xf32>
    %cst_19 = arith.constant dense<0.000000e+00> : vector<6xf32>
    %32 = vector.multi_reduction <add>, %31, %cst_19 [1] : vector<6x8xf32> to vector<6xf32>
    %33 = vector.shape_cast %32 : vector<6xf32> to vector<6x1xf32>
    %34 = tpu.reciprocal %33 {approx = true} : vector<6x1xf32> -> vector<6x1xf32>
    %35 = vector.broadcast %34 : vector<6x1xf32> to vector<6x8xf32>
    %36 = arith.mulf %31, %35 : vector<6x8xf32>
    %37 = arith.truncf %36 : vector<6x8xf32> to vector<6x8xbf16>
    %38 = vector.extract_strided_slice %21 {offsets = [0, 0], sizes = [8, 8], strides = [1, 1]} : vector<8x32xbf16> to vector<8x8xbf16>
    %cst_20 = arith.constant dense<0.000000e+00> : vector<6x8xf32>
    %39 = tpu.matmul %37, %38, %cst_20 {dimension_numbers = #tpu.dot_dimension_numbers<[1], [0], [0], [1], [0, 0, 1, 1], [], []>} : vector<6x8xbf16>, vector<8x8xbf16>, vector<6x8xf32> -> vector<6x8xf32>
    %40 = arith.truncf %39 : vector<6x8xf32> to vector<6x8xbf16>
    %c0_21 = arith.constant 0 : index
    %c0_22 = arith.constant 0 : index
    %c0_23 = arith.constant 0 : index
    %41 = vector.load %arg8[%c0_21, %c0_22, %c0_23] : memref<4x8x32xbf16, #tpu.memory_space<vmem>>, vector<1x8x32xbf16>
    %42 = vector.shape_cast %41 : vector<1x8x32xbf16> to vector<8x32xbf16>
    %cst_24 = arith.constant dense<0.000000e+00> : vector<6x32xf32>
    %43 = tpu.matmul %40, %42, %cst_24 {dimension_numbers = #tpu.dot_dimension_numbers<[1], [0], [0], [1], [0, 0, 1, 1], [], []>} : vector<6x8xbf16>, vector<8x32xbf16>, vector<6x32xf32> -> vector<6x32xf32>
    %44 = vector.extract_strided_slice %19 {offsets = [0, 8], sizes = [6, 8], strides = [1, 1]} : vector<6x32xbf16> to vector<6x8xbf16>
    %45 = vector.extract_strided_slice %20 {offsets = [0, 8], sizes = [8, 8], strides = [1, 1]} : vector<8x32xbf16> to vector<8x8xbf16>
    %cst_25 = arith.constant dense<0.000000e+00> : vector<6x8xf32>
    %46 = tpu.matmul %44, %45, %cst_25 {dimension_numbers = #tpu.dot_dimension_numbers<[1], [1], [0], [0], [0, 0, 1, 0], [], []>} : vector<6x8xbf16>, vector<8x8xbf16>, vector<6x8xf32> -> vector<6x8xf32>
    %47 = vector.broadcast %16 : vector<1x8xf32> to vector<6x8xf32>
    %48 = arith.addf %46, %47 : vector<6x8xf32>
    %cst_26 = arith.constant dense<0xFF800000> : vector<6xf32>
    %49 = vector.multi_reduction <maximumf>, %48, %cst_26 [1] : vector<6x8xf32> to vector<6xf32>
    %50 = vector.shape_cast %49 : vector<6xf32> to vector<6x1xf32>
    %51 = vector.broadcast %50 : vector<6x1xf32> to vector<6x8xf32>
    %52 = arith.subf %48, %51 : vector<6x8xf32>
    %53 = math.exp %52 : vector<6x8xf32>
    %cst_27 = arith.constant dense<0.000000e+00> : vector<6xf32>
    %54 = vector.multi_reduction <add>, %53, %cst_27 [1] : vector<6x8xf32> to vector<6xf32>
    %55 = vector.shape_cast %54 : vector<6xf32> to vector<6x1xf32>
    %56 = tpu.reciprocal %55 {approx = true} : vector<6x1xf32> -> vector<6x1xf32>
    %57 = vector.broadcast %56 : vector<6x1xf32> to vector<6x8xf32>
    %58 = arith.mulf %53, %57 : vector<6x8xf32>
    %59 = arith.truncf %58 : vector<6x8xf32> to vector<6x8xbf16>
    %60 = vector.extract_strided_slice %21 {offsets = [0, 8], sizes = [8, 8], strides = [1, 1]} : vector<8x32xbf16> to vector<8x8xbf16>
    %cst_28 = arith.constant dense<0.000000e+00> : vector<6x8xf32>
    %61 = tpu.matmul %59, %60, %cst_28 {dimension_numbers = #tpu.dot_dimension_numbers<[1], [0], [0], [1], [0, 0, 1, 1], [], []>} : vector<6x8xbf16>, vector<8x8xbf16>, vector<6x8xf32> -> vector<6x8xf32>
    %62 = arith.truncf %61 : vector<6x8xf32> to vector<6x8xbf16>
    %c1 = arith.constant 1 : index
    %c0_29 = arith.constant 0 : index
    %c0_30 = arith.constant 0 : index
    %63 = vector.load %arg8[%c1, %c0_29, %c0_30] : memref<4x8x32xbf16, #tpu.memory_space<vmem>>, vector<1x8x32xbf16>
    %64 = vector.shape_cast %63 : vector<1x8x32xbf16> to vector<8x32xbf16>
    %cst_31 = arith.constant dense<0.000000e+00> : vector<6x32xf32>
    %65 = tpu.matmul %62, %64, %cst_31 {dimension_numbers = #tpu.dot_dimension_numbers<[1], [0], [0], [1], [0, 0, 1, 1], [], []>} : vector<6x8xbf16>, vector<8x32xbf16>, vector<6x32xf32> -> vector<6x32xf32>
    %66 = arith.addf %43, %65 : vector<6x32xf32>
    %67 = vector.extract_strided_slice %19 {offsets = [0, 16], sizes = [6, 8], strides = [1, 1]} : vector<6x32xbf16> to vector<6x8xbf16>
    %68 = vector.extract_strided_slice %20 {offsets = [0, 16], sizes = [8, 8], strides = [1, 1]} : vector<8x32xbf16> to vector<8x8xbf16>
    %cst_32 = arith.constant dense<0.000000e+00> : vector<6x8xf32>
    %69 = tpu.matmul %67, %68, %cst_32 {dimension_numbers = #tpu.dot_dimension_numbers<[1], [1], [0], [0], [0, 0, 1, 0], [], []>} : vector<6x8xbf16>, vector<8x8xbf16>, vector<6x8xf32> -> vector<6x8xf32>
    %70 = vector.broadcast %16 : vector<1x8xf32> to vector<6x8xf32>
    %71 = arith.addf %69, %70 : vector<6x8xf32>
    %cst_33 = arith.constant dense<0xFF800000> : vector<6xf32>
    %72 = vector.multi_reduction <maximumf>, %71, %cst_33 [1] : vector<6x8xf32> to vector<6xf32>
    %73 = vector.shape_cast %72 : vector<6xf32> to vector<6x1xf32>
    %74 = vector.broadcast %73 : vector<6x1xf32> to vector<6x8xf32>
    %75 = arith.subf %71, %74 : vector<6x8xf32>
    %76 = math.exp %75 : vector<6x8xf32>
    %cst_34 = arith.constant dense<0.000000e+00> : vector<6xf32>
    %77 = vector.multi_reduction <add>, %76, %cst_34 [1] : vector<6x8xf32> to vector<6xf32>
    %78 = vector.shape_cast %77 : vector<6xf32> to vector<6x1xf32>
    %79 = tpu.reciprocal %78 {approx = true} : vector<6x1xf32> -> vector<6x1xf32>
    %80 = vector.broadcast %79 : vector<6x1xf32> to vector<6x8xf32>
    %81 = arith.mulf %76, %80 : vector<6x8xf32>
    %82 = arith.truncf %81 : vector<6x8xf32> to vector<6x8xbf16>
    %83 = vector.extract_strided_slice %21 {offsets = [0, 16], sizes = [8, 8], strides = [1, 1]} : vector<8x32xbf16> to vector<8x8xbf16>
    %cst_35 = arith.constant dense<0.000000e+00> : vector<6x8xf32>
    %84 = tpu.matmul %82, %83, %cst_35 {dimension_numbers = #tpu.dot_dimension_numbers<[1], [0], [0], [1], [0, 0, 1, 1], [], []>} : vector<6x8xbf16>, vector<8x8xbf16>, vector<6x8xf32> -> vector<6x8xf32>
    %85 = arith.truncf %84 : vector<6x8xf32> to vector<6x8xbf16>
    %c2 = arith.constant 2 : index
    %c0_36 = arith.constant 0 : index
    %c0_37 = arith.constant 0 : index
    %86 = vector.load %arg8[%c2, %c0_36, %c0_37] : memref<4x8x32xbf16, #tpu.memory_space<vmem>>, vector<1x8x32xbf16>
    %87 = vector.shape_cast %86 : vector<1x8x32xbf16> to vector<8x32xbf16>
    %cst_38 = arith.constant dense<0.000000e+00> : vector<6x32xf32>
    %88 = tpu.matmul %85, %87, %cst_38 {dimension_numbers = #tpu.dot_dimension_numbers<[1], [0], [0], [1], [0, 0, 1, 1], [], []>} : vector<6x8xbf16>, vector<8x32xbf16>, vector<6x32xf32> -> vector<6x32xf32>
    %89 = arith.addf %66, %88 : vector<6x32xf32>
    %90 = vector.extract_strided_slice %19 {offsets = [0, 24], sizes = [6, 8], strides = [1, 1]} : vector<6x32xbf16> to vector<6x8xbf16>
    %91 = vector.extract_strided_slice %20 {offsets = [0, 24], sizes = [8, 8], strides = [1, 1]} : vector<8x32xbf16> to vector<8x8xbf16>
    %cst_39 = arith.constant dense<0.000000e+00> : vector<6x8xf32>
    %92 = tpu.matmul %90, %91, %cst_39 {dimension_numbers = #tpu.dot_dimension_numbers<[1], [1], [0], [0], [0, 0, 1, 0], [], []>} : vector<6x8xbf16>, vector<8x8xbf16>, vector<6x8xf32> -> vector<6x8xf32>
    %93 = vector.broadcast %16 : vector<1x8xf32> to vector<6x8xf32>
    %94 = arith.addf %92, %93 : vector<6x8xf32>
    %cst_40 = arith.constant dense<0xFF800000> : vector<6xf32>
    %95 = vector.multi_reduction <maximumf>, %94, %cst_40 [1] : vector<6x8xf32> to vector<6xf32>
    %96 = vector.shape_cast %95 : vector<6xf32> to vector<6x1xf32>
    %97 = vector.broadcast %96 : vector<6x1xf32> to vector<6x8xf32>
    %98 = arith.subf %94, %97 : vector<6x8xf32>
    %99 = math.exp %98 : vector<6x8xf32>
    %cst_41 = arith.constant dense<0.000000e+00> : vector<6xf32>
    %100 = vector.multi_reduction <add>, %99, %cst_41 [1] : vector<6x8xf32> to vector<6xf32>
    %101 = vector.shape_cast %100 : vector<6xf32> to vector<6x1xf32>
    %102 = tpu.reciprocal %101 {approx = true} : vector<6x1xf32> -> vector<6x1xf32>
    %103 = vector.broadcast %102 : vector<6x1xf32> to vector<6x8xf32>
    %104 = arith.mulf %99, %103 : vector<6x8xf32>
    %105 = arith.truncf %104 : vector<6x8xf32> to vector<6x8xbf16>
    %106 = vector.extract_strided_slice %21 {offsets = [0, 24], sizes = [8, 8], strides = [1, 1]} : vector<8x32xbf16> to vector<8x8xbf16>
    %cst_42 = arith.constant dense<0.000000e+00> : vector<6x8xf32>
    %107 = tpu.matmul %105, %106, %cst_42 {dimension_numbers = #tpu.dot_dimension_numbers<[1], [0], [0], [1], [0, 0, 1, 1], [], []>} : vector<6x8xbf16>, vector<8x8xbf16>, vector<6x8xf32> -> vector<6x8xf32>
    %108 = arith.truncf %107 : vector<6x8xf32> to vector<6x8xbf16>
    %c3 = arith.constant 3 : index
    %c0_43 = arith.constant 0 : index
    %c0_44 = arith.constant 0 : index
    %109 = vector.load %arg8[%c3, %c0_43, %c0_44] : memref<4x8x32xbf16, #tpu.memory_space<vmem>>, vector<1x8x32xbf16>
    %110 = vector.shape_cast %109 : vector<1x8x32xbf16> to vector<8x32xbf16>
    %cst_45 = arith.constant dense<0.000000e+00> : vector<6x32xf32>
    %111 = tpu.matmul %108, %110, %cst_45 {dimension_numbers = #tpu.dot_dimension_numbers<[1], [0], [0], [1], [0, 0, 1, 1], [], []>} : vector<6x8xbf16>, vector<8x32xbf16>, vector<6x32xf32> -> vector<6x32xf32>
    %112 = arith.addf %89, %111 : vector<6x32xf32>
    %c0_46 = arith.constant 0 : index
    %c0_47 = arith.constant 0 : index
    %113 = vector.load %arg9[%c0_46, %c0_47] : memref<1x32xf32, #tpu.memory_space<vmem>>, vector<1x32xf32>
    %114 = vector.broadcast %113 : vector<1x32xf32> to vector<6x32xf32>
    %115 = arith.addf %112, %114 : vector<6x32xf32>
    %116 = arith.addf %115, %4 : vector<6x32xf32>
    %c0_48 = arith.constant 0 : index
    %c0_49 = arith.constant 0 : index
    %117 = vector.load %arg10[%c0_48, %c0_49] : memref<1x32xf32, #tpu.memory_space<vmem>>, vector<1x32xf32>
    %c0_50 = arith.constant 0 : index
    %c0_51 = arith.constant 0 : index
    %118 = vector.load %arg11[%c0_50, %c0_51] : memref<1x32xf32, #tpu.memory_space<vmem>>, vector<1x32xf32>
    %cst_52 = arith.constant dense<0.000000e+00> : vector<6xf32>
    %119 = vector.multi_reduction <add>, %116, %cst_52 [1] : vector<6x32xf32> to vector<6xf32>
    %120 = vector.shape_cast %119 : vector<6xf32> to vector<6x1xf32>
    %cst_53 = arith.constant 3.200000e+01 : f32
    %121 = vector.broadcast %cst_53 : f32 to vector<6x1xf32>
    %122 = arith.divf %120, %121 : vector<6x1xf32>
    %123 = vector.broadcast %122 : vector<6x1xf32> to vector<6x32xf32>
    %124 = arith.subf %116, %123 : vector<6x32xf32>
    %125 = arith.mulf %124, %124 : vector<6x32xf32>
    %cst_54 = arith.constant dense<0.000000e+00> : vector<6xf32>
    %126 = vector.multi_reduction <add>, %125, %cst_54 [1] : vector<6x32xf32> to vector<6xf32>
    %127 = vector.shape_cast %126 : vector<6xf32> to vector<6x1xf32>
    %cst_55 = arith.constant 3.200000e+01 : f32
    %128 = vector.broadcast %cst_55 : f32 to vector<6x1xf32>
    %129 = arith.divf %127, %128 : vector<6x1xf32>
    %130 = vector.broadcast %122 : vector<6x1xf32> to vector<6x32xf32>
    %131 = arith.subf %116, %130 : vector<6x32xf32>
    %cst_56 = arith.constant 9.99999974E-6 : f32
    %132 = vector.broadcast %cst_56 : f32 to vector<6x1xf32>
    %133 = arith.addf %129, %132 : vector<6x1xf32>
    %134 = math.rsqrt %133 : vector<6x1xf32>
    %135 = vector.broadcast %134 : vector<6x1xf32> to vector<6x32xf32>
    %136 = arith.mulf %131, %135 : vector<6x32xf32>
    %137 = vector.broadcast %117 : vector<1x32xf32> to vector<6x32xf32>
    %138 = arith.mulf %136, %137 : vector<6x32xf32>
    %139 = vector.broadcast %118 : vector<1x32xf32> to vector<6x32xf32>
    %140 = arith.addf %138, %139 : vector<6x32xf32>
    %141 = arith.truncf %140 : vector<6x32xf32> to vector<6x32xbf16>
    %c0_57 = arith.constant 0 : index
    %c0_58 = arith.constant 0 : index
    %142 = vector.load %arg12[%c0_57, %c0_58] : memref<32x64xbf16, #tpu.memory_space<vmem>>, vector<32x64xbf16>
    %cst_59 = arith.constant dense<0.000000e+00> : vector<6x64xf32>
    %143 = tpu.matmul %141, %142, %cst_59 {dimension_numbers = #tpu.dot_dimension_numbers<[1], [0], [0], [1], [0, 0, 1, 1], [], []>} : vector<6x32xbf16>, vector<32x64xbf16>, vector<6x64xf32> -> vector<6x64xf32>
    %c0_60 = arith.constant 0 : index
    %c0_61 = arith.constant 0 : index
    %144 = vector.load %arg13[%c0_60, %c0_61] : memref<1x64xf32, #tpu.memory_space<vmem>>, vector<1x64xf32>
    %145 = vector.broadcast %144 : vector<1x64xf32> to vector<6x64xf32>
    %146 = arith.addf %143, %145 : vector<6x64xf32>
    %cst_62 = arith.constant 0.000000e+00 : f32
    %147 = vector.broadcast %cst_62 : f32 to vector<6x64xf32>
    %148 = arith.maximumf %146, %147 : vector<6x64xf32>
    %149 = arith.truncf %148 : vector<6x64xf32> to vector<6x64xbf16>
    %c0_63 = arith.constant 0 : index
    %c0_64 = arith.constant 0 : index
    %150 = vector.load %arg14[%c0_63, %c0_64] : memref<64x32xbf16, #tpu.memory_space<vmem>>, vector<64x32xbf16>
    %cst_65 = arith.constant dense<0.000000e+00> : vector<6x32xf32>
    %151 = tpu.matmul %149, %150, %cst_65 {dimension_numbers = #tpu.dot_dimension_numbers<[1], [0], [0], [1], [0, 0, 1, 1], [], []>} : vector<6x64xbf16>, vector<64x32xbf16>, vector<6x32xf32> -> vector<6x32xf32>
    %c0_66 = arith.constant 0 : index
    %c0_67 = arith.constant 0 : index
    %152 = vector.load %arg15[%c0_66, %c0_67] : memref<1x32xf32, #tpu.memory_space<vmem>>, vector<1x32xf32>
    %153 = vector.broadcast %152 : vector<1x32xf32> to vector<6x32xf32>
    %154 = arith.addf %151, %153 : vector<6x32xf32>
    %155 = arith.addf %154, %140 : vector<6x32xf32>
    %c0_68 = arith.constant 0 : index
    %c0_69 = arith.constant 0 : index
    %156 = vector.load %arg16[%c0_68, %c0_69] : memref<1x32xf32, #tpu.memory_space<vmem>>, vector<1x32xf32>
    %c0_70 = arith.constant 0 : index
    %c0_71 = arith.constant 0 : index
    %157 = vector.load %arg17[%c0_70, %c0_71] : memref<1x32xf32, #tpu.memory_space<vmem>>, vector<1x32xf32>
    %cst_72 = arith.constant dense<0.000000e+00> : vector<6xf32>
    %158 = vector.multi_reduction <add>, %155, %cst_72 [1] : vector<6x32xf32> to vector<6xf32>
    %159 = vector.shape_cast %158 : vector<6xf32> to vector<6x1xf32>
    %cst_73 = arith.constant 3.200000e+01 : f32
    %160 = vector.broadcast %cst_73 : f32 to vector<6x1xf32>
    %161 = arith.divf %159, %160 : vector<6x1xf32>
    %162 = vector.broadcast %161 : vector<6x1xf32> to vector<6x32xf32>
    %163 = arith.subf %155, %162 : vector<6x32xf32>
    %164 = arith.mulf %163, %163 : vector<6x32xf32>
    %cst_74 = arith.constant dense<0.000000e+00> : vector<6xf32>
    %165 = vector.multi_reduction <add>, %164, %cst_74 [1] : vector<6x32xf32> to vector<6xf32>
    %166 = vector.shape_cast %165 : vector<6xf32> to vector<6x1xf32>
    %cst_75 = arith.constant 3.200000e+01 : f32
    %167 = vector.broadcast %cst_75 : f32 to vector<6x1xf32>
    %168 = arith.divf %166, %167 : vector<6x1xf32>
    %169 = vector.broadcast %161 : vector<6x1xf32> to vector<6x32xf32>
    %170 = arith.subf %155, %169 : vector<6x32xf32>
    %cst_76 = arith.constant 9.99999974E-6 : f32
    %171 = vector.broadcast %cst_76 : f32 to vector<6x1xf32>
    %172 = arith.addf %168, %171 : vector<6x1xf32>
    %173 = math.rsqrt %172 : vector<6x1xf32>
    %174 = vector.broadcast %173 : vector<6x1xf32> to vector<6x32xf32>
    %175 = arith.mulf %170, %174 : vector<6x32xf32>
    %176 = vector.broadcast %156 : vector<1x32xf32> to vector<6x32xf32>
    %177 = arith.mulf %175, %176 : vector<6x32xf32>
    %178 = vector.broadcast %157 : vector<1x32xf32> to vector<6x32xf32>
    %179 = arith.addf %177, %178 : vector<6x32xf32>
    %180 = arith.truncf %179 : vector<6x32xf32> to vector<6x32xbf16>
    %c0_77 = arith.constant 0 : index
    %c0_78 = arith.constant 0 : index
    %c0_79 = arith.constant 0 : index
    %181 = vector.load %arg18[%c0_77, %c0_78, %c0_79] : memref<1x6x32xbf16, #tpu.memory_space<vmem>>, vector<1x6x32xbf16>
    %182 = vector.shape_cast %181 : vector<1x6x32xbf16> to vector<6x32xbf16>
    %183 = vector.shape_cast %180 : vector<6x32xbf16> to vector<1x6x32xbf16>
    tpu.vector_store %arg18[%c0_77, %c0_78, %c0_79], %183 {strides = array<i32>} : memref<1x6x32xbf16, #tpu.memory_space<vmem>>, vector<1x6x32xbf16>,
    return
  }
  func.func @transform_0(%arg0: i32) -> (i32, i32, i32) {
    %c0_i32 = arith.constant 0 : i32
    %c0_i32_0 = arith.constant 0 : i32
    %c0_i32_1 = arith.constant 0 : i32
    return %arg0, %c0_i32, %c0_i32_0 : i32, i32, i32
  }
  func.func @transform_1(%arg0: i32) -> (i32, i32, i32) {
    %c0_i32 = arith.constant 0 : i32
    %c0_i32_0 = arith.constant 0 : i32
    %c0_i32_1 = arith.constant 0 : i32
    return %arg0, %c0_i32, %c0_i32_0 : i32, i32, i32
  }
  func.func @transform_2(%arg0: i32) -> (i32, i32, i32) {
    %c0_i32 = arith.constant 0 : i32
    %c0_i32_0 = arith.constant 0 : i32
    %c0_i32_1 = arith.constant 0 : i32
    return %arg0, %c0_i32, %c0_i32_0 : i32, i32, i32
  }
  func.func @transform_3(%arg0: i32) -> (i32, i32) {
    %c0_i32 = arith.constant 0 : i32
    %c0_i32_0 = arith.constant 0 : i32
    %c0_i32_1 = arith.constant 0 : i32
    return %c0_i32, %c0_i32_0 : i32, i32
  }
  func.func @transform_4(%arg0: i32) -> (i32, i32) {
    %c0_i32 = arith.constant 0 : i32
    %c0_i32_0 = arith.constant 0 : i32
    %c0_i32_1 = arith.constant 0 : i32
    return %c0_i32, %c0_i32_0 : i32, i32
  }
  func.func @transform_5(%arg0: i32) -> (i32, i32) {
    %c0_i32 = arith.constant 0 : i32
    %c0_i32_0 = arith.constant 0 : i32
    %c0_i32_1 = arith.constant 0 : i32
    return %c0_i32, %c0_i32_0 : i32, i32
  }
  func.func @transform_6(%arg0: i32) -> (i32, i32) {
    %c0_i32 = arith.constant 0 : i32
    %c0_i32_0 = arith.constant 0 : i32
    %c0_i32_1 = arith.constant 0 : i32
    return %c0_i32, %c0_i32_0 : i32, i32
  }
  func.func @transform_7(%arg0: i32) -> (i32, i32, i32) {
    %c0_i32 = arith.constant 0 : i32
    %c0_i32_0 = arith.constant 0 : i32
    %c0_i32_1 = arith.constant 0 : i32
    %c0_i32_2 = arith.constant 0 : i32
    return %c0_i32, %c0_i32_0, %c0_i32_1 : i32, i32, i32
  }
  func.func @transform_8(%arg0: i32) -> (i32, i32) {
    %c0_i32 = arith.constant 0 : i32
    %c0_i32_0 = arith.constant 0 : i32
    %c0_i32_1 = arith.constant 0 : i32
    return %c0_i32, %c0_i32_0 : i32, i32
  }
  func.func @transform_9(%arg0: i32) -> (i32, i32) {
    %c0_i32 = arith.constant 0 : i32
    %c0_i32_0 = arith.constant 0 : i32
    %c0_i32_1 = arith.constant 0 : i32
    return %c0_i32, %c0_i32_0 : i32, i32
  }
  func.func @transform_10(%arg0: i32) -> (i32, i32) {
    %c0_i32 = arith.constant 0 : i32
    %c0_i32_0 = arith.constant 0 : i32
    %c0_i32_1 = arith.constant 0 : i32
    return %c0_i32, %c0_i32_0 : i32, i32
  }
  func.func @transform_11(%arg0: i32) -> (i32, i32) {
    %c0_i32 = arith.constant 0 : i32
    %c0_i32_0 = arith.constant 0 : i32
    %c0_i32_1 = arith.constant 0 : i32
    return %c0_i32, %c0_i32_0 : i32, i32
  }
  func.func @transform_12(%arg0: i32) -> (i32, i32) {
    %c0_i32 = arith.constant 0 : i32
    %c0_i32_0 = arith.constant 0 : i32
    %c0_i32_1 = arith.constant 0 : i32
    return %c0_i32, %c0_i32_0 : i32, i32
  }
  func.func @transform_13(%arg0: i32) -> (i32, i32) {
    %c0_i32 = arith.constant 0 : i32
    %c0_i32_0 = arith.constant 0 : i32
    %c0_i32_1 = arith.constant 0 : i32
    return %c0_i32, %c0_i32_0 : i32, i32
  }
  func.func @transform_14(%arg0: i32) -> (i32, i32) {
    %c0_i32 = arith.constant 0 : i32
    %c0_i32_0 = arith.constant 0 : i32
    %c0_i32_1 = arith.constant 0 : i32
    return %c0_i32, %c0_i32_0 : i32, i32
  }
  func.func @transform_15(%arg0: i32) -> (i32, i32) {
    %c0_i32 = arith.constant 0 : i32
    %c0_i32_0 = arith.constant 0 : i32
    %c0_i32_1 = arith.constant 0 : i32
    return %c0_i32, %c0_i32_0 : i32, i32
  }
  func.func @transform_16(%arg0: i32) -> (i32, i32) {
    %c0_i32 = arith.constant 0 : i32
    %c0_i32_0 = arith.constant 0 : i32
    %c0_i32_1 = arith.constant 0 : i32
    return %c0_i32, %c0_i32_0 : i32, i32
  }
  func.func @transform_17(%arg0: i32) -> (i32, i32, i32) {
    %c0_i32 = arith.constant 0 : i32
    %c0_i32_0 = arith.constant 0 : i32
    %c0_i32_1 = arith.constant 0 : i32
    return %arg0, %c0_i32, %c0_i32_0 : i32, i32, i32
  }
}

module attributes {stable_mosaic.version = 11 : i64} {
  func.func @dec_self_block_kernel(%arg0: i32, %arg1: memref<1x6x32xbf16, #tpu.memory_space<vmem>>, %arg2: memref<1x1x6xf32, #tpu.memory_space<vmem>>, %arg3: memref<6x6xf32, #tpu.memory_space<vmem>>, %arg4: memref<32x96xbf16, #tpu.memory_space<vmem>>, %arg5: memref<1x96xf32, #tpu.memory_space<vmem>>, %arg6: memref<4x8x32xbf16, #tpu.memory_space<vmem>>, %arg7: memref<1x32xf32, #tpu.memory_space<vmem>>, %arg8: memref<1x32xf32, #tpu.memory_space<vmem>>, %arg9: memref<1x32xf32, #tpu.memory_space<vmem>>, %arg10: memref<1x6x32xbf16, #tpu.memory_space<vmem>>) attributes {dimension_semantics = [#tpu.dimension_semantics<parallel>], iteration_bounds = array<i64: 2>, scalar_prefetch = 0 : i64, scratch_operands = 0 : i64, tpu.core_type = #tpu.core_type<tc>, window_params = [{transform_indices = @transform_0, window_bounds = array<i64: 1, 6, 32>}, {transform_indices = @transform_1, window_bounds = array<i64: 1, 1, 6>}, {pipeline_mode = #tpu.pipeline_mode<synchronous>, transform_indices = @transform_2, window_bounds = array<i64: 6, 6>}, {pipeline_mode = #tpu.pipeline_mode<synchronous>, transform_indices = @transform_3, window_bounds = array<i64: 32, 96>}, {pipeline_mode = #tpu.pipeline_mode<synchronous>, transform_indices = @transform_4, window_bounds = array<i64: 1, 96>}, {pipeline_mode = #tpu.pipeline_mode<synchronous>, transform_indices = @transform_5, window_bounds = array<i64: 4, 8, 32>}, {pipeline_mode = #tpu.pipeline_mode<synchronous>, transform_indices = @transform_6, window_bounds = array<i64: 1, 32>}, {pipeline_mode = #tpu.pipeline_mode<synchronous>, transform_indices = @transform_7, window_bounds = array<i64: 1, 32>}, {pipeline_mode = #tpu.pipeline_mode<synchronous>, transform_indices = @transform_8, window_bounds = array<i64: 1, 32>}, {transform_indices = @transform_9, window_bounds = array<i64: 1, 6, 32>}]} {
    %c0 = arith.constant 0 : index
    %c0_0 = arith.constant 0 : index
    %c0_1 = arith.constant 0 : index
    %0 = vector.load %arg1[%c0, %c0_0, %c0_1] : memref<1x6x32xbf16, #tpu.memory_space<vmem>>, vector<1x6x32xbf16>
    %1 = vector.shape_cast %0 : vector<1x6x32xbf16> to vector<6x32xbf16>
    %2 = arith.extf %1 : vector<6x32xbf16> to vector<6x32xf32>
    %c0_2 = arith.constant 0 : index
    %c0_3 = arith.constant 0 : index
    %3 = vector.load %arg4[%c0_2, %c0_3] : memref<32x96xbf16, #tpu.memory_space<vmem>>, vector<32x96xbf16>
    %cst = arith.constant dense<0.000000e+00> : vector<6x96xf32>
    %4 = tpu.matmul %1, %3, %cst {dimension_numbers = #tpu.dot_dimension_numbers<[1], [0], [0], [1], [0, 0, 1, 1], [], []>} : vector<6x32xbf16>, vector<32x96xbf16>, vector<6x96xf32> -> vector<6x96xf32>
    %c0_4 = arith.constant 0 : index
    %c0_5 = arith.constant 0 : index
    %5 = vector.load %arg5[%c0_4, %c0_5] : memref<1x96xf32, #tpu.memory_space<vmem>>, vector<1x96xf32>
    %6 = vector.broadcast %5 : vector<1x96xf32> to vector<6x96xf32>
    %7 = arith.addf %4, %6 : vector<6x96xf32>
    %c0_6 = arith.constant 0 : index
    %c0_7 = arith.constant 0 : index
    %8 = vector.load %arg3[%c0_6, %c0_7] : memref<6x6xf32, #tpu.memory_space<vmem>>, vector<6x6xf32>
    %c0_8 = arith.constant 0 : index
    %c0_9 = arith.constant 0 : index
    %c0_10 = arith.constant 0 : index
    %9 = vector.load %arg2[%c0_8, %c0_9, %c0_10] : memref<1x1x6xf32, #tpu.memory_space<vmem>>, vector<1x1x6xf32>
    %10 = vector.shape_cast %9 : vector<1x1x6xf32> to vector<1x6xf32>
    %11 = vector.broadcast %10 : vector<1x6xf32> to vector<6x6xf32>
    %12 = arith.addf %8, %11 : vector<6x6xf32>
    %13 = vector.extract_strided_slice %7 {offsets = [0, 0], sizes = [6, 32], strides = [1, 1]} : vector<6x96xf32> to vector<6x32xf32>
    %14 = vector.extract_strided_slice %7 {offsets = [0, 32], sizes = [6, 32], strides = [1, 1]} : vector<6x96xf32> to vector<6x32xf32>
    %15 = vector.extract_strided_slice %7 {offsets = [0, 64], sizes = [6, 32], strides = [1, 1]} : vector<6x96xf32> to vector<6x32xf32>
    %16 = arith.truncf %13 : vector<6x32xf32> to vector<6x32xbf16>
    %17 = arith.truncf %14 : vector<6x32xf32> to vector<6x32xbf16>
    %18 = arith.truncf %15 : vector<6x32xf32> to vector<6x32xbf16>
    %19 = vector.extract_strided_slice %16 {offsets = [0, 0], sizes = [6, 8], strides = [1, 1]} : vector<6x32xbf16> to vector<6x8xbf16>
    %20 = vector.extract_strided_slice %17 {offsets = [0, 0], sizes = [6, 8], strides = [1, 1]} : vector<6x32xbf16> to vector<6x8xbf16>
    %cst_11 = arith.constant dense<0.000000e+00> : vector<6x6xf32>
    %21 = tpu.matmul %19, %20, %cst_11 {dimension_numbers = #tpu.dot_dimension_numbers<[1], [1], [0], [0], [0, 0, 1, 0], [], []>} : vector<6x8xbf16>, vector<6x8xbf16>, vector<6x6xf32> -> vector<6x6xf32>
    %22 = arith.addf %21, %12 : vector<6x6xf32>
    %cst_12 = arith.constant dense<0xFF800000> : vector<6xf32>
    %23 = vector.multi_reduction <maximumf>, %22, %cst_12 [1] : vector<6x6xf32> to vector<6xf32>
    %24 = vector.shape_cast %23 : vector<6xf32> to vector<6x1xf32>
    %25 = vector.broadcast %24 : vector<6x1xf32> to vector<6x6xf32>
    %26 = arith.subf %22, %25 : vector<6x6xf32>
    %27 = math.exp %26 : vector<6x6xf32>
    %cst_13 = arith.constant dense<0.000000e+00> : vector<6xf32>
    %28 = vector.multi_reduction <add>, %27, %cst_13 [1] : vector<6x6xf32> to vector<6xf32>
    %29 = vector.shape_cast %28 : vector<6xf32> to vector<6x1xf32>
    %30 = tpu.reciprocal %29 {approx = true} : vector<6x1xf32> -> vector<6x1xf32>
    %31 = vector.broadcast %30 : vector<6x1xf32> to vector<6x6xf32>
    %32 = arith.mulf %27, %31 : vector<6x6xf32>
    %33 = arith.truncf %32 : vector<6x6xf32> to vector<6x6xbf16>
    %34 = vector.extract_strided_slice %18 {offsets = [0, 0], sizes = [6, 8], strides = [1, 1]} : vector<6x32xbf16> to vector<6x8xbf16>
    %cst_14 = arith.constant dense<0.000000e+00> : vector<6x8xf32>
    %35 = tpu.matmul %33, %34, %cst_14 {dimension_numbers = #tpu.dot_dimension_numbers<[1], [0], [0], [1], [0, 0, 1, 1], [], []>} : vector<6x6xbf16>, vector<6x8xbf16>, vector<6x8xf32> -> vector<6x8xf32>
    %36 = arith.truncf %35 : vector<6x8xf32> to vector<6x8xbf16>
    %c0_15 = arith.constant 0 : index
    %c0_16 = arith.constant 0 : index
    %c0_17 = arith.constant 0 : index
    %37 = vector.load %arg6[%c0_15, %c0_16, %c0_17] : memref<4x8x32xbf16, #tpu.memory_space<vmem>>, vector<1x8x32xbf16>
    %38 = vector.shape_cast %37 : vector<1x8x32xbf16> to vector<8x32xbf16>
    %cst_18 = arith.constant dense<0.000000e+00> : vector<6x32xf32>
    %39 = tpu.matmul %36, %38, %cst_18 {dimension_numbers = #tpu.dot_dimension_numbers<[1], [0], [0], [1], [0, 0, 1, 1], [], []>} : vector<6x8xbf16>, vector<8x32xbf16>, vector<6x32xf32> -> vector<6x32xf32>
    %40 = vector.extract_strided_slice %16 {offsets = [0, 8], sizes = [6, 8], strides = [1, 1]} : vector<6x32xbf16> to vector<6x8xbf16>
    %41 = vector.extract_strided_slice %17 {offsets = [0, 8], sizes = [6, 8], strides = [1, 1]} : vector<6x32xbf16> to vector<6x8xbf16>
    %cst_19 = arith.constant dense<0.000000e+00> : vector<6x6xf32>
    %42 = tpu.matmul %40, %41, %cst_19 {dimension_numbers = #tpu.dot_dimension_numbers<[1], [1], [0], [0], [0, 0, 1, 0], [], []>} : vector<6x8xbf16>, vector<6x8xbf16>, vector<6x6xf32> -> vector<6x6xf32>
    %43 = arith.addf %42, %12 : vector<6x6xf32>
    %cst_20 = arith.constant dense<0xFF800000> : vector<6xf32>
    %44 = vector.multi_reduction <maximumf>, %43, %cst_20 [1] : vector<6x6xf32> to vector<6xf32>
    %45 = vector.shape_cast %44 : vector<6xf32> to vector<6x1xf32>
    %46 = vector.broadcast %45 : vector<6x1xf32> to vector<6x6xf32>
    %47 = arith.subf %43, %46 : vector<6x6xf32>
    %48 = math.exp %47 : vector<6x6xf32>
    %cst_21 = arith.constant dense<0.000000e+00> : vector<6xf32>
    %49 = vector.multi_reduction <add>, %48, %cst_21 [1] : vector<6x6xf32> to vector<6xf32>
    %50 = vector.shape_cast %49 : vector<6xf32> to vector<6x1xf32>
    %51 = tpu.reciprocal %50 {approx = true} : vector<6x1xf32> -> vector<6x1xf32>
    %52 = vector.broadcast %51 : vector<6x1xf32> to vector<6x6xf32>
    %53 = arith.mulf %48, %52 : vector<6x6xf32>
    %54 = arith.truncf %53 : vector<6x6xf32> to vector<6x6xbf16>
    %55 = vector.extract_strided_slice %18 {offsets = [0, 8], sizes = [6, 8], strides = [1, 1]} : vector<6x32xbf16> to vector<6x8xbf16>
    %cst_22 = arith.constant dense<0.000000e+00> : vector<6x8xf32>
    %56 = tpu.matmul %54, %55, %cst_22 {dimension_numbers = #tpu.dot_dimension_numbers<[1], [0], [0], [1], [0, 0, 1, 1], [], []>} : vector<6x6xbf16>, vector<6x8xbf16>, vector<6x8xf32> -> vector<6x8xf32>
    %57 = arith.truncf %56 : vector<6x8xf32> to vector<6x8xbf16>
    %c1 = arith.constant 1 : index
    %c0_23 = arith.constant 0 : index
    %c0_24 = arith.constant 0 : index
    %58 = vector.load %arg6[%c1, %c0_23, %c0_24] : memref<4x8x32xbf16, #tpu.memory_space<vmem>>, vector<1x8x32xbf16>
    %59 = vector.shape_cast %58 : vector<1x8x32xbf16> to vector<8x32xbf16>
    %cst_25 = arith.constant dense<0.000000e+00> : vector<6x32xf32>
    %60 = tpu.matmul %57, %59, %cst_25 {dimension_numbers = #tpu.dot_dimension_numbers<[1], [0], [0], [1], [0, 0, 1, 1], [], []>} : vector<6x8xbf16>, vector<8x32xbf16>, vector<6x32xf32> -> vector<6x32xf32>
    %61 = arith.addf %39, %60 : vector<6x32xf32>
    %62 = vector.extract_strided_slice %16 {offsets = [0, 16], sizes = [6, 8], strides = [1, 1]} : vector<6x32xbf16> to vector<6x8xbf16>
    %63 = vector.extract_strided_slice %17 {offsets = [0, 16], sizes = [6, 8], strides = [1, 1]} : vector<6x32xbf16> to vector<6x8xbf16>
    %cst_26 = arith.constant dense<0.000000e+00> : vector<6x6xf32>
    %64 = tpu.matmul %62, %63, %cst_26 {dimension_numbers = #tpu.dot_dimension_numbers<[1], [1], [0], [0], [0, 0, 1, 0], [], []>} : vector<6x8xbf16>, vector<6x8xbf16>, vector<6x6xf32> -> vector<6x6xf32>
    %65 = arith.addf %64, %12 : vector<6x6xf32>
    %cst_27 = arith.constant dense<0xFF800000> : vector<6xf32>
    %66 = vector.multi_reduction <maximumf>, %65, %cst_27 [1] : vector<6x6xf32> to vector<6xf32>
    %67 = vector.shape_cast %66 : vector<6xf32> to vector<6x1xf32>
    %68 = vector.broadcast %67 : vector<6x1xf32> to vector<6x6xf32>
    %69 = arith.subf %65, %68 : vector<6x6xf32>
    %70 = math.exp %69 : vector<6x6xf32>
    %cst_28 = arith.constant dense<0.000000e+00> : vector<6xf32>
    %71 = vector.multi_reduction <add>, %70, %cst_28 [1] : vector<6x6xf32> to vector<6xf32>
    %72 = vector.shape_cast %71 : vector<6xf32> to vector<6x1xf32>
    %73 = tpu.reciprocal %72 {approx = true} : vector<6x1xf32> -> vector<6x1xf32>
    %74 = vector.broadcast %73 : vector<6x1xf32> to vector<6x6xf32>
    %75 = arith.mulf %70, %74 : vector<6x6xf32>
    %76 = arith.truncf %75 : vector<6x6xf32> to vector<6x6xbf16>
    %77 = vector.extract_strided_slice %18 {offsets = [0, 16], sizes = [6, 8], strides = [1, 1]} : vector<6x32xbf16> to vector<6x8xbf16>
    %cst_29 = arith.constant dense<0.000000e+00> : vector<6x8xf32>
    %78 = tpu.matmul %76, %77, %cst_29 {dimension_numbers = #tpu.dot_dimension_numbers<[1], [0], [0], [1], [0, 0, 1, 1], [], []>} : vector<6x6xbf16>, vector<6x8xbf16>, vector<6x8xf32> -> vector<6x8xf32>
    %79 = arith.truncf %78 : vector<6x8xf32> to vector<6x8xbf16>
    %c2 = arith.constant 2 : index
    %c0_30 = arith.constant 0 : index
    %c0_31 = arith.constant 0 : index
    %80 = vector.load %arg6[%c2, %c0_30, %c0_31] : memref<4x8x32xbf16, #tpu.memory_space<vmem>>, vector<1x8x32xbf16>
    %81 = vector.shape_cast %80 : vector<1x8x32xbf16> to vector<8x32xbf16>
    %cst_32 = arith.constant dense<0.000000e+00> : vector<6x32xf32>
    %82 = tpu.matmul %79, %81, %cst_32 {dimension_numbers = #tpu.dot_dimension_numbers<[1], [0], [0], [1], [0, 0, 1, 1], [], []>} : vector<6x8xbf16>, vector<8x32xbf16>, vector<6x32xf32> -> vector<6x32xf32>
    %83 = arith.addf %61, %82 : vector<6x32xf32>
    %84 = vector.extract_strided_slice %16 {offsets = [0, 24], sizes = [6, 8], strides = [1, 1]} : vector<6x32xbf16> to vector<6x8xbf16>
    %85 = vector.extract_strided_slice %17 {offsets = [0, 24], sizes = [6, 8], strides = [1, 1]} : vector<6x32xbf16> to vector<6x8xbf16>
    %cst_33 = arith.constant dense<0.000000e+00> : vector<6x6xf32>
    %86 = tpu.matmul %84, %85, %cst_33 {dimension_numbers = #tpu.dot_dimension_numbers<[1], [1], [0], [0], [0, 0, 1, 0], [], []>} : vector<6x8xbf16>, vector<6x8xbf16>, vector<6x6xf32> -> vector<6x6xf32>
    %87 = arith.addf %86, %12 : vector<6x6xf32>
    %cst_34 = arith.constant dense<0xFF800000> : vector<6xf32>
    %88 = vector.multi_reduction <maximumf>, %87, %cst_34 [1] : vector<6x6xf32> to vector<6xf32>
    %89 = vector.shape_cast %88 : vector<6xf32> to vector<6x1xf32>
    %90 = vector.broadcast %89 : vector<6x1xf32> to vector<6x6xf32>
    %91 = arith.subf %87, %90 : vector<6x6xf32>
    %92 = math.exp %91 : vector<6x6xf32>
    %cst_35 = arith.constant dense<0.000000e+00> : vector<6xf32>
    %93 = vector.multi_reduction <add>, %92, %cst_35 [1] : vector<6x6xf32> to vector<6xf32>
    %94 = vector.shape_cast %93 : vector<6xf32> to vector<6x1xf32>
    %95 = tpu.reciprocal %94 {approx = true} : vector<6x1xf32> -> vector<6x1xf32>
    %96 = vector.broadcast %95 : vector<6x1xf32> to vector<6x6xf32>
    %97 = arith.mulf %92, %96 : vector<6x6xf32>
    %98 = arith.truncf %97 : vector<6x6xf32> to vector<6x6xbf16>
    %99 = vector.extract_strided_slice %18 {offsets = [0, 24], sizes = [6, 8], strides = [1, 1]} : vector<6x32xbf16> to vector<6x8xbf16>
    %cst_36 = arith.constant dense<0.000000e+00> : vector<6x8xf32>
    %100 = tpu.matmul %98, %99, %cst_36 {dimension_numbers = #tpu.dot_dimension_numbers<[1], [0], [0], [1], [0, 0, 1, 1], [], []>} : vector<6x6xbf16>, vector<6x8xbf16>, vector<6x8xf32> -> vector<6x8xf32>
    %101 = arith.truncf %100 : vector<6x8xf32> to vector<6x8xbf16>
    %c3 = arith.constant 3 : index
    %c0_37 = arith.constant 0 : index
    %c0_38 = arith.constant 0 : index
    %102 = vector.load %arg6[%c3, %c0_37, %c0_38] : memref<4x8x32xbf16, #tpu.memory_space<vmem>>, vector<1x8x32xbf16>
    %103 = vector.shape_cast %102 : vector<1x8x32xbf16> to vector<8x32xbf16>
    %cst_39 = arith.constant dense<0.000000e+00> : vector<6x32xf32>
    %104 = tpu.matmul %101, %103, %cst_39 {dimension_numbers = #tpu.dot_dimension_numbers<[1], [0], [0], [1], [0, 0, 1, 1], [], []>} : vector<6x8xbf16>, vector<8x32xbf16>, vector<6x32xf32> -> vector<6x32xf32>
    %105 = arith.addf %83, %104 : vector<6x32xf32>
    %c0_40 = arith.constant 0 : index
    %c0_41 = arith.constant 0 : index
    %106 = vector.load %arg7[%c0_40, %c0_41] : memref<1x32xf32, #tpu.memory_space<vmem>>, vector<1x32xf32>
    %107 = vector.broadcast %106 : vector<1x32xf32> to vector<6x32xf32>
    %108 = arith.addf %105, %107 : vector<6x32xf32>
    %109 = arith.addf %108, %2 : vector<6x32xf32>
    %c0_42 = arith.constant 0 : index
    %c0_43 = arith.constant 0 : index
    %110 = vector.load %arg8[%c0_42, %c0_43] : memref<1x32xf32, #tpu.memory_space<vmem>>, vector<1x32xf32>
    %c0_44 = arith.constant 0 : index
    %c0_45 = arith.constant 0 : index
    %111 = vector.load %arg9[%c0_44, %c0_45] : memref<1x32xf32, #tpu.memory_space<vmem>>, vector<1x32xf32>
    %cst_46 = arith.constant dense<0.000000e+00> : vector<6xf32>
    %112 = vector.multi_reduction <add>, %109, %cst_46 [1] : vector<6x32xf32> to vector<6xf32>
    %113 = vector.shape_cast %112 : vector<6xf32> to vector<6x1xf32>
    %cst_47 = arith.constant 3.200000e+01 : f32
    %114 = vector.broadcast %cst_47 : f32 to vector<6x1xf32>
    %115 = arith.divf %113, %114 : vector<6x1xf32>
    %116 = vector.broadcast %115 : vector<6x1xf32> to vector<6x32xf32>
    %117 = arith.subf %109, %116 : vector<6x32xf32>
    %118 = arith.mulf %117, %117 : vector<6x32xf32>
    %cst_48 = arith.constant dense<0.000000e+00> : vector<6xf32>
    %119 = vector.multi_reduction <add>, %118, %cst_48 [1] : vector<6x32xf32> to vector<6xf32>
    %120 = vector.shape_cast %119 : vector<6xf32> to vector<6x1xf32>
    %cst_49 = arith.constant 3.200000e+01 : f32
    %121 = vector.broadcast %cst_49 : f32 to vector<6x1xf32>
    %122 = arith.divf %120, %121 : vector<6x1xf32>
    %123 = vector.broadcast %115 : vector<6x1xf32> to vector<6x32xf32>
    %124 = arith.subf %109, %123 : vector<6x32xf32>
    %cst_50 = arith.constant 9.99999974E-6 : f32
    %125 = vector.broadcast %cst_50 : f32 to vector<6x1xf32>
    %126 = arith.addf %122, %125 : vector<6x1xf32>
    %127 = math.rsqrt %126 : vector<6x1xf32>
    %128 = vector.broadcast %127 : vector<6x1xf32> to vector<6x32xf32>
    %129 = arith.mulf %124, %128 : vector<6x32xf32>
    %130 = vector.broadcast %110 : vector<1x32xf32> to vector<6x32xf32>
    %131 = arith.mulf %129, %130 : vector<6x32xf32>
    %132 = vector.broadcast %111 : vector<1x32xf32> to vector<6x32xf32>
    %133 = arith.addf %131, %132 : vector<6x32xf32>
    %134 = arith.truncf %133 : vector<6x32xf32> to vector<6x32xbf16>
    %c0_51 = arith.constant 0 : index
    %c0_52 = arith.constant 0 : index
    %c0_53 = arith.constant 0 : index
    %135 = vector.load %arg10[%c0_51, %c0_52, %c0_53] : memref<1x6x32xbf16, #tpu.memory_space<vmem>>, vector<1x6x32xbf16>
    %136 = vector.shape_cast %135 : vector<1x6x32xbf16> to vector<6x32xbf16>
    %137 = vector.shape_cast %134 : vector<6x32xbf16> to vector<1x6x32xbf16>
    tpu.vector_store %arg10[%c0_51, %c0_52, %c0_53], %137 {strides = array<i32>} : memref<1x6x32xbf16, #tpu.memory_space<vmem>>, vector<1x6x32xbf16>,
    return
  }
  func.func @transform_0(%arg0: i32) -> (i32, i32, i32) {
    %c0_i32 = arith.constant 0 : i32
    %c0_i32_0 = arith.constant 0 : i32
    %c0_i32_1 = arith.constant 0 : i32
    return %arg0, %c0_i32, %c0_i32_0 : i32, i32, i32
  }
  func.func @transform_1(%arg0: i32) -> (i32, i32, i32) {
    %c0_i32 = arith.constant 0 : i32
    %c0_i32_0 = arith.constant 0 : i32
    %c0_i32_1 = arith.constant 0 : i32
    return %arg0, %c0_i32, %c0_i32_0 : i32, i32, i32
  }
  func.func @transform_2(%arg0: i32) -> (i32, i32) {
    %c0_i32 = arith.constant 0 : i32
    %c0_i32_0 = arith.constant 0 : i32
    %c0_i32_1 = arith.constant 0 : i32
    return %c0_i32, %c0_i32_0 : i32, i32
  }
  func.func @transform_3(%arg0: i32) -> (i32, i32) {
    %c0_i32 = arith.constant 0 : i32
    %c0_i32_0 = arith.constant 0 : i32
    %c0_i32_1 = arith.constant 0 : i32
    return %c0_i32, %c0_i32_0 : i32, i32
  }
  func.func @transform_4(%arg0: i32) -> (i32, i32) {
    %c0_i32 = arith.constant 0 : i32
    %c0_i32_0 = arith.constant 0 : i32
    %c0_i32_1 = arith.constant 0 : i32
    return %c0_i32, %c0_i32_0 : i32, i32
  }
  func.func @transform_5(%arg0: i32) -> (i32, i32, i32) {
    %c0_i32 = arith.constant 0 : i32
    %c0_i32_0 = arith.constant 0 : i32
    %c0_i32_1 = arith.constant 0 : i32
    %c0_i32_2 = arith.constant 0 : i32
    return %c0_i32, %c0_i32_0, %c0_i32_1 : i32, i32, i32
  }
  func.func @transform_6(%arg0: i32) -> (i32, i32) {
    %c0_i32 = arith.constant 0 : i32
    %c0_i32_0 = arith.constant 0 : i32
    %c0_i32_1 = arith.constant 0 : i32
    return %c0_i32, %c0_i32_0 : i32, i32
  }
  func.func @transform_7(%arg0: i32) -> (i32, i32) {
    %c0_i32 = arith.constant 0 : i32
    %c0_i32_0 = arith.constant 0 : i32
    %c0_i32_1 = arith.constant 0 : i32
    return %c0_i32, %c0_i32_0 : i32, i32
  }
  func.func @transform_8(%arg0: i32) -> (i32, i32) {
    %c0_i32 = arith.constant 0 : i32
    %c0_i32_0 = arith.constant 0 : i32
    %c0_i32_1 = arith.constant 0 : i32
    return %c0_i32, %c0_i32_0 : i32, i32
  }
  func.func @transform_9(%arg0: i32) -> (i32, i32, i32) {
    %c0_i32 = arith.constant 0 : i32
    %c0_i32_0 = arith.constant 0 : i32
    %c0_i32_1 = arith.constant 0 : i32
    return %arg0, %c0_i32, %c0_i32_0 : i32, i32, i32
  }
}

module attributes {stable_mosaic.version = 11 : i64} {
  func.func @dec_cross_ffn_block_kernel(%arg0: i32, %arg1: memref<1x6x32xbf16, #tpu.memory_space<vmem>>, %arg2: memref<1x8x32xbf16, #tpu.memory_space<vmem>>, %arg3: memref<1x1x8xf32, #tpu.memory_space<vmem>>, %arg4: memref<32x32xbf16, #tpu.memory_space<vmem>>, %arg5: memref<1x32xf32, #tpu.memory_space<vmem>>, %arg6: memref<32x64xbf16, #tpu.memory_space<vmem>>, %arg7: memref<1x64xf32, #tpu.memory_space<vmem>>, %arg8: memref<4x8x32xbf16, #tpu.memory_space<vmem>>, %arg9: memref<1x32xf32, #tpu.memory_space<vmem>>, %arg10: memref<1x32xf32, #tpu.memory_space<vmem>>, %arg11: memref<1x32xf32, #tpu.memory_space<vmem>>, %arg12: memref<32x64xbf16, #tpu.memory_space<vmem>>, %arg13: memref<1x64xf32, #tpu.memory_space<vmem>>, %arg14: memref<64x32xbf16, #tpu.memory_space<vmem>>, %arg15: memref<1x32xf32, #tpu.memory_space<vmem>>, %arg16: memref<1x32xf32, #tpu.memory_space<vmem>>, %arg17: memref<1x32xf32, #tpu.memory_space<vmem>>, %arg18: memref<1x6x32xbf16, #tpu.memory_space<vmem>>) attributes {dimension_semantics = [#tpu.dimension_semantics<parallel>], iteration_bounds = array<i64: 2>, scalar_prefetch = 0 : i64, scratch_operands = 0 : i64, tpu.core_type = #tpu.core_type<tc>, window_params = [{transform_indices = @transform_0, window_bounds = array<i64: 1, 6, 32>}, {transform_indices = @transform_1, window_bounds = array<i64: 1, 8, 32>}, {transform_indices = @transform_2, window_bounds = array<i64: 1, 1, 8>}, {pipeline_mode = #tpu.pipeline_mode<synchronous>, transform_indices = @transform_3, window_bounds = array<i64: 32, 32>}, {pipeline_mode = #tpu.pipeline_mode<synchronous>, transform_indices = @transform_4, window_bounds = array<i64: 1, 32>}, {pipeline_mode = #tpu.pipeline_mode<synchronous>, transform_indices = @transform_5, window_bounds = array<i64: 32, 64>}, {pipeline_mode = #tpu.pipeline_mode<synchronous>, transform_indices = @transform_6, window_bounds = array<i64: 1, 64>}, {pipeline_mode = #tpu.pipeline_mode<synchronous>, transform_indices = @transform_7, window_bounds = array<i64: 4, 8, 32>}, {pipeline_mode = #tpu.pipeline_mode<synchronous>, transform_indices = @transform_8, window_bounds = array<i64: 1, 32>}, {pipeline_mode = #tpu.pipeline_mode<synchronous>, transform_indices = @transform_9, window_bounds = array<i64: 1, 32>}, {pipeline_mode = #tpu.pipeline_mode<synchronous>, transform_indices = @transform_10, window_bounds = array<i64: 1, 32>}, {pipeline_mode = #tpu.pipeline_mode<synchronous>, transform_indices = @transform_11, window_bounds = array<i64: 32, 64>}, {pipeline_mode = #tpu.pipeline_mode<synchronous>, transform_indices = @transform_12, window_bounds = array<i64: 1, 64>}, {pipeline_mode = #tpu.pipeline_mode<synchronous>, transform_indices = @transform_13, window_bounds = array<i64: 64, 32>}, {pipeline_mode = #tpu.pipeline_mode<synchronous>, transform_indices = @transform_14, window_bounds = array<i64: 1, 32>}, {pipeline_mode = #tpu.pipeline_mode<synchronous>, transform_indices = @transform_15, window_bounds = array<i64: 1, 32>}, {pipeline_mode = #tpu.pipeline_mode<synchronous>, transform_indices = @transform_16, window_bounds = array<i64: 1, 32>}, {transform_indices = @transform_17, window_bounds = array<i64: 1, 6, 32>}]} {
    %c0 = arith.constant 0 : index
    %c0_0 = arith.constant 0 : index
    %c0_1 = arith.constant 0 : index
    %0 = vector.load %arg1[%c0, %c0_0, %c0_1] : memref<1x6x32xbf16, #tpu.memory_space<vmem>>, vector<1x6x32xbf16>
    %1 = vector.shape_cast %0 : vector<1x6x32xbf16> to vector<6x32xbf16>
    %c0_2 = arith.constant 0 : index
    %c0_3 = arith.constant 0 : index
    %c0_4 = arith.constant 0 : index
    %2 = vector.load %arg2[%c0_2, %c0_3, %c0_4] : memref<1x8x32xbf16, #tpu.memory_space<vmem>>, vector<1x8x32xbf16>
    %3 = vector.shape_cast %2 : vector<1x8x32xbf16> to vector<8x32xbf16>
    %4 = arith.extf %1 : vector<6x32xbf16> to vector<6x32xf32>
    %c0_5 = arith.constant 0 : index
    %c0_6 = arith.constant 0 : index
    %5 = vector.load %arg4[%c0_5, %c0_6] : memref<32x32xbf16, #tpu.memory_space<vmem>>, vector<32x32xbf16>
    %cst = arith.constant dense<0.000000e+00> : vector<6x32xf32>
    %6 = tpu.matmul %1, %5, %cst {dimension_numbers = #tpu.dot_dimension_numbers<[1], [0], [0], [1], [0, 0, 1, 1], [], []>} : vector<6x32xbf16>, vector<32x32xbf16>, vector<6x32xf32> -> vector<6x32xf32>
    %c0_7 = arith.constant 0 : index
    %c0_8 = arith.constant 0 : index
    %7 = vector.load %arg5[%c0_7, %c0_8] : memref<1x32xf32, #tpu.memory_space<vmem>>, vector<1x32xf32>
    %8 = vector.broadcast %7 : vector<1x32xf32> to vector<6x32xf32>
    %9 = arith.addf %6, %8 : vector<6x32xf32>
    %c0_9 = arith.constant 0 : index
    %c0_10 = arith.constant 0 : index
    %10 = vector.load %arg6[%c0_9, %c0_10] : memref<32x64xbf16, #tpu.memory_space<vmem>>, vector<32x64xbf16>
    %cst_11 = arith.constant dense<0.000000e+00> : vector<8x64xf32>
    %11 = tpu.matmul %3, %10, %cst_11 {dimension_numbers = #tpu.dot_dimension_numbers<[1], [0], [0], [1], [0, 0, 1, 1], [], []>} : vector<8x32xbf16>, vector<32x64xbf16>, vector<8x64xf32> -> vector<8x64xf32>
    %c0_12 = arith.constant 0 : index
    %c0_13 = arith.constant 0 : index
    %12 = vector.load %arg7[%c0_12, %c0_13] : memref<1x64xf32, #tpu.memory_space<vmem>>, vector<1x64xf32>
    %13 = vector.broadcast %12 : vector<1x64xf32> to vector<8x64xf32>
    %14 = arith.addf %11, %13 : vector<8x64xf32>
    %c0_14 = arith.constant 0 : index
    %c0_15 = arith.constant 0 : index
    %c0_16 = arith.constant 0 : index
    %15 = vector.load %arg3[%c0_14, %c0_15, %c0_16] : memref<1x1x8xf32, #tpu.memory_space<vmem>>, vector<1x1x8xf32>
    %16 = vector.shape_cast %15 : vector<1x1x8xf32> to vector<1x8xf32>
    %17 = vector.extract_strided_slice %14 {offsets = [0, 0], sizes = [8, 32], strides = [1, 1]} : vector<8x64xf32> to vector<8x32xf32>
    %18 = vector.extract_strided_slice %14 {offsets = [0, 32], sizes = [8, 32], strides = [1, 1]} : vector<8x64xf32> to vector<8x32xf32>
    %19 = arith.truncf %9 : vector<6x32xf32> to vector<6x32xbf16>
    %20 = arith.truncf %17 : vector<8x32xf32> to vector<8x32xbf16>
    %21 = arith.truncf %18 : vector<8x32xf32> to vector<8x32xbf16>
    %22 = vector.extract_strided_slice %19 {offsets = [0, 0], sizes = [6, 8], strides = [1, 1]} : vector<6x32xbf16> to vector<6x8xbf16>
    %23 = vector.extract_strided_slice %20 {offsets = [0, 0], sizes = [8, 8], strides = [1, 1]} : vector<8x32xbf16> to vector<8x8xbf16>
    %cst_17 = arith.constant dense<0.000000e+00> : vector<6x8xf32>
    %24 = tpu.matmul %22, %23, %cst_17 {dimension_numbers = #tpu.dot_dimension_numbers<[1], [1], [0], [0], [0, 0, 1, 0], [], []>} : vector<6x8xbf16>, vector<8x8xbf16>, vector<6x8xf32> -> vector<6x8xf32>
    %25 = vector.broadcast %16 : vector<1x8xf32> to vector<6x8xf32>
    %26 = arith.addf %24, %25 : vector<6x8xf32>
    %cst_18 = arith.constant dense<0xFF800000> : vector<6xf32>
    %27 = vector.multi_reduction <maximumf>, %26, %cst_18 [1] : vector<6x8xf32> to vector<6xf32>
    %28 = vector.shape_cast %27 : vector<6xf32> to vector<6x1xf32>
    %29 = vector.broadcast %28 : vector<6x1xf32> to vector<6x8xf32>
    %30 = arith.subf %26, %29 : vector<6x8xf32>
    %31 = math.exp %30 : vector<6x8xf32>
    %cst_19 = arith.constant dense<0.000000e+00> : vector<6xf32>
    %32 = vector.multi_reduction <add>, %31, %cst_19 [1] : vector<6x8xf32> to vector<6xf32>
    %33 = vector.shape_cast %32 : vector<6xf32> to vector<6x1xf32>
    %34 = tpu.reciprocal %33 {approx = true} : vector<6x1xf32> -> vector<6x1xf32>
    %35 = vector.broadcast %34 : vector<6x1xf32> to vector<6x8xf32>
    %36 = arith.mulf %31, %35 : vector<6x8xf32>
    %37 = arith.truncf %36 : vector<6x8xf32> to vector<6x8xbf16>
    %38 = vector.extract_strided_slice %21 {offsets = [0, 0], sizes = [8, 8], strides = [1, 1]} : vector<8x32xbf16> to vector<8x8xbf16>
    %cst_20 = arith.constant dense<0.000000e+00> : vector<6x8xf32>
    %39 = tpu.matmul %37, %38, %cst_20 {dimension_numbers = #tpu.dot_dimension_numbers<[1], [0], [0], [1], [0, 0, 1, 1], [], []>} : vector<6x8xbf16>, vector<8x8xbf16>, vector<6x8xf32> -> vector<6x8xf32>
    %40 = arith.truncf %39 : vector<6x8xf32> to vector<6x8xbf16>
    %c0_21 = arith.constant 0 : index
    %c0_22 = arith.constant 0 : index
    %c0_23 = arith.constant 0 : index
    %41 = vector.load %arg8[%c0_21, %c0_22, %c0_23] : memref<4x8x32xbf16, #tpu.memory_space<vmem>>, vector<1x8x32xbf16>
    %42 = vector.shape_cast %41 : vector<1x8x32xbf16> to vector<8x32xbf16>
    %cst_24 = arith.constant dense<0.000000e+00> : vector<6x32xf32>
    %43 = tpu.matmul %40, %42, %cst_24 {dimension_numbers = #tpu.dot_dimension_numbers<[1], [0], [0], [1], [0, 0, 1, 1], [], []>} : vector<6x8xbf16>, vector<8x32xbf16>, vector<6x32xf32> -> vector<6x32xf32>
    %44 = vector.extract_strided_slice %19 {offsets = [0, 8], sizes = [6, 8], strides = [1, 1]} : vector<6x32xbf16> to vector<6x8xbf16>
    %45 = vector.extract_strided_slice %20 {offsets = [0, 8], sizes = [8, 8], strides = [1, 1]} : vector<8x32xbf16> to vector<8x8xbf16>
    %cst_25 = arith.constant dense<0.000000e+00> : vector<6x8xf32>
    %46 = tpu.matmul %44, %45, %cst_25 {dimension_numbers = #tpu.dot_dimension_numbers<[1], [1], [0], [0], [0, 0, 1, 0], [], []>} : vector<6x8xbf16>, vector<8x8xbf16>, vector<6x8xf32> -> vector<6x8xf32>
    %47 = vector.broadcast %16 : vector<1x8xf32> to vector<6x8xf32>
    %48 = arith.addf %46, %47 : vector<6x8xf32>
    %cst_26 = arith.constant dense<0xFF800000> : vector<6xf32>
    %49 = vector.multi_reduction <maximumf>, %48, %cst_26 [1] : vector<6x8xf32> to vector<6xf32>
    %50 = vector.shape_cast %49 : vector<6xf32> to vector<6x1xf32>
    %51 = vector.broadcast %50 : vector<6x1xf32> to vector<6x8xf32>
    %52 = arith.subf %48, %51 : vector<6x8xf32>
    %53 = math.exp %52 : vector<6x8xf32>
    %cst_27 = arith.constant dense<0.000000e+00> : vector<6xf32>
    %54 = vector.multi_reduction <add>, %53, %cst_27 [1] : vector<6x8xf32> to vector<6xf32>
    %55 = vector.shape_cast %54 : vector<6xf32> to vector<6x1xf32>
    %56 = tpu.reciprocal %55 {approx = true} : vector<6x1xf32> -> vector<6x1xf32>
    %57 = vector.broadcast %56 : vector<6x1xf32> to vector<6x8xf32>
    %58 = arith.mulf %53, %57 : vector<6x8xf32>
    %59 = arith.truncf %58 : vector<6x8xf32> to vector<6x8xbf16>
    %60 = vector.extract_strided_slice %21 {offsets = [0, 8], sizes = [8, 8], strides = [1, 1]} : vector<8x32xbf16> to vector<8x8xbf16>
    %cst_28 = arith.constant dense<0.000000e+00> : vector<6x8xf32>
    %61 = tpu.matmul %59, %60, %cst_28 {dimension_numbers = #tpu.dot_dimension_numbers<[1], [0], [0], [1], [0, 0, 1, 1], [], []>} : vector<6x8xbf16>, vector<8x8xbf16>, vector<6x8xf32> -> vector<6x8xf32>
    %62 = arith.truncf %61 : vector<6x8xf32> to vector<6x8xbf16>
    %c1 = arith.constant 1 : index
    %c0_29 = arith.constant 0 : index
    %c0_30 = arith.constant 0 : index
    %63 = vector.load %arg8[%c1, %c0_29, %c0_30] : memref<4x8x32xbf16, #tpu.memory_space<vmem>>, vector<1x8x32xbf16>
    %64 = vector.shape_cast %63 : vector<1x8x32xbf16> to vector<8x32xbf16>
    %cst_31 = arith.constant dense<0.000000e+00> : vector<6x32xf32>
    %65 = tpu.matmul %62, %64, %cst_31 {dimension_numbers = #tpu.dot_dimension_numbers<[1], [0], [0], [1], [0, 0, 1, 1], [], []>} : vector<6x8xbf16>, vector<8x32xbf16>, vector<6x32xf32> -> vector<6x32xf32>
    %66 = arith.addf %43, %65 : vector<6x32xf32>
    %67 = vector.extract_strided_slice %19 {offsets = [0, 16], sizes = [6, 8], strides = [1, 1]} : vector<6x32xbf16> to vector<6x8xbf16>
    %68 = vector.extract_strided_slice %20 {offsets = [0, 16], sizes = [8, 8], strides = [1, 1]} : vector<8x32xbf16> to vector<8x8xbf16>
    %cst_32 = arith.constant dense<0.000000e+00> : vector<6x8xf32>
    %69 = tpu.matmul %67, %68, %cst_32 {dimension_numbers = #tpu.dot_dimension_numbers<[1], [1], [0], [0], [0, 0, 1, 0], [], []>} : vector<6x8xbf16>, vector<8x8xbf16>, vector<6x8xf32> -> vector<6x8xf32>
    %70 = vector.broadcast %16 : vector<1x8xf32> to vector<6x8xf32>
    %71 = arith.addf %69, %70 : vector<6x8xf32>
    %cst_33 = arith.constant dense<0xFF800000> : vector<6xf32>
    %72 = vector.multi_reduction <maximumf>, %71, %cst_33 [1] : vector<6x8xf32> to vector<6xf32>
    %73 = vector.shape_cast %72 : vector<6xf32> to vector<6x1xf32>
    %74 = vector.broadcast %73 : vector<6x1xf32> to vector<6x8xf32>
    %75 = arith.subf %71, %74 : vector<6x8xf32>
    %76 = math.exp %75 : vector<6x8xf32>
    %cst_34 = arith.constant dense<0.000000e+00> : vector<6xf32>
    %77 = vector.multi_reduction <add>, %76, %cst_34 [1] : vector<6x8xf32> to vector<6xf32>
    %78 = vector.shape_cast %77 : vector<6xf32> to vector<6x1xf32>
    %79 = tpu.reciprocal %78 {approx = true} : vector<6x1xf32> -> vector<6x1xf32>
    %80 = vector.broadcast %79 : vector<6x1xf32> to vector<6x8xf32>
    %81 = arith.mulf %76, %80 : vector<6x8xf32>
    %82 = arith.truncf %81 : vector<6x8xf32> to vector<6x8xbf16>
    %83 = vector.extract_strided_slice %21 {offsets = [0, 16], sizes = [8, 8], strides = [1, 1]} : vector<8x32xbf16> to vector<8x8xbf16>
    %cst_35 = arith.constant dense<0.000000e+00> : vector<6x8xf32>
    %84 = tpu.matmul %82, %83, %cst_35 {dimension_numbers = #tpu.dot_dimension_numbers<[1], [0], [0], [1], [0, 0, 1, 1], [], []>} : vector<6x8xbf16>, vector<8x8xbf16>, vector<6x8xf32> -> vector<6x8xf32>
    %85 = arith.truncf %84 : vector<6x8xf32> to vector<6x8xbf16>
    %c2 = arith.constant 2 : index
    %c0_36 = arith.constant 0 : index
    %c0_37 = arith.constant 0 : index
    %86 = vector.load %arg8[%c2, %c0_36, %c0_37] : memref<4x8x32xbf16, #tpu.memory_space<vmem>>, vector<1x8x32xbf16>
    %87 = vector.shape_cast %86 : vector<1x8x32xbf16> to vector<8x32xbf16>
    %cst_38 = arith.constant dense<0.000000e+00> : vector<6x32xf32>
    %88 = tpu.matmul %85, %87, %cst_38 {dimension_numbers = #tpu.dot_dimension_numbers<[1], [0], [0], [1], [0, 0, 1, 1], [], []>} : vector<6x8xbf16>, vector<8x32xbf16>, vector<6x32xf32> -> vector<6x32xf32>
    %89 = arith.addf %66, %88 : vector<6x32xf32>
    %90 = vector.extract_strided_slice %19 {offsets = [0, 24], sizes = [6, 8], strides = [1, 1]} : vector<6x32xbf16> to vector<6x8xbf16>
    %91 = vector.extract_strided_slice %20 {offsets = [0, 24], sizes = [8, 8], strides = [1, 1]} : vector<8x32xbf16> to vector<8x8xbf16>
    %cst_39 = arith.constant dense<0.000000e+00> : vector<6x8xf32>
    %92 = tpu.matmul %90, %91, %cst_39 {dimension_numbers = #tpu.dot_dimension_numbers<[1], [1], [0], [0], [0, 0, 1, 0], [], []>} : vector<6x8xbf16>, vector<8x8xbf16>, vector<6x8xf32> -> vector<6x8xf32>
    %93 = vector.broadcast %16 : vector<1x8xf32> to vector<6x8xf32>
    %94 = arith.addf %92, %93 : vector<6x8xf32>
    %cst_40 = arith.constant dense<0xFF800000> : vector<6xf32>
    %95 = vector.multi_reduction <maximumf>, %94, %cst_40 [1] : vector<6x8xf32> to vector<6xf32>
    %96 = vector.shape_cast %95 : vector<6xf32> to vector<6x1xf32>
    %97 = vector.broadcast %96 : vector<6x1xf32> to vector<6x8xf32>
    %98 = arith.subf %94, %97 : vector<6x8xf32>
    %99 = math.exp %98 : vector<6x8xf32>
    %cst_41 = arith.constant dense<0.000000e+00> : vector<6xf32>
    %100 = vector.multi_reduction <add>, %99, %cst_41 [1] : vector<6x8xf32> to vector<6xf32>
    %101 = vector.shape_cast %100 : vector<6xf32> to vector<6x1xf32>
    %102 = tpu.reciprocal %101 {approx = true} : vector<6x1xf32> -> vector<6x1xf32>
    %103 = vector.broadcast %102 : vector<6x1xf32> to vector<6x8xf32>
    %104 = arith.mulf %99, %103 : vector<6x8xf32>
    %105 = arith.truncf %104 : vector<6x8xf32> to vector<6x8xbf16>
    %106 = vector.extract_strided_slice %21 {offsets = [0, 24], sizes = [8, 8], strides = [1, 1]} : vector<8x32xbf16> to vector<8x8xbf16>
    %cst_42 = arith.constant dense<0.000000e+00> : vector<6x8xf32>
    %107 = tpu.matmul %105, %106, %cst_42 {dimension_numbers = #tpu.dot_dimension_numbers<[1], [0], [0], [1], [0, 0, 1, 1], [], []>} : vector<6x8xbf16>, vector<8x8xbf16>, vector<6x8xf32> -> vector<6x8xf32>
    %108 = arith.truncf %107 : vector<6x8xf32> to vector<6x8xbf16>
    %c3 = arith.constant 3 : index
    %c0_43 = arith.constant 0 : index
    %c0_44 = arith.constant 0 : index
    %109 = vector.load %arg8[%c3, %c0_43, %c0_44] : memref<4x8x32xbf16, #tpu.memory_space<vmem>>, vector<1x8x32xbf16>
    %110 = vector.shape_cast %109 : vector<1x8x32xbf16> to vector<8x32xbf16>
    %cst_45 = arith.constant dense<0.000000e+00> : vector<6x32xf32>
    %111 = tpu.matmul %108, %110, %cst_45 {dimension_numbers = #tpu.dot_dimension_numbers<[1], [0], [0], [1], [0, 0, 1, 1], [], []>} : vector<6x8xbf16>, vector<8x32xbf16>, vector<6x32xf32> -> vector<6x32xf32>
    %112 = arith.addf %89, %111 : vector<6x32xf32>
    %c0_46 = arith.constant 0 : index
    %c0_47 = arith.constant 0 : index
    %113 = vector.load %arg9[%c0_46, %c0_47] : memref<1x32xf32, #tpu.memory_space<vmem>>, vector<1x32xf32>
    %114 = vector.broadcast %113 : vector<1x32xf32> to vector<6x32xf32>
    %115 = arith.addf %112, %114 : vector<6x32xf32>
    %116 = arith.addf %115, %4 : vector<6x32xf32>
    %c0_48 = arith.constant 0 : index
    %c0_49 = arith.constant 0 : index
    %117 = vector.load %arg10[%c0_48, %c0_49] : memref<1x32xf32, #tpu.memory_space<vmem>>, vector<1x32xf32>
    %c0_50 = arith.constant 0 : index
    %c0_51 = arith.constant 0 : index
    %118 = vector.load %arg11[%c0_50, %c0_51] : memref<1x32xf32, #tpu.memory_space<vmem>>, vector<1x32xf32>
    %cst_52 = arith.constant dense<0.000000e+00> : vector<6xf32>
    %119 = vector.multi_reduction <add>, %116, %cst_52 [1] : vector<6x32xf32> to vector<6xf32>
    %120 = vector.shape_cast %119 : vector<6xf32> to vector<6x1xf32>
    %cst_53 = arith.constant 3.200000e+01 : f32
    %121 = vector.broadcast %cst_53 : f32 to vector<6x1xf32>
    %122 = arith.divf %120, %121 : vector<6x1xf32>
    %123 = vector.broadcast %122 : vector<6x1xf32> to vector<6x32xf32>
    %124 = arith.subf %116, %123 : vector<6x32xf32>
    %125 = arith.mulf %124, %124 : vector<6x32xf32>
    %cst_54 = arith.constant dense<0.000000e+00> : vector<6xf32>
    %126 = vector.multi_reduction <add>, %125, %cst_54 [1] : vector<6x32xf32> to vector<6xf32>
    %127 = vector.shape_cast %126 : vector<6xf32> to vector<6x1xf32>
    %cst_55 = arith.constant 3.200000e+01 : f32
    %128 = vector.broadcast %cst_55 : f32 to vector<6x1xf32>
    %129 = arith.divf %127, %128 : vector<6x1xf32>
    %130 = vector.broadcast %122 : vector<6x1xf32> to vector<6x32xf32>
    %131 = arith.subf %116, %130 : vector<6x32xf32>
    %cst_56 = arith.constant 9.99999974E-6 : f32
    %132 = vector.broadcast %cst_56 : f32 to vector<6x1xf32>
    %133 = arith.addf %129, %132 : vector<6x1xf32>
    %134 = math.rsqrt %133 : vector<6x1xf32>
    %135 = vector.broadcast %134 : vector<6x1xf32> to vector<6x32xf32>
    %136 = arith.mulf %131, %135 : vector<6x32xf32>
    %137 = vector.broadcast %117 : vector<1x32xf32> to vector<6x32xf32>
    %138 = arith.mulf %136, %137 : vector<6x32xf32>
    %139 = vector.broadcast %118 : vector<1x32xf32> to vector<6x32xf32>
    %140 = arith.addf %138, %139 : vector<6x32xf32>
    %141 = arith.truncf %140 : vector<6x32xf32> to vector<6x32xbf16>
    %c0_57 = arith.constant 0 : index
    %c0_58 = arith.constant 0 : index
    %142 = vector.load %arg12[%c0_57, %c0_58] : memref<32x64xbf16, #tpu.memory_space<vmem>>, vector<32x64xbf16>
    %cst_59 = arith.constant dense<0.000000e+00> : vector<6x64xf32>
    %143 = tpu.matmul %141, %142, %cst_59 {dimension_numbers = #tpu.dot_dimension_numbers<[1], [0], [0], [1], [0, 0, 1, 1], [], []>} : vector<6x32xbf16>, vector<32x64xbf16>, vector<6x64xf32> -> vector<6x64xf32>
    %c0_60 = arith.constant 0 : index
    %c0_61 = arith.constant 0 : index
    %144 = vector.load %arg13[%c0_60, %c0_61] : memref<1x64xf32, #tpu.memory_space<vmem>>, vector<1x64xf32>
    %145 = vector.broadcast %144 : vector<1x64xf32> to vector<6x64xf32>
    %146 = arith.addf %143, %145 : vector<6x64xf32>
    %cst_62 = arith.constant 0.000000e+00 : f32
    %147 = vector.broadcast %cst_62 : f32 to vector<6x64xf32>
    %148 = arith.maximumf %146, %147 : vector<6x64xf32>
    %149 = arith.truncf %148 : vector<6x64xf32> to vector<6x64xbf16>
    %c0_63 = arith.constant 0 : index
    %c0_64 = arith.constant 0 : index
    %150 = vector.load %arg14[%c0_63, %c0_64] : memref<64x32xbf16, #tpu.memory_space<vmem>>, vector<64x32xbf16>
    %cst_65 = arith.constant dense<0.000000e+00> : vector<6x32xf32>
    %151 = tpu.matmul %149, %150, %cst_65 {dimension_numbers = #tpu.dot_dimension_numbers<[1], [0], [0], [1], [0, 0, 1, 1], [], []>} : vector<6x64xbf16>, vector<64x32xbf16>, vector<6x32xf32> -> vector<6x32xf32>
    %c0_66 = arith.constant 0 : index
    %c0_67 = arith.constant 0 : index
    %152 = vector.load %arg15[%c0_66, %c0_67] : memref<1x32xf32, #tpu.memory_space<vmem>>, vector<1x32xf32>
    %153 = vector.broadcast %152 : vector<1x32xf32> to vector<6x32xf32>
    %154 = arith.addf %151, %153 : vector<6x32xf32>
    %155 = arith.addf %154, %140 : vector<6x32xf32>
    %c0_68 = arith.constant 0 : index
    %c0_69 = arith.constant 0 : index
    %156 = vector.load %arg16[%c0_68, %c0_69] : memref<1x32xf32, #tpu.memory_space<vmem>>, vector<1x32xf32>
    %c0_70 = arith.constant 0 : index
    %c0_71 = arith.constant 0 : index
    %157 = vector.load %arg17[%c0_70, %c0_71] : memref<1x32xf32, #tpu.memory_space<vmem>>, vector<1x32xf32>
    %cst_72 = arith.constant dense<0.000000e+00> : vector<6xf32>
    %158 = vector.multi_reduction <add>, %155, %cst_72 [1] : vector<6x32xf32> to vector<6xf32>
    %159 = vector.shape_cast %158 : vector<6xf32> to vector<6x1xf32>
    %cst_73 = arith.constant 3.200000e+01 : f32
    %160 = vector.broadcast %cst_73 : f32 to vector<6x1xf32>
    %161 = arith.divf %159, %160 : vector<6x1xf32>
    %162 = vector.broadcast %161 : vector<6x1xf32> to vector<6x32xf32>
    %163 = arith.subf %155, %162 : vector<6x32xf32>
    %164 = arith.mulf %163, %163 : vector<6x32xf32>
    %cst_74 = arith.constant dense<0.000000e+00> : vector<6xf32>
    %165 = vector.multi_reduction <add>, %164, %cst_74 [1] : vector<6x32xf32> to vector<6xf32>
    %166 = vector.shape_cast %165 : vector<6xf32> to vector<6x1xf32>
    %cst_75 = arith.constant 3.200000e+01 : f32
    %167 = vector.broadcast %cst_75 : f32 to vector<6x1xf32>
    %168 = arith.divf %166, %167 : vector<6x1xf32>
    %169 = vector.broadcast %161 : vector<6x1xf32> to vector<6x32xf32>
    %170 = arith.subf %155, %169 : vector<6x32xf32>
    %cst_76 = arith.constant 9.99999974E-6 : f32
    %171 = vector.broadcast %cst_76 : f32 to vector<6x1xf32>
    %172 = arith.addf %168, %171 : vector<6x1xf32>
    %173 = math.rsqrt %172 : vector<6x1xf32>
    %174 = vector.broadcast %173 : vector<6x1xf32> to vector<6x32xf32>
    %175 = arith.mulf %170, %174 : vector<6x32xf32>
    %176 = vector.broadcast %156 : vector<1x32xf32> to vector<6x32xf32>
    %177 = arith.mulf %175, %176 : vector<6x32xf32>
    %178 = vector.broadcast %157 : vector<1x32xf32> to vector<6x32xf32>
    %179 = arith.addf %177, %178 : vector<6x32xf32>
    %180 = arith.truncf %179 : vector<6x32xf32> to vector<6x32xbf16>
    %c0_77 = arith.constant 0 : index
    %c0_78 = arith.constant 0 : index
    %c0_79 = arith.constant 0 : index
    %181 = vector.load %arg18[%c0_77, %c0_78, %c0_79] : memref<1x6x32xbf16, #tpu.memory_space<vmem>>, vector<1x6x32xbf16>
    %182 = vector.shape_cast %181 : vector<1x6x32xbf16> to vector<6x32xbf16>
    %183 = vector.shape_cast %180 : vector<6x32xbf16> to vector<1x6x32xbf16>
    tpu.vector_store %arg18[%c0_77, %c0_78, %c0_79], %183 {strides = array<i32>} : memref<1x6x32xbf16, #tpu.memory_space<vmem>>, vector<1x6x32xbf16>,
    return
  }
  func.func @transform_0(%arg0: i32) -> (i32, i32, i32) {
    %c0_i32 = arith.constant 0 : i32
    %c0_i32_0 = arith.constant 0 : i32
    %c0_i32_1 = arith.constant 0 : i32
    return %arg0, %c0_i32, %c0_i32_0 : i32, i32, i32
  }
  func.func @transform_1(%arg0: i32) -> (i32, i32, i32) {
    %c0_i32 = arith.constant 0 : i32
    %c0_i32_0 = arith.constant 0 : i32
    %c0_i32_1 = arith.constant 0 : i32
    return %arg0, %c0_i32, %c0_i32_0 : i32, i32, i32
  }
  func.func @transform_2(%arg0: i32) -> (i32, i32, i32) {
    %c0_i32 = arith.constant 0 : i32
    %c0_i32_0 = arith.constant 0 : i32
    %c0_i32_1 = arith.constant 0 : i32
    return %arg0, %c0_i32, %c0_i32_0 : i32, i32, i32
  }
  func.func @transform_3(%arg0: i32) -> (i32, i32) {
    %c0_i32 = arith.constant 0 : i32
    %c0_i32_0 = arith.constant 0 : i32
    %c0_i32_1 = arith.constant 0 : i32
    return %c0_i32, %c0_i32_0 : i32, i32
  }
  func.func @transform_4(%arg0: i32) -> (i32, i32) {
    %c0_i32 = arith.constant 0 : i32
    %c0_i32_0 = arith.constant 0 : i32
    %c0_i32_1 = arith.constant 0 : i32
    return %c0_i32, %c0_i32_0 : i32, i32
  }
  func.func @transform_5(%arg0: i32) -> (i32, i32) {
    %c0_i32 = arith.constant 0 : i32
    %c0_i32_0 = arith.constant 0 : i32
    %c0_i32_1 = arith.constant 0 : i32
    return %c0_i32, %c0_i32_0 : i32, i32
  }
  func.func @transform_6(%arg0: i32) -> (i32, i32) {
    %c0_i32 = arith.constant 0 : i32
    %c0_i32_0 = arith.constant 0 : i32
    %c0_i32_1 = arith.constant 0 : i32
    return %c0_i32, %c0_i32_0 : i32, i32
  }
  func.func @transform_7(%arg0: i32) -> (i32, i32, i32) {
    %c0_i32 = arith.constant 0 : i32
    %c0_i32_0 = arith.constant 0 : i32
    %c0_i32_1 = arith.constant 0 : i32
    %c0_i32_2 = arith.constant 0 : i32
    return %c0_i32, %c0_i32_0, %c0_i32_1 : i32, i32, i32
  }
  func.func @transform_8(%arg0: i32) -> (i32, i32) {
    %c0_i32 = arith.constant 0 : i32
    %c0_i32_0 = arith.constant 0 : i32
    %c0_i32_1 = arith.constant 0 : i32
    return %c0_i32, %c0_i32_0 : i32, i32
  }
  func.func @transform_9(%arg0: i32) -> (i32, i32) {
    %c0_i32 = arith.constant 0 : i32
    %c0_i32_0 = arith.constant 0 : i32
    %c0_i32_1 = arith.constant 0 : i32
    return %c0_i32, %c0_i32_0 : i32, i32
  }
  func.func @transform_10(%arg0: i32) -> (i32, i32) {
    %c0_i32 = arith.constant 0 : i32
    %c0_i32_0 = arith.constant 0 : i32
    %c0_i32_1 = arith.constant 0 : i32
    return %c0_i32, %c0_i32_0 : i32, i32
  }
  func.func @transform_11(%arg0: i32) -> (i32, i32) {
    %c0_i32 = arith.constant 0 : i32
    %c0_i32_0 = arith.constant 0 : i32
    %c0_i32_1 = arith.constant 0 : i32
    return %c0_i32, %c0_i32_0 : i32, i32
  }
  func.func @transform_12(%arg0: i32) -> (i32, i32) {
    %c0_i32 = arith.constant 0 : i32
    %c0_i32_0 = arith.constant 0 : i32
    %c0_i32_1 = arith.constant 0 : i32
    return %c0_i32, %c0_i32_0 : i32, i32
  }
  func.func @transform_13(%arg0: i32) -> (i32, i32) {
    %c0_i32 = arith.constant 0 : i32
    %c0_i32_0 = arith.constant 0 : i32
    %c0_i32_1 = arith.constant 0 : i32
    return %c0_i32, %c0_i32_0 : i32, i32
  }
  func.func @transform_14(%arg0: i32) -> (i32, i32) {
    %c0_i32 = arith.constant 0 : i32
    %c0_i32_0 = arith.constant 0 : i32
    %c0_i32_1 = arith.constant 0 : i32
    return %c0_i32, %c0_i32_0 : i32, i32
  }
  func.func @transform_15(%arg0: i32) -> (i32, i32) {
    %c0_i32 = arith.constant 0 : i32
    %c0_i32_0 = arith.constant 0 : i32
    %c0_i32_1 = arith.constant 0 : i32
    return %c0_i32, %c0_i32_0 : i32, i32
  }
  func.func @transform_16(%arg0: i32) -> (i32, i32) {
    %c0_i32 = arith.constant 0 : i32
    %c0_i32_0 = arith.constant 0 : i32
    %c0_i32_1 = arith.constant 0 : i32
    return %c0_i32, %c0_i32_0 : i32, i32
  }
  func.func @transform_17(%arg0: i32) -> (i32, i32, i32) {
    %c0_i32 = arith.constant 0 : i32
    %c0_i32_0 = arith.constant 0 : i32
    %c0_i32_1 = arith.constant 0 : i32
    return %arg0, %c0_i32, %c0_i32_0 : i32, i32, i32
  }
}

module attributes {stable_mosaic.version = 11 : i64} {
  func.func @ln_linear_kernel(%arg0: i32, %arg1: memref<12x32xbf16, #tpu.memory_space<vmem>>, %arg2: memref<1x32xf32, #tpu.memory_space<vmem>>, %arg3: memref<1x32xf32, #tpu.memory_space<vmem>>, %arg4: memref<32x128xbf16, #tpu.memory_space<vmem>>, %arg5: memref<1x128xf32, #tpu.memory_space<vmem>>, %arg6: memref<12x128xf32, #tpu.memory_space<vmem>>) attributes {dimension_semantics = [#tpu.dimension_semantics<parallel>], iteration_bounds = array<i64: 1>, scalar_prefetch = 0 : i64, scratch_operands = 0 : i64, tpu.core_type = #tpu.core_type<tc>, window_params = [{transform_indices = @transform_0, window_bounds = array<i64: 12, 32>}, {pipeline_mode = #tpu.pipeline_mode<synchronous>, transform_indices = @transform_1, window_bounds = array<i64: 1, 32>}, {pipeline_mode = #tpu.pipeline_mode<synchronous>, transform_indices = @transform_2, window_bounds = array<i64: 1, 32>}, {pipeline_mode = #tpu.pipeline_mode<synchronous>, transform_indices = @transform_3, window_bounds = array<i64: 32, 128>}, {pipeline_mode = #tpu.pipeline_mode<synchronous>, transform_indices = @transform_4, window_bounds = array<i64: 1, 128>}, {transform_indices = @transform_5, window_bounds = array<i64: 12, 128>}]} {
    %c0 = arith.constant 0 : index
    %c0_0 = arith.constant 0 : index
    %0 = vector.load %arg1[%c0, %c0_0] : memref<12x32xbf16, #tpu.memory_space<vmem>>, vector<12x32xbf16>
    %1 = arith.extf %0 : vector<12x32xbf16> to vector<12x32xf32>
    %c0_1 = arith.constant 0 : index
    %c0_2 = arith.constant 0 : index
    %2 = vector.load %arg2[%c0_1, %c0_2] : memref<1x32xf32, #tpu.memory_space<vmem>>, vector<1x32xf32>
    %c0_3 = arith.constant 0 : index
    %c0_4 = arith.constant 0 : index
    %3 = vector.load %arg3[%c0_3, %c0_4] : memref<1x32xf32, #tpu.memory_space<vmem>>, vector<1x32xf32>
    %cst = arith.constant dense<0.000000e+00> : vector<12xf32>
    %4 = vector.multi_reduction <add>, %1, %cst [1] : vector<12x32xf32> to vector<12xf32>
    %5 = vector.shape_cast %4 : vector<12xf32> to vector<12x1xf32>
    %cst_5 = arith.constant 3.200000e+01 : f32
    %6 = vector.broadcast %cst_5 : f32 to vector<12x1xf32>
    %7 = arith.divf %5, %6 : vector<12x1xf32>
    %8 = vector.broadcast %7 : vector<12x1xf32> to vector<12x32xf32>
    %9 = arith.subf %1, %8 : vector<12x32xf32>
    %10 = arith.mulf %9, %9 : vector<12x32xf32>
    %cst_6 = arith.constant dense<0.000000e+00> : vector<12xf32>
    %11 = vector.multi_reduction <add>, %10, %cst_6 [1] : vector<12x32xf32> to vector<12xf32>
    %12 = vector.shape_cast %11 : vector<12xf32> to vector<12x1xf32>
    %cst_7 = arith.constant 3.200000e+01 : f32
    %13 = vector.broadcast %cst_7 : f32 to vector<12x1xf32>
    %14 = arith.divf %12, %13 : vector<12x1xf32>
    %15 = vector.broadcast %7 : vector<12x1xf32> to vector<12x32xf32>
    %16 = arith.subf %1, %15 : vector<12x32xf32>
    %cst_8 = arith.constant 9.99999974E-6 : f32
    %17 = vector.broadcast %cst_8 : f32 to vector<12x1xf32>
    %18 = arith.addf %14, %17 : vector<12x1xf32>
    %19 = math.rsqrt %18 : vector<12x1xf32>
    %20 = vector.broadcast %19 : vector<12x1xf32> to vector<12x32xf32>
    %21 = arith.mulf %16, %20 : vector<12x32xf32>
    %22 = vector.broadcast %2 : vector<1x32xf32> to vector<12x32xf32>
    %23 = arith.mulf %21, %22 : vector<12x32xf32>
    %24 = vector.broadcast %3 : vector<1x32xf32> to vector<12x32xf32>
    %25 = arith.addf %23, %24 : vector<12x32xf32>
    %26 = arith.truncf %25 : vector<12x32xf32> to vector<12x32xbf16>
    %c0_9 = arith.constant 0 : index
    %c0_10 = arith.constant 0 : index
    %27 = vector.load %arg4[%c0_9, %c0_10] : memref<32x128xbf16, #tpu.memory_space<vmem>>, vector<32x128xbf16>
    %cst_11 = arith.constant dense<0.000000e+00> : vector<12x128xf32>
    %28 = tpu.matmul %26, %27, %cst_11 {dimension_numbers = #tpu.dot_dimension_numbers<[1], [0], [0], [1], [0, 0, 1, 1], [], []>} : vector<12x32xbf16>, vector<32x128xbf16>, vector<12x128xf32> -> vector<12x128xf32>
    %c0_12 = arith.constant 0 : index
    %c0_13 = arith.constant 0 : index
    %29 = vector.load %arg5[%c0_12, %c0_13] : memref<1x128xf32, #tpu.memory_space<vmem>>, vector<1x128xf32>
    %30 = vector.broadcast %29 : vector<1x128xf32> to vector<12x128xf32>
    %31 = arith.addf %28, %30 : vector<12x128xf32>
    %c0_14 = arith.constant 0 : index
    %c0_15 = arith.constant 0 : index
    %32 = vector.load %arg6[%c0_14, %c0_15] : memref<12x128xf32, #tpu.memory_space<vmem>>, vector<12x128xf32>
    tpu.vector_store %arg6[%c0_14, %c0_15], %31 {strides = array<i32>} : memref<12x128xf32, #tpu.memory_space<vmem>>, vector<12x128xf32>,
    return
  }
  func.func @transform_0(%arg0: i32) -> (i32, i32) {
    %c0_i32 = arith.constant 0 : i32
    %c0_i32_0 = arith.constant 0 : i32
    return %arg0, %c0_i32 : i32, i32
  }
  func.func @transform_1(%arg0: i32) -> (i32, i32) {
    %c0_i32 = arith.constant 0 : i32
    %c0_i32_0 = arith.constant 0 : i32
    %c0_i32_1 = arith.constant 0 : i32
    return %c0_i32, %c0_i32_0 : i32, i32
  }
  func.func @transform_2(%arg0: i32) -> (i32, i32) {
    %c0_i32 = arith.constant 0 : i32
    %c0_i32_0 = arith.constant 0 : i32
    %c0_i32_1 = arith.constant 0 : i32
    return %c0_i32, %c0_i32_0 : i32, i32
  }
  func.func @transform_3(%arg0: i32) -> (i32, i32) {
    %c0_i32 = arith.constant 0 : i32
    %c0_i32_0 = arith.constant 0 : i32
    %c0_i32_1 = arith.constant 0 : i32
    return %c0_i32, %c0_i32_0 : i32, i32
  }
  func.func @transform_4(%arg0: i32) -> (i32, i32) {
    %c0_i32 = arith.constant 0 : i32
    %c0_i32_0 = arith.constant 0 : i32
    %c0_i32_1 = arith.constant 0 : i32
    return %c0_i32, %c0_i32_0 : i32, i32
  }
  func.func @transform_5(%arg0: i32) -> (i32, i32) {
    %c0_i32 = arith.constant 0 : i32
    %c0_i32_0 = arith.constant 0 : i32
    return %arg0, %c0_i32 : i32, i32
  }
}

</mosaic_0001>

<bundles_post_ra>
// kernel: seq2seq_transformer_forward.10
= control target key start
LH: loop header
LB: loop body
LE: loop exit
PB: predicated region body
PF: predicated region fallthrough
CT: control target
= control target key end

     0   :  { %vm20_vm0 = vcmask 261120   ;;  %v104_v5 = vmov 32.0   ;;  %vm84_vm6 = vcmask 257024   ;;  %s144_s0 = inlined_call_operand.vmem [shape: bf16[16,32], index: 0, kind: input, shape index: {}]   ;;  %s145_s1 = inlined_call_operand.vmem [shape: f32[1,32], index: 1, kind: input, shape index: {}]   ;;  %s146_s2 = inlined_call_operand.vmem [shape: f32[1,32], index: 2, kind: input, shape index: {}]   ;;  %s147_s3 = inlined_call_operand.vmem [shape: bf16[16,32], index: 3, kind: output, shape index: {}]  }
   0x1   :  { %v92_v0 = vld [vmem:[%s144_s0] sm:$0xff]   ;;  %98 = vrcp.f32 %v104_v5 }
   0x2   :  { %v93_v1 = vunpack.c.l.bf16 %v92_v0  ;;  %v94_v3 = vunpack.c.h.bf16 %v92_v0  ;;  %v96_v36 = vld [vmem:[%s145_s1] ss:$0 sm:$0xff] }
   0x3   :  { %v97_v39 = vld [vmem:[%s146_s2] ss:$0 sm:$0xff] }
   0x4   :  { %v21_v2 = vsel %vm20_vm0, %v93_v1, 0.0  ;;  %v24_v4 = vsel %vm20_vm0, %v94_v3, 0.0 }
   0x5   :  { %22 = vadd.xlane.f32.xlu0 %v21_v2 }
   0x7   :  { %v99_v6 = vpop.eup %98 }
   0x8   :  { %v28_v7 = vmul.f32 32.0, %v99_v6  ;;  %vm32_vm1 = vweird.f32 %v99_v6 }
   0xa   :  { %v29_v8 = vsub.f32 1.0, %v28_v7 }
   0xc   :  { %v30_v9 = vmul.f32 %v99_v6, %v29_v8 }
   0xd   :  { %25 = vadd.xlane.f32.xlu0 %v24_v4 }
   0xe   :  { %v31_v10 = vadd.f32 %v99_v6, %v30_v9 }
  0x10   :  { %v33_v11 = vsel %vm32_vm1, %v99_v6, %v31_v10 }
  0x78   :  { %v23_v12 = vpop.xlane.xlu0 %22 }
  0x79   :  { %v34_v13 = vmul.f32 %v33_v11, %v23_v12 }
  0x7b   :  { %v36_v14 = vsub.f32 %v93_v1, %v34_v13 }
  0x7d   :  { %v38_v15 = vmul.f32 %v36_v14, %v36_v14 }
  0x7f   :  { %v40_v16 = vsel %vm20_vm0, %v38_v15, 0.0 }
  0x80   :  { %41 = vadd.xlane.f32.xlu1 %v40_v16  ;;  %v26_v17 = vpop.xlane.xlu0 %25 }
  0x81   :  { %v35_v18 = vmul.f32 %v33_v11, %v26_v17 }
  0x83   :  { %v37_v19 = vsub.f32 %v94_v3, %v35_v18 }
  0x85   :  { %v39_v20 = vmul.f32 %v37_v19, %v37_v19 }
  0x87   :  { %v43_v21 = vsel %vm20_vm0, %v39_v20, 0.0 }
  0x88   :  { %44 = vadd.xlane.f32.xlu1 %v43_v21 }
  0xf3   :  { %v42_v22 = vpop.xlane.xlu1 %41 }
  0xf4   :  { %v46_v23 = vmul.f32 %v42_v22, %v33_v11 }
  0xf6   :  { %v48_v24 = vadd.f32 1e-05, %v46_v23 }
  0xf8   :  { %100 = vrsqrt.f32 %v48_v24  ;;  %vm56_vm3 = vweird.f32 %v48_v24 }
  0xfb   :  { %v45_v25 = vpop.xlane.xlu1 %44 }
  0xfc   :  { %v47_v26 = vmul.f32 %v45_v25, %v33_v11 }
  0xfe   :  { %v101_v27 = vpop.eup %100  ;;  %v49_v28 = vadd.f32 1e-05, %v47_v26 }
  0xff   :  { %v51_v29 = vmul.f32 %v101_v27, %v48_v24  ;;  %vm57_vm2 = vweird.f32 %v101_v27 }
 0x100   :  { %102 = vrsqrt.f32 %v49_v28  ;;  %vm58_vm4 = vmor %vm56_vm3, %vm57_vm2  ;;  %vm66_vm7 = vweird.f32 %v49_v28 }
 0x101   :  { %v52_v30 = vmul.f32 %v101_v27, %v51_v29 }
 0x103   :  { %v53_v31 = vmul.f32 0.5, %v52_v30 }
 0x105   :  { %v54_v32 = vsub.f32 1.5, %v53_v31 }
 0x106   :  { %v103_v33 = vpop.eup %102 }
 0x107   :  { %v55_v34 = vmul.f32 %v101_v27, %v54_v32  ;;  %v61_v35 = vmul.f32 %v103_v33, %v49_v28  ;;  %vm67_vm5 = vweird.f32 %v103_v33 }
 0x108   :  { %vm68_vm8 = vmor %vm66_vm7, %vm67_vm5 }
 0x109   :  { %v59_v37 = vsel %vm58_vm4, %v101_v27, %v55_v34  ;;  %v62_v38 = vmul.f32 %v103_v33, %v61_v35 }
 0x10a   :  { %v70_v40 = vmul.f32 %v59_v37, %v36_v14 }
 0x10b   :  { %v63_v41 = vmul.f32 0.5, %v62_v38 }
 0x10c   :  { %v75_v42 = vmul.f32 %v96_v36, %v70_v40 }
 0x10d   :  { %v64_v43 = vsub.f32 1.5, %v63_v41 }
 0x10e   :  { %v80_v44 = vadd.f32 %v97_v39, %v75_v42 }
 0x10f   :  { %v65_v45 = vmul.f32 %v103_v33, %v64_v43 }
 0x110   :  { %v82_v46 = vpack.c.bf16 %v80_v44, %v80_v44 }
 0x111   :  { %v69_v47 = vsel %vm68_vm8, %v103_v33, %v65_v45 }
 0x112   :  { %85 = vst.msk [vmem:[%s147_s3] sm:$0xf] %vm84_vm6, %v82_v46  ;;  %v71_v48 = vmul.f32 %v69_v47, %v37_v19 }
 0x114   :  { %v76_v49 = vmul.f32 %v96_v36, %v71_v48 }
 0x116   :  { %v81_v50 = vadd.f32 %v97_v39, %v76_v49 }
 0x118   :  { %v83_v51 = vpack.c.bf16 %v81_v50, %v81_v50 }
 0x11a   :  { %86 = vst.msk [vmem:[%s147_s3 + $0x4] sm:$0xf] %vm84_vm6, %v83_v51 }

// kernel: seq2seq_transformer_forward.8
= control target key start
LH: loop header
LB: loop body
LE: loop exit
PB: predicated region body
PF: predicated region fallthrough
CT: control target
= control target key end

     0   :  { %s1320_s18 = smov 0   ;;  %s1481_s0 = inlined_call_operand.vmem [shape: bf16[2,8,32], index: 0, kind: input, shape index: {}]   ;;  %s1482_s1 = inlined_call_operand.vmem [shape: f32[2,1,8], index: 1, kind: input, shape index: {}]   ;;  %s1483_s2 = inlined_call_operand.vmem [shape: f32[8,8], index: 2, kind: input, shape index: {}]   ;;  %s1484_s3 = inlined_call_operand.vmem [shape: bf16[32,96], index: 3, kind: input, shape index: {}]   ;;  %s1485_s4 = inlined_call_operand.vmem [shape: f32[1,96], index: 4, kind: input, shape index: {}]   ;;  %s1486_s5 = inlined_call_operand.vmem [shape: bf16[4,8,32], index: 5, kind: input, shape index: {}]   ;;  %s1487_s6 = inlined_call_operand.vmem [shape: f32[1,32], index: 6, kind: input, shape index: {}]   ;;  %s1488_s7 = inlined_call_operand.vmem [shape: f32[1,32], index: 7, kind: input, shape index: {}]   ;;  %s1489_s8 = inlined_call_operand.vmem [shape: f32[1,32], index: 8, kind: input, shape index: {}]   ;;  %s1490_s9 = inlined_call_operand.vmem [shape: bf16[32,64], index: 9, kind: input, shape index: {}]   ;;  %s1491_s10 = inlined_call_operand.vmem [shape: f32[1,64], index: 10, kind: input, shape index: {}]   ;;  %s1492_s11 = inlined_call_operand.vmem [shape: bf16[64,32], index: 11, kind: input, shape index: {}]   ;;  %s1493_s12 = inlined_call_operand.vmem [shape: f32[1,32], index: 12, kind: input, shape index: {}]   ;;  %s1494_s13 = inlined_call_operand.vmem [shape: f32[1,32], index: 13, kind: input, shape index: {}]   ;;  %s1495_s14 = inlined_call_operand.vmem [shape: f32[1,32], index: 14, kind: input, shape index: {}]   ;;  %s1496_s15 = inlined_call_operand.vmem [shape: bf16[2,8,32], index: 15, kind: output, shape index: {}]  }
   0x1 LB: > { %s1102_s19 = sadd.s32 4294967295, %s1226_s18   ;;  %p1106_p0 = scmp.ge.s32.totalorder %s1226_s18, 1  ;;  %s1226_s18 = sphi %s1320_s18, %s25_s18  }
   0x2   : > { %p444_p1 = scmp.lt.s32.totalorder %s1226_s18, 3 }
   0x4   : > { %p445_p2 = pnand %p1106_p0, %p444_p1 }
   0x5   : > { %p493_p3 = scmp.lt.s32.totalorder (!%p445_p2), %s1102_s19, 1  ;;  %s1228_s20 = smov (!%p445_p2), 88  }
   0x6   : > { %448 = sbr.rel (%p445_p2) target bundleno = 2286 (0x8ee), region = 80  ;;  %s1229_s21 = smov (!%p445_p2), 96  }
   0x7   : > { %s1230_s22 = smov (!%p445_p2), 120   ;;  %s1231_s23 = smov (!%p445_p2), 80  }
   0x8   : > { %s1232_s25 = smov (!%p445_p2), 72   ;;  %s1233_s26 = smov (!%p445_p2), 112  }
   0x9   : > { %s1238_s28 = smov (!%p445_p2), 48  }
   0xb   : > { %v1162_v0 = vld [vmem:[%s1484_s3 + $0x8] sm:$0xff]  ;;  %v1161_v1 = vld [vmem:[%s1484_s3] sm:$0xff]  ;;  %s1498_s19 = smov (!%p493_p3, %s1102_s19), 1  ;;  %vm527_vm0 = vcmask 261120   ;;  %vm556_vm1 = vcmask 64512   ;;  %vm593_vm2 = vcmask 1043456  }
   0xc   : > { %537 = vmatpush.bf16.msra.mxu0 %v1162_v0  ;;  %s1107_s24 = sshll.u32 %s1498_s19, 2  ;;  %s499_s27 = scalar_lea.vmem %s1482_s1, %s1498_s19  ;;  %v1190_v3 = vld [vmem:[%s1485_s4] ss:$0 sm:$0xff]  ;;  %v1122_v62 = vld [vmem:[%s1486_s5 + $0x4] sm:$0xf]  ;;  %vm987_vm7 = vcmask 523264  }
   0xd   : > { %s496_s30 = scalar_lea.vmem %s1481_s0, %s1107_s24  ;;  %v611_v15 = vld [vmem:[%s1486_s5] sm:$0xf]  ;;  %v675_v63 = vsel %vm593_vm2, %v1122_v62, 0  ;;  %vm1038_vm11 = vcmask 257024  }
   0xe   : > { %v1346_v2 = vld [vmem:[%s496_s30] sm:$0xf]  ;;  %v694_v18 = vsel %vm593_vm2, %v611_v15, 0 }
   0xf   : > { %v1189_v22 = vld [vmem:[%s499_s27] ss:$0 sm:$0xff]  ;;  %s1234_s27 = smov 56  }
  0x10   : > { %538 = vmatpush.bf16.msra.mxu0 %v1161_v1  ;;  %v544_v23 = vld [vmem:[%s1483_s2] sm:$0xff] }
  0x11   : > { %v1380_v24 = vadd.f32 %v1189_v22, %v544_v23 }
  0x13   : > { %1117 = vmatmul.msk.bf16.vlgmr.msra.gmra.mxu0 %vm527_vm0, %v1346_v2 }
  0x14   : > { %684 = vmatpush.bf16.msrb.mxu0 %v675_v63 }
  0x90   : > { %v540_v4 = vpop.f32.mrf.mxu0 }
  0x91   : > { %v541_v5 = vadd.f32 %v1190_v3, %v540_v4 }
  0x93   : > { %v550_v6 = vpack.c.bf16 %v541_v5, %v541_v5 }
  0x95   : > { %v552_v7 = vunpack.c.l.b16 %v550_v6 }
  0x97   : > { %v1353_v8 = vpack.c.b16 %v552_v7, %v552_v7 }
  0x98   : > { %v542_v9 = vpop.f32.mrf.mxu0 }
  0x99   : > { %614 = vrot.lane.b32.xlu2 %v1353_v8, %s1228_s20  ;;  %554 = vrot.lane.b32.xlu0 %v1353_v8, %s1229_s21  ;;  %s1235_s21 = smov 40  }
  0xa1   : > { %612 = vrot.lane.b32.xlu2 %v1353_v8, %s1230_s22  ;;  %s1236_s22 = smov 64  }
  0xa9   : > { %711 = vrot.lane.b32.xlu2 %v1353_v8, %s1231_s23  ;;  %s1237_s23 = smov 104  }
  0xb1   : > { %790 = vrot.lane.b32.xlu2 %v1353_v8, %s1232_s25 }
  0xb9   : > { %709 = vrot.lane.b32.xlu2 %v1353_v8, %s1233_s26 }
  0xf3   : > { %v615_v10 = vpop.permute.xlu2 %614 }
  0xf4   : > { %v620_v11 = vsel %vm556_vm1, %v615_v10, 0 }
  0xf5   : > { %629 = vmatpush.bf16.xpose.msra.mxu3 %v620_v11 }
  0xfb   : > { %v613_v12 = vpop.permute.xlu2 %612 }
  0xfc   : > { %1120 = vmatmul.msk.bf16.vlgmr.msra.gmra.mxu3 %vm556_vm1, %v613_v12 }
 0x103   : > { %v712_v13 = vpop.permute.xlu2 %711 }
 0x104   : > { %v717_v14 = vsel %vm556_vm1, %v712_v13, 0 }
 0x105   : > { %726 = vmatpush.bf16.xpose.msrb.mxu3 %v717_v14 }
 0x10b   : > { %v791_v16 = vpop.permute.xlu2 %790  ;;  %v555_v17 = vpop.permute.xlu0 %554 }
 0x10c   : > { %v561_v19 = vsel %vm556_vm1, %v555_v17, 0  ;;  %v796_v21 = vsel %vm556_vm1, %v791_v16, 0 }
 0x10d   : > { %570 = vmatpush.bf16.xpose.msra.mxu1 %v561_v19 }
 0x113   : > { %v710_v20 = vpop.permute.xlu2 %709 }
 0x114   : > { %1118 = vmatmul.msk.bf16.vlgmr.msra.gmra.mxu1 %vm556_vm1, %v550_v6  ;;  %1125 = vmatmul.msk.bf16.vlgmr.msrb.gmra.mxu3 %vm556_vm1, %v710_v20 }
 0x115   : > { %703 = vmatpush.bf16.msrb.mxu1 %v694_v18 }
 0x119   : > { %805 = vmatpush.bf16.xpose.msra.mxu1 %v796_v21 }
 0x17f   : > { %v631_v25 = vpop.f32.mrf.mxu3 }
 0x180   : > { %v632_v26 = vadd.f32 %v631_v25, %v1380_v24 }
 0x182   : > { %v635_v27 = vsel %vm556_vm1, %v632_v26, -inf }
 0x183   : > { %636 = vmax.xlane.f32.xlu2 %v635_v27 }
 0x187   : > { %v633_v28 = vpop.f32.mrf.mxu3 }
 0x191   : > { %v572_v29 = vpop.f32.mrf.mxu1 }
 0x192   : > { %v573_v30 = vadd.f32 %v572_v29, %v1380_v24 }
 0x194   : > { %v576_v31 = vsel %vm556_vm1, %v573_v30, -inf }
 0x195   : > { %577 = vmax.xlane.f32.xlu0 %v576_v31 }
 0x197   : > { %v728_v32 = vpop.f32.mrf.mxu3 }
 0x198   : > { %v1387_v33 = vadd.f32 %v728_v32, %v1380_v24 }
 0x199   : > { %v574_v34 = vpop.f32.mrf.mxu1 }
 0x19a   : > { %v732_v35 = vsel %vm556_vm1, %v1387_v33, -inf }
 0x19d   : > { %733 = vmax.xlane.f32.xlu0 %v732_v35 }
 0x19f   : > { %v730_v36 = vpop.f32.mrf.mxu3 }
 0x1f6   : > { %v637_v37 = vpop.xlane.xlu2 %636 }
 0x1f7   : > { %v638_v38 = vsub.f32 %v632_v26, %v637_v37 }
 0x1f9   : > { %v639_v39 = vmul.f32 1.442695, %v638_v38  ;;  %v1127_v38 = vld [vmem:[%s1486_s5 + $0x8] sm:$0xf] }
 0x1fb   : > { %1198 = vpow2.f32 %v639_v39  ;;  %v772_v39 = vsel %vm593_vm2, %v1127_v38, 0 }
 0x1fc   : > { %781 = vmatpush.bf16.msra.mxu0 %v772_v39 }
 0x201   : > { %v1199_v40 = vpop.eup %1198 }
 0x202   : > { %v641_v41 = vsel %vm556_vm1, %v1199_v40, 0.0 }
 0x203   : > { %642 = vadd.xlane.f32.xlu0 %v641_v41 }
 0x208   : > { %v578_v42 = vpop.xlane.xlu0 %577 }
 0x209   : > { %v579_v43 = vsub.f32 %v573_v30, %v578_v42  ;;  %v1131_v30 = vld [vmem:[%s1486_s5 + $0xc] sm:$0xf] }
 0x20a   : > { %v851_v35 = vsel %vm593_vm2, %v1131_v30, 0 }
 0x20b   : > { %v580_v44 = vmul.f32 1.442695, %v579_v43 }
 0x20d   : > { %1200 = vpow2.f32 %v580_v44 }
 0x210   : > { %v734_v47 = vpop.xlane.xlu0 %733 }
 0x211   : > { %v735_v11 = vsub.f32 %v1387_v33, %v734_v47 }
 0x213   : > { %v1201_v45 = vpop.eup %1200  ;;  %v736_v12 = vmul.f32 1.442695, %v735_v11  ;;  %v1167_v11 = vld [vmem:[%s1492_s11 + $0x10] sm:$0xff] }
 0x214   : > { %v582_v46 = vsel %vm556_vm1, %v1201_v45, 0.0 }
 0x215   : > { %583 = vadd.xlane.f32.xlu1 %v582_v46 }
 0x217   : > { %647 = vrot.lane.b32.xlu0 %v1353_v8, %s1234_s27 }
 0x21f   : > { %823 = vrot.lane.b32.xlu0 %v1353_v8, %s1235_s21 }
 0x22e   : > { %588 = vrot.lane.b32.xlu1 %v1353_v8, %s1236_s22 }
 0x236   : > { %788 = vrot.lane.b32.xlu1 %v1353_v8, %s1237_s23  ;;  %s503_s23 = scalar_lea.vmem %s1496_s15, %s1107_s24 }
 0x276   : > { %v643_v48 = vpop.xlane.xlu0 %642 }
 0x288   : > { %v584_v52 = vpop.xlane.xlu1 %583 }
 0x289   : > { %v648_v49 = vpop.permute.xlu0 %647  ;;  %1202 = vrcp.f32 %v584_v52 }
 0x28a   : > { %v653_v57 = vsel %vm593_vm2, %v648_v49, 0  ;;  %1204 = vrcp.f32 %v643_v48  ;;  %v1191_v48 = vld [vmem:[%s1487_s6] ss:$0 sm:$0xff] }
 0x28b   : > { %1206 = vpow2.f32 %v736_v12 }
 0x28f   : > { %v1203_v53 = vpop.eup %1202 }
 0x290   : > { %v586_v54 = vmul.f32 %v1203_v53, %v1201_v45  ;;  %v1205_v59 = vpop.eup %1204 }
 0x291   : > { %v824_v50 = vpop.permute.xlu0 %823  ;;  %v645_v60 = vmul.f32 %v1205_v59, %v1199_v40  ;;  %v1207_v18 = vpop.eup %1206 }
 0x292   : > { %v829_v51 = vsel %vm593_vm2, %v824_v50, 0  ;;  %v587_v58 = vpack.c.bf16 %v586_v54, %v586_v54  ;;  %v738_v21 = vsel %vm556_vm1, %v1207_v18, 0.0  ;;  %v506_v50 = vunpack.c.l.bf16 %v1346_v2 }
 0x293   : > { %838 = vmatpush.bf16.msra.mxu3 %v829_v51  ;;  %v646_v61 = vpack.c.bf16 %v645_v60, %v645_v60 }
 0x2a0   : > { %v589_v55 = vpop.permute.xlu1 %588 }
 0x2a1   : > { %v595_v56 = vsel %vm593_vm2, %v589_v55, 0 }
 0x2a2   : > { %604 = vmatpush.bf16.msra.mxu2 %v595_v56 }
 0x2a5   : > { %1119 = vmatmul.msk.bf16.vlgmr.msra.gmra.mxu2 %vm556_vm1, %v587_v58 }
 0x2a6   : > { %662 = vmatpush.bf16.msrb.mxu2 %v653_v57  ;;  %v1239_v57 = vmov 32.0  }
 0x2a8   : > { %v789_v6 = vpop.permute.xlu1 %788 }
 0x2b5   : > { %1121 = vmatmul.msk.bf16.vlgmr.msrb.gmra.mxu2 %vm556_vm1, %v646_v61 }
 0x328   : > { %v606_v0 = vpop.f32.mrf.mxu2 }
 0x329   : > { %v610_v1 = vpack.c.bf16 %v606_v0, %v606_v0 }
 0x32b   : > { %1124 = vmatmul.msk.bf16.vlgmr.msrb.gmra.mxu1 %vm556_vm1, %v610_v1 }
 0x330   : > { %v608_v3 = vpop.f32.mrf.mxu2 }
 0x338   : > { %v664_v4 = vpop.f32.mrf.mxu2 }
 0x339   : > { %v668_v5 = vpack.c.bf16 %v664_v4, %v664_v4 }
 0x33b   : > { %1123 = vmatmul.msk.bf16.vlgmr.msrb.gmra.mxu0 %vm556_vm1, %v668_v5  ;;  %1129 = vmatmul.msk.bf16.vlgmr.msra.gmra.mxu1 %vm556_vm1, %v789_v6  ;;  %v1164_v5 = vld [vmem:[%s1490_s9 + $0x8] sm:$0xff]  ;;  %v1163_v6 = vld [vmem:[%s1490_s9] sm:$0xff] }
 0x33c   : > { %942 = vmatpush.bf16.msrb.mxu0 %v1164_v5 }
 0x340   : > { %v666_v7 = vpop.f32.mrf.mxu2  ;;  %943 = vmatpush.bf16.msrb.mxu0 %v1163_v6 }
 0x341   : > { %v1168_v7 = vld [vmem:[%s1492_s11 + $0x18] sm:$0xff] }
 0x342   : > { %995 = vmatpush.bf16.msrb.mxu1 %v1168_v7 }
 0x346   : > { %996 = vmatpush.bf16.msrb.mxu1 %v1167_v11 }
 0x3a8   : > { %v705_v9 = vpop.f32.mrf.mxu1 }
 0x3b0   : > { %v707_v10 = vpop.f32.mrf.mxu1 }
 0x3b8   : > { %v686_v13 = vpop.f32.mrf.mxu0  ;;  %v807_v14 = vpop.f32.mrf.mxu1 }
 0x3b9   : > { %v706_v15 = vadd.f32 %v705_v9, %v686_v13  ;;  %v808_v16 = vadd.f32 %v807_v14, %v1380_v24 }
 0x3bb   : > { %v811_v17 = vsel %vm556_vm1, %v808_v16, -inf }
 0x3bc   : > { %812 = vmax.xlane.f32.xlu1 %v811_v17 }
 0x3c0   : > { %v688_v19 = vpop.f32.mrf.mxu0  ;;  %v809_v20 = vpop.f32.mrf.mxu1 }
 0x3c1   : > { %v1192_v19 = vld [vmem:[%s1488_s7] ss:$0 sm:$0xff] }
 0x3c4   : > { %739 = vadd.xlane.f32.xlu1 %v738_v21  ;;  %v1193_v21 = vld [vmem:[%s1489_s8] ss:$0 sm:$0xff] }
 0x42f   : > { %v813_v22 = vpop.xlane.xlu1 %812 }
 0x430   : > { %v814_v23 = vsub.f32 %v808_v16, %v813_v22 }
 0x432   : > { %v815_v25 = vmul.f32 1.442695, %v814_v23 }
 0x434   : > { %1208 = vpow2.f32 %v815_v25 }
 0x437   : > { %v740_v24 = vpop.xlane.xlu1 %739 }
 0x438   : > { %1210 = vrcp.f32 %v740_v24  ;;  %v1165_v24 = vld [vmem:[%s1492_s11] sm:$0xff] }
 0x43a   : > { %v1209_v26 = vpop.eup %1208 }
 0x43b   : > { %v817_v27 = vsel %vm556_vm1, %v1209_v26, 0.0 }
 0x43c   : > { %818 = vadd.xlane.f32.xlu2 %v817_v27  ;;  %v1166_v27 = vld [vmem:[%s1492_s11 + $0x8] sm:$0xff] }
 0x43d   : > { %997 = vmatpush.bf16.msrb.mxu1 %v1166_v27 }
 0x43e   : > { %v1211_v29 = vpop.eup %1210 }
 0x43f   : > { %v742_v32 = vmul.f32 %v1211_v29, %v1207_v18 }
 0x441   : > { %998 = vmatpush.bf16.msrb.mxu1 %v1165_v24 }
 0x454   : > { %744 = vrot.lane.b32.xlu2 %v1353_v8, %s1238_s28  ;;  %v743_v8 = vpack.c.bf16 %v742_v32, %v742_v32 }
 0x4af   : > { %v819_v28 = vpop.xlane.xlu2 %818 }
 0x4b0   : > { %1212 = vrcp.f32 %v819_v28  ;;  %v1194_v28 = vld [vmem:[%s1491_s10] ss:$0 sm:$0xff] }
 0x4b1   : > { %1214 = vrcp.f32 %v1239_v57 }
 0x4b6   : > { %v1213_v31 = vpop.eup %1212 }
 0x4b7   : > { %v821_v33 = vmul.f32 %v1213_v31, %v1209_v26  ;;  %v745_v34 = vpop.permute.xlu2 %744  ;;  %v1215_v58 = vpop.eup %1214 }
 0x4b8   : > { %v750_v36 = vsel %vm593_vm2, %v745_v34, 0  ;;  %v879_v59 = vmul.f32 32.0, %v1215_v58  ;;  %vm883_vm3 = vweird.f32 %v1215_v58  ;;  %v1195_v34 = vld [vmem:[%s1493_s12] ss:$0 sm:$0xff] }
 0x4b9   : > { %v822_v37 = vpack.c.bf16 %v821_v33, %v821_v33  ;;  %759 = vmatpush.bf16.msra.mxu2 %v750_v36 }
 0x4ba   : > { %v880_v60 = vsub.f32 1.0, %v879_v59 }
 0x4bb   : > { %1130 = vmatmul.msk.bf16.vlgmr.msra.gmra.mxu3 %vm556_vm1, %v822_v37 }
 0x4bc   : > { %1126 = vmatmul.msk.bf16.vlgmr.msra.gmra.mxu2 %vm556_vm1, %v743_v8  ;;  %v881_v61 = vmul.f32 %v1215_v58, %v880_v60 }
 0x4bd   : > { %860 = vmatpush.bf16.msrb.mxu2 %v851_v35 }
 0x4be   : > { %v882_v62 = vadd.f32 %v1215_v58, %v881_v61 }
 0x4c0   : > { %v884_v63 = vsel %vm883_vm3, %v1215_v58, %v882_v62 }
 0x53e   : > { %v840_v40 = vpop.f32.mrf.mxu3 }
 0x53f   : > { %v844_v41 = vpack.c.bf16 %v840_v40, %v840_v40  ;;  %v761_v42 = vpop.f32.mrf.mxu2 }
 0x540   : > { %v765_v43 = vpack.c.bf16 %v761_v42, %v761_v42 }
 0x541   : > { %1132 = vmatmul.msk.bf16.vlgmr.msrb.gmra.mxu2 %vm556_vm1, %v844_v41 }
 0x542   : > { %1128 = vmatmul.msk.bf16.vlgmr.msra.gmra.mxu0 %vm556_vm1, %v765_v43 }
 0x546   : > { %v842_v44 = vpop.f32.mrf.mxu3 }
 0x547   : > { %v763_v45 = vpop.f32.mrf.mxu2 }
 0x5bf   : > { %v783_v46 = vpop.f32.mrf.mxu0 }
 0x5c0   : > { %v787_v47 = vadd.f32 %v783_v46, %v706_v15 }
 0x5c4   : > { %v862_v49 = vpop.f32.mrf.mxu2 }
 0x5c5   : > { %v866_v51 = vadd.f32 %v862_v49, %v787_v47 }
 0x5c7   : > { %v871_v52 = vadd.f32 %v1191_v48, %v866_v51  ;;  %v785_v53 = vpop.f32.mrf.mxu0 }
 0x5c8   : > { %v1196_v53 = vld [vmem:[%s1494_s13] ss:$0 sm:$0xff] }
 0x5c9   : > { %v872_v54 = vadd.f32 %v871_v52, %v506_v50 }
 0x5cb   : > { %v875_v55 = vsel %vm527_vm0, %v872_v54, 0.0 }
 0x5cc   : > { %v864_v56 = vpop.f32.mrf.mxu2  ;;  %876 = vadd.xlane.f32.xlu1 %v875_v55  ;;  %v1197_v55 = vld [vmem:[%s1495_s14] ss:$0 sm:$0xff] }
 0x63f   : > { %v877_v0 = vpop.xlane.xlu1 %876 }
 0x640   : > { %v885_v1 = vmul.f32 %v884_v63, %v877_v0 }
 0x642   : > { %v886_v2 = vsub.f32 %v872_v54, %v885_v1 }
 0x644   : > { %v887_v3 = vmul.f32 %v886_v2, %v886_v2 }
 0x646   : > { %v888_v4 = vsel %vm527_vm0, %v887_v3, 0.0 }
 0x647   : > { %889 = vadd.xlane.f32.xlu0 %v888_v4 }
 0x6ba   : > { %v890_v9 = vpop.xlane.xlu0 %889 }
 0x6bb   : > { %v891_v10 = vmul.f32 %v890_v9, %v884_v63 }
 0x6bd   : > { %v892_v12 = vadd.f32 1e-05, %v891_v10 }
 0x6bf   : > { %1216 = vrsqrt.f32 %v892_v12  ;;  %vm899_vm5 = vweird.f32 %v892_v12 }
 0x6c5   : > { %v1217_v13 = vpop.eup %1216 }
 0x6c6   : > { %v894_v14 = vmul.f32 %v1217_v13, %v892_v12  ;;  %vm900_vm4 = vweird.f32 %v1217_v13 }
 0x6c7   : > { %vm901_vm6 = vmor %vm899_vm5, %vm900_vm4 }
 0x6c8   : > { %v895_v15 = vmul.f32 %v1217_v13, %v894_v14 }
 0x6ca   : > { %v896_v16 = vmul.f32 0.5, %v895_v15 }
 0x6cc   : > { %v897_v17 = vsub.f32 1.5, %v896_v16 }
 0x6ce   : > { %v898_v18 = vmul.f32 %v1217_v13, %v897_v17 }
 0x6d0   : > { %v902_v20 = vsel %vm901_vm6, %v1217_v13, %v898_v18 }
 0x6d1   : > { %v903_v22 = vmul.f32 %v902_v20, %v886_v2 }
 0x6d3   : > { %v907_v23 = vmul.f32 %v1192_v19, %v903_v22 }
 0x6d5   : > { %v911_v25 = vadd.f32 %v1193_v21, %v907_v23 }
 0x6d7   : > { %v912_v26 = vpack.c.bf16 %v911_v25, %v911_v25 }
 0x6d9   : > { %1141 = vmatmul.msk.bf16.vlgmr.msrb.gmra.mxu0 %vm527_vm0, %v912_v26 }
 0x756   : > { %v945_v29 = vpop.f32.mrf.mxu0 }
 0x757   : > { %v946_v30 = vadd.f32 %v1194_v28, %v945_v29 }
 0x759   : > { %v949_v31 = vmax.f32 %v946_v30, 0.0 }
 0x75b   : > { %v950_v32 = vpack.c.bf16 %v949_v31, %v949_v31 }
 0x75d   : > { %1158 = vmatmul.msk.bf16.vlgmr.msrb.gmra.mxu1 %vm987_vm7, %v950_v32 }
 0x75e   : > { %v947_v33 = vpop.f32.mrf.mxu0 }
 0x7da   : > { %v1000_v35 = vpop.f32.mrf.mxu1 }
 0x7db   : > { %v1001_v36 = vadd.f32 %v1195_v34, %v1000_v35 }
 0x7dd   : > { %v1004_v37 = vadd.f32 %v1001_v36, %v911_v25 }
 0x7df   : > { %v1007_v8 = vsel %vm527_vm0, %v1004_v37, 0.0 }
 0x7e0   : > { %1008 = vadd.xlane.f32.xlu1 %v1007_v8 }
 0x7e2   : > { %v1002_v38 = vpop.f32.mrf.mxu1 }
 0x853   : > { %v1009_v39 = vpop.xlane.xlu1 %1008 }
 0x854   : > { %v1010_v40 = vmul.f32 %v1009_v39, %v884_v63 }
 0x856   : > { %v1011_v41 = vsub.f32 %v1004_v37, %v1010_v40 }
 0x858   : > { %v1012_v42 = vmul.f32 %v1011_v41, %v1011_v41 }
 0x85a   : > { %v1013_v43 = vsel %vm527_vm0, %v1012_v42, 0.0 }
 0x85b   : > { %1014 = vadd.xlane.f32.xlu1 %v1013_v43 }
 0x8ce   : > { %v1015_v44 = vpop.xlane.xlu1 %1014 }
 0x8cf   : > { %v1016_v45 = vmul.f32 %v1015_v44, %v884_v63 }
 0x8d1   : > { %v1017_v46 = vadd.f32 1e-05, %v1016_v45 }
 0x8d3   : > { %1218 = vrsqrt.f32 %v1017_v46  ;;  %vm1024_vm9 = vweird.f32 %v1017_v46 }
 0x8d9   : > { %v1219_v47 = vpop.eup %1218 }
 0x8da   : > { %v1019_v48 = vmul.f32 %v1219_v47, %v1017_v46  ;;  %vm1025_vm8 = vweird.f32 %v1219_v47 }
 0x8db   : > { %vm1026_vm10 = vmor %vm1024_vm9, %vm1025_vm8 }
 0x8dc   : > { %v1020_v49 = vmul.f32 %v1219_v47, %v1019_v48 }
 0x8de   : > { %v1021_v50 = vmul.f32 0.5, %v1020_v49 }
 0x8e0   : > { %v1022_v51 = vsub.f32 1.5, %v1021_v50 }
 0x8e2   : > { %v1023_v52 = vmul.f32 %v1219_v47, %v1022_v51 }
 0x8e4   : > { %v1027_v54 = vsel %vm1026_vm10, %v1219_v47, %v1023_v52 }
 0x8e5   : > { %v1028_v56 = vmul.f32 %v1027_v54, %v1011_v41 }
 0x8e7   : > { %v1032_v57 = vmul.f32 %v1196_v53, %v1028_v56 }
 0x8e9   : > { %v1036_v58 = vadd.f32 %v1197_v55, %v1032_v57 }
 0x8eb   : > { %v1037_v59 = vpack.c.bf16 %v1036_v58, %v1036_v58 }
 0x8ed   : > { %1039 = vst.msk [vmem:[%s503_s23] sm:$0xf] %vm1038_vm11, %v1037_v59 }
 0x8ee PF: > { %s25_s18 = sadd.s32 1, %s1226_s18  }
 0x8ef   : > { %p22_p4 = scmp.ge.s32.totalorder %s25_s18, 4  }
 0x8f1   :  { %24 = sbr.rel (!%p22_p4) target bundleno = 1 (0x1), region = 116 }

// kernel: seq2seq_transformer_forward.12
= control target key start
LH: loop header
LB: loop body
LE: loop exit
PB: predicated region body
PF: predicated region fallthrough
CT: control target
= control target key end

     0   :  { %s1457_s24 = smov 0   ;;  %s1618_s0 = inlined_call_operand.vmem [shape: bf16[2,6,32], index: 0, kind: input, shape index: {}]   ;;  %s1619_s1 = inlined_call_operand.vmem [shape: bf16[2,8,32], index: 1, kind: input, shape index: {}]   ;;  %s1620_s2 = inlined_call_operand.vmem [shape: f32[2,1,8], index: 2, kind: input, shape index: {}]   ;;  %s1621_s3 = inlined_call_operand.vmem [shape: bf16[32,32], index: 3, kind: input, shape index: {}]   ;;  %s1622_s4 = inlined_call_operand.vmem [shape: f32[1,32], index: 4, kind: input, shape index: {}]   ;;  %s1623_s5 = inlined_call_operand.vmem [shape: bf16[32,64], index: 5, kind: input, shape index: {}]   ;;  %s1624_s6 = inlined_call_operand.vmem [shape: f32[1,64], index: 6, kind: input, shape index: {}]   ;;  %s1625_s7 = inlined_call_operand.vmem [shape: bf16[4,8,32], index: 7, kind: input, shape index: {}]   ;;  %s1626_s8 = inlined_call_operand.vmem [shape: f32[1,32], index: 8, kind: input, shape index: {}]   ;;  %s1627_s9 = inlined_call_operand.vmem [shape: f32[1,32], index: 9, kind: input, shape index: {}]   ;;  %s1628_s10 = inlined_call_operand.vmem [shape: f32[1,32], index: 10, kind: input, shape index: {}]   ;;  %s1629_s11 = inlined_call_operand.vmem [shape: bf16[32,64], index: 11, kind: input, shape index: {}]   ;;  %s1630_s12 = inlined_call_operand.vmem [shape: f32[1,64], index: 12, kind: input, shape index: {}]   ;;  %s1631_s13 = inlined_call_operand.vmem [shape: bf16[64,32], index: 13, kind: input, shape index: {}]   ;;  %s1632_s14 = inlined_call_operand.vmem [shape: f32[1,32], index: 14, kind: input, shape index: {}]   ;;  %s1633_s15 = inlined_call_operand.vmem [shape: f32[1,32], index: 15, kind: input, shape index: {}]   ;;  %s1634_s16 = inlined_call_operand.vmem [shape: f32[1,32], index: 16, kind: input, shape index: {}]   ;;  %s1635_s17 = inlined_call_operand.vmem [shape: bf16[2,6,32], index: 17, kind: output, shape index: {}]  }
   0x1   :  { %1636 = sst [smem:[#allocation2_spill]] %s1618_s0 }
   0x2   :  { %1637 = sst [smem:[#allocation3_spill]] %s1619_s1 }
   0x3 LB: > { %s1224_s25 = sadd.s32 4294967295, %s1357_s24   ;;  %p1228_p0 = scmp.ge.s32.totalorder %s1357_s24, 1  ;;  %s1357_s24 = sphi %s1457_s24, %s27_s24  }
   0x4   : > { %p503_p1 = scmp.lt.s32.totalorder %s1357_s24, 3 }
   0x6   : > { %p504_p2 = pnand %p1228_p0, %p503_p1 }
   0x7   : > { %p560_p3 = scmp.lt.s32.totalorder (!%p504_p2), %s1224_s25, 1  ;;  %s1638_s27 = sld [smem:[#allocation2_spill]] (!%p504_p2) }
   0x8   : > { %507 = sbr.rel (%p504_p2) target bundleno = 2166 (0x876), region = 88  ;;  %s1639_s30 = sld [smem:[#allocation3_spill]] (!%p504_p2) }
   0x9   : > { %s1359_s26 = smov (!%p504_p2), 96   ;;  %s1362_s29 = smov (!%p504_p2), 112  }
   0xa   : > { %s1365_s20 = smov (!%p504_p2), 72  }
   0xd   : > { %v1294_v0 = vld [vmem:[%s1621_s3 + $0x8] sm:$0xff]  ;;  %v1293_v2 = vld [vmem:[%s1621_s3] sm:$0xff]  ;;  %s1641_s25 = smov (!%p560_p3, %s1224_s25), 1  ;;  %vm599_vm0 = vcmask 261120   ;;  %vm658_vm1 = vcmask 64512   ;;  %vm699_vm2 = vcmask 1043456  }
   0xe   : > { %v1296_v1 = vld [vmem:[%s1623_s5 + $0x8] sm:$0xff]  ;;  %609 = vmatpush.bf16.msra.mxu0 %v1294_v0  ;;  %v1295_v3 = vld [vmem:[%s1623_s5] sm:$0xff]  ;;  %s1480_s1 = sshll.u32 %s1641_s25, 2  ;;  %s570_s22 = scalar_lea.vmem %s1620_s2, %s1641_s25  ;;  %vm678_vm3 = vcmask 62464   ;;  %vm984_vm4 = vcmask 259072   ;;  %vm1097_vm9 = vcmask 523264  }
   0xf   : > { %645 = vmatpush.bf16.msra.mxu1 %v1296_v1  ;;  %s563_s28 = scalar_lea.vmem %s1638_s27, %s1480_s1  ;;  %s567_s18 = scalar_lea.vmem %s1639_s30, %s1480_s1  ;;  %v1319_v6 = vld [vmem:[%s1622_s4] ss:$0 sm:$0xff]  ;;  %vm1148_vm13 = vcmask 256000  }
  0x10   : > { %v1490_v4 = vld [vmem:[%s563_s28] sm:$0x7]  ;;  %s1360_s27 = smov 120   ;;  %s1361_s28 = smov 104  }
  0x11   : > { %v577_v5 = vld [vmem:[%s567_s18] sm:$0xf]  ;;  %s1363_s25 = smov 88   ;;  %s574_s18 = scalar_lea.vmem %s1635_s17, %s1480_s1 }
  0x12   : > { %610 = vmatpush.bf16.msra.mxu0 %v1293_v2  ;;  %v1320_v7 = vld [vmem:[%s1624_s6] ss:$0 sm:$0xff] }
  0x13   : > { %646 = vmatpush.bf16.msra.mxu1 %v1295_v3  ;;  %v717_v21 = vld [vmem:[%s1625_s7] sm:$0xf] }
  0x14   : > { %v803_v22 = vsel %vm699_vm2, %v717_v21, 0  ;;  %v1321_v30 = vld [vmem:[%s570_s22] ss:$0 sm:$0xff]  ;;  %s1364_s22 = smov 80  }
  0x15   : > { %1240 = vmatmul.msk.bf16.vlgmr.msra.gmra.mxu0 %vm599_vm0, %v1490_v4 }
  0x16   : > { %1249 = vmatmul.msk.bf16.vlgmr.msra.gmra.mxu1 %vm599_vm0, %v577_v5 }
  0x92   : > { %v612_v8 = vpop.f32.mrf.mxu0 }
  0x93   : > { %v648_v9 = vpop.f32.mrf.mxu1  ;;  %v613_v10 = vadd.f32 %v1319_v6, %v612_v8 }
  0x94   : > { %v649_v11 = vadd.f32 %v1320_v7, %v648_v9 }
  0x95   : > { %v653_v12 = vpack.c.bf16 %v613_v10, %v613_v10 }
  0x96   : > { %v654_v13 = vpack.c.bf16 %v649_v11, %v649_v11 }
  0x97   : > { %v719_v14 = vunpack.c.l.b16 %v653_v12 }
  0x98   : > { %v692_v15 = vunpack.c.l.b16 %v654_v13  ;;  %v663_v16 = vsel %vm658_vm1, %v654_v13, 0 }
  0x99   : > { %672 = vmatpush.bf16.xpose.msra.mxu2 %v663_v16  ;;  %v720_v17 = vpack.c.b16 %v719_v14, %v719_v14 }
  0x9a   : > { %v1506_v18 = vpack.c.b16 %v692_v15, %v692_v15  ;;  %v614_v19 = vpop.f32.mrf.mxu0 }
  0x9b   : > { %v650_v20 = vpop.f32.mrf.mxu1  ;;  %721 = vrot.lane.b32.xlu2 %v720_v17, %s1360_s27 }
  0x9c   : > { %694 = vrot.lane.b32.xlu1 %v1506_v18, %s1359_s26 }
  0xa0   : > { %1250 = vmatmul.msk.bf16.vlgmr.msra.gmra.mxu2 %vm658_vm1, %v653_v12 }
  0xa1   : > { %812 = vmatpush.bf16.msrb.mxu2 %v803_v22 }
  0xa3   : > { %899 = vrot.lane.b32.xlu2 %v1506_v18, %s1361_s28 }
  0xa4   : > { %723 = vrot.lane.b32.xlu1 %v1506_v18, %s1360_s27 }
  0xab   : > { %818 = vrot.lane.b32.xlu2 %v720_v17, %s1362_s29 }
  0xac   : > { %897 = vrot.lane.b32.xlu1 %v720_v17, %s1361_s28 }
  0xf5   : > { %v722_v23 = vpop.permute.xlu2 %721 }
  0xfd   : > { %v900_v24 = vpop.permute.xlu2 %899 }
  0xfe   : > { %v905_v25 = vsel %vm658_vm1, %v900_v24, 0 }
  0xff   : > { %914 = vmatpush.bf16.xpose.msra.mxu2 %v905_v25 }
 0x105   : > { %v819_v46 = vpop.permute.xlu2 %818 }
 0x10e   : > { %v695_v26 = vpop.permute.xlu1 %694 }
 0x10f   : > { %v701_v27 = vsel %vm699_vm2, %v695_v26, 0 }
 0x110   : > { %710 = vmatpush.bf16.msra.mxu3 %v701_v27 }
 0x116   : > { %v724_v28 = vpop.permute.xlu1 %723 }
 0x117   : > { %v729_v29 = vsel %vm658_vm1, %v724_v28, 0 }
 0x118   : > { %738 = vmatpush.bf16.xpose.msrb.mxu3 %v729_v29 }
 0x11e   : > { %v898_v52 = vpop.permute.xlu1 %897 }
 0x123   : > { %v674_v31 = vpop.f32.mrf.mxu2 }
 0x124   : > { %v675_v32 = vadd.f32 %v1321_v30, %v674_v31 }
 0x126   : > { %v679_v33 = vsel %vm678_vm3, %v675_v32, -inf }
 0x127   : > { %680 = vmax.xlane.f32.xlu0 %v679_v33 }
 0x12b   : > { %v676_v34 = vpop.f32.mrf.mxu2 }
 0x19a   : > { %v681_v35 = vpop.xlane.xlu0 %680 }
 0x19b   : > { %v682_v36 = vsub.f32 %v675_v32, %v681_v35  ;;  %v1259_v32 = vld [vmem:[%s1625_s7 + $0x8] sm:$0xf] }
 0x19c   : > { %v881_v34 = vsel %vm699_vm2, %v1259_v32, 0 }
 0x19d   : > { %v683_v37 = vmul.f32 1.442695, %v682_v36 }
 0x19f   : > { %1329 = vpow2.f32 %v683_v37 }
 0x1a5   : > { %v1330_v38 = vpop.eup %1329 }
 0x1a6   : > { %v685_v39 = vsel %vm678_vm3, %v1330_v38, 0.0 }
 0x1a7   : > { %686 = vadd.xlane.f32.xlu0 %v685_v39 }
 0x1bb   : > { %820 = vrot.lane.b32.xlu0 %v1506_v18, %s1362_s29 }
 0x21a   : > { %v687_v40 = vpop.xlane.xlu0 %686 }
 0x21b   : > { %1331 = vrcp.f32 %v687_v40 }
 0x221   : > { %v1332_v41 = vpop.eup %1331 }
 0x222   : > { %v689_v42 = vmul.f32 %v1332_v41, %v1330_v38 }
 0x224   : > { %v690_v43 = vpack.c.bf16 %v689_v42, %v689_v42 }
 0x226   : > { %1251 = vmatmul.msk.bf16.vlgmr.msra.gmra.mxu3 %vm658_vm1, %v690_v43 }
 0x22d   : > { %v821_v44 = vpop.permute.xlu0 %820 }
 0x22e   : > { %v826_v45 = vsel %vm658_vm1, %v821_v44, 0 }
 0x22f   : > { %835 = vmatpush.bf16.xpose.msra.mxu3 %v826_v45  ;;  %v1263_v45 = vld [vmem:[%s1625_s7 + $0xc] sm:$0xf] }
 0x236   : > { %1252 = vmatmul.msk.bf16.vlgmr.msrb.gmra.mxu3 %vm658_vm1, %v722_v23 }
 0x246   : > { %1257 = vmatmul.msk.bf16.vlgmr.msra.gmra.mxu3 %vm658_vm1, %v819_v46  ;;  %v960_v46 = vsel %vm699_vm2, %v1263_v45, 0 }
 0x2a9   : > { %v712_v47 = vpop.f32.mrf.mxu3 }
 0x2aa   : > { %v716_v48 = vpack.c.bf16 %v712_v47, %v712_v47 }
 0x2ac   : > { %1256 = vmatmul.msk.bf16.vlgmr.msrb.gmra.mxu2 %vm658_vm1, %v716_v48 }
 0x2b1   : > { %v714_v49 = vpop.f32.mrf.mxu3 }
 0x2b9   : > { %v740_v50 = vpop.f32.mrf.mxu3 }
 0x2ba   : > { %v741_v51 = vadd.f32 %v1321_v30, %v740_v50 }
 0x2bc   : > { %1261 = vmatmul.msk.bf16.vlgmr.msra.gmra.mxu2 %vm658_vm1, %v898_v52  ;;  %v744_v53 = vsel %vm678_vm3, %v741_v51, -inf }
 0x2bd   : > { %745 = vmax.xlane.f32.xlu1 %v744_v53 }
 0x2c1   : > { %v742_v54 = vpop.f32.mrf.mxu3 }
 0x2c9   : > { %v837_v55 = vpop.f32.mrf.mxu3 }
 0x2ca   : > { %v838_v56 = vadd.f32 %v1321_v30, %v837_v55 }
 0x2cc   : > { %v841_v57 = vsel %vm678_vm3, %v838_v56, -inf }
 0x2cd   : > { %842 = vmax.xlane.f32.xlu0 %v841_v57 }
 0x2d1   : > { %v839_v58 = vpop.f32.mrf.mxu3 }
 0x2d2   : > { %v578_v58 = vunpack.c.l.bf16 %v1490_v4 }
 0x2d6   : > { %756 = vrot.lane.b32.xlu1 %v1506_v18, %s1363_s25 }
 0x32f   : > { %v1536_v59 = vpop.f32.mrf.mxu2 }
 0x330   : > { %v746_v60 = vpop.xlane.xlu1 %745 }
 0x331   : > { %v747_v62 = vsub.f32 %v741_v51, %v746_v60 }
 0x333   : > { %v748_v63 = vmul.f32 1.442695, %v747_v62 }
 0x335   : > { %1333 = vpow2.f32 %v748_v63 }
 0x337   : > { %v816_v61 = vpop.f32.mrf.mxu2 }
 0x33b   : > { %v1334_v7 = vpop.eup %1333 }
 0x33c   : > { %v750_v11 = vsel %vm678_vm3, %v1334_v7, 0.0 }
 0x33f   : > { %v916_v0 = vpop.f32.mrf.mxu2 }
 0x340   : > { %v917_v1 = vadd.f32 %v1321_v30, %v916_v0  ;;  %v843_v2 = vpop.xlane.xlu0 %842  ;;  %v1254_v30 = vld [vmem:[%s1625_s7 + $0x4] sm:$0xf] }
 0x341   : > { %v844_v3 = vsub.f32 %v838_v56, %v843_v2  ;;  %v784_v31 = vsel %vm699_vm2, %v1254_v30, 0  ;;  %v1322_v56 = vld [vmem:[%s1626_s8] ss:$0 sm:$0xff] }
 0x342   : > { %v920_v5 = vsel %vm678_vm3, %v917_v1, -inf  ;;  %793 = vmatpush.bf16.msrb.mxu1 %v784_v31 }
 0x343   : > { %v845_v6 = vmul.f32 1.442695, %v844_v3  ;;  %921 = vmax.xlane.f32.xlu2 %v920_v5 }
 0x345   : > { %1335 = vpow2.f32 %v845_v6 }
 0x346   : > { %890 = vmatpush.bf16.msra.mxu1 %v881_v34  ;;  %v1299_v34 = vld [vmem:[%s1631_s13] sm:$0xff] }
 0x347   : > { %v918_v8 = vpop.f32.mrf.mxu2 }
 0x348   : > { %v757_v9 = vpop.permute.xlu1 %756 }
 0x349   : > { %v762_v10 = vsel %vm699_vm2, %v757_v9, 0 }
 0x34a   : > { %771 = vmatpush.bf16.msrb.mxu0 %v762_v10 }
 0x34b   : > { %v1336_v12 = vpop.eup %1335  ;;  %751 = vadd.xlane.f32.xlu2 %v750_v11 }
 0x34c   : > { %v847_v13 = vsel %vm678_vm3, %v1336_v12, 0.0 }
 0x34d   : > { %848 = vadd.xlane.f32.xlu0 %v847_v13  ;;  %v1297_v13 = vld [vmem:[%s1629_s11] sm:$0xff] }
 0x361   : > { %853 = vrot.lane.b32.xlu0 %v1506_v18, %s1364_s22 }
 0x3b6   : > { %v922_v14 = vpop.xlane.xlu2 %921 }
 0x3b7   : > { %v923_v15 = vsub.f32 %v917_v1, %v922_v14  ;;  %v1366_v1 = vmov 32.0   ;;  %v1302_v14 = vld [vmem:[%s1631_s13 + $0x18] sm:$0xff] }
 0x3b8   : > { %1105 = vmatpush.bf16.msrb.mxu2 %v1302_v14 }
 0x3b9   : > { %v924_v16 = vmul.f32 1.442695, %v923_v15 }
 0x3bb   : > { %1337 = vpow2.f32 %v924_v16 }
 0x3be   : > { %v752_v17 = vpop.xlane.xlu2 %751 }
 0x3bf   : > { %1339 = vrcp.f32 %v752_v17  ;;  %v1301_v17 = vld [vmem:[%s1631_s13 + $0x10] sm:$0xff] }
 0x3c0   : > { %v849_v23 = vpop.xlane.xlu0 %848  ;;  %1106 = vmatpush.bf16.msrb.mxu2 %v1301_v17 }
 0x3c1   : > { %v1338_v19 = vpop.eup %1337  ;;  %1341 = vrcp.f32 %v849_v23 }
 0x3c2   : > { %v926_v20 = vsel %vm678_vm3, %v1338_v19, 0.0 }
 0x3c3   : > { %927 = vadd.xlane.f32.xlu2 %v926_v20 }
 0x3c5   : > { %v1340_v21 = vpop.eup %1339 }
 0x3c6   : > { %v754_v22 = vmul.f32 %v1340_v21, %v1334_v7 }
 0x3c7   : > { %v1342_v25 = vpop.eup %1341 }
 0x3c8   : > { %v755_v24 = vpack.c.bf16 %v754_v22, %v754_v22  ;;  %v851_v27 = vmul.f32 %v1342_v25, %v1336_v12  ;;  %v1298_v12 = vld [vmem:[%s1629_s11 + $0x8] sm:$0xff] }
 0x3ca   : > { %1253 = vmatmul.msk.bf16.vlgmr.msrb.gmra.mxu0 %vm658_vm1, %v755_v24  ;;  %v852_v29 = vpack.c.bf16 %v851_v27, %v851_v27 }
 0x3d3   : > { %v854_v26 = vpop.permute.xlu0 %853 }
 0x3d4   : > { %v859_v28 = vsel %vm699_vm2, %v854_v26, 0  ;;  %v1323_v26 = vld [vmem:[%s1627_s9] ss:$0 sm:$0xff] }
 0x3d5   : > { %868 = vmatpush.bf16.msra.mxu0 %v859_v28  ;;  %v1324_v28 = vld [vmem:[%s1628_s10] ss:$0 sm:$0xff] }
 0x3d9   : > { %969 = vmatpush.bf16.msrb.mxu0 %v960_v46 }
 0x3da   : > { %1258 = vmatmul.msk.bf16.vlgmr.msra.gmra.mxu0 %vm658_vm1, %v852_v29 }
 0x3db   : > { %932 = vrot.lane.b32.xlu2 %v1506_v18, %s1365_s20 }
 0x436   : > { %v928_v33 = vpop.xlane.xlu2 %927 }
 0x437   : > { %1343 = vrcp.f32 %v928_v33  ;;  %v1300_v33 = vld [vmem:[%s1631_s13 + $0x8] sm:$0xff] }
 0x438   : > { %1345 = vrcp.f32 %v1366_v1  ;;  %1107 = vmatpush.bf16.msrb.mxu2 %v1300_v33 }
 0x43c   : > { %1108 = vmatpush.bf16.msrb.mxu2 %v1299_v34 }
 0x43d   : > { %v1344_v35 = vpop.eup %1343 }
 0x43e   : > { %v930_v36 = vmul.f32 %v1344_v35, %v1338_v19  ;;  %v933_v37 = vpop.permute.xlu2 %932  ;;  %v1325_v35 = vld [vmem:[%s1630_s12] ss:$0 sm:$0xff] }
 0x43f   : > { %v938_v18 = vsel %vm699_vm2, %v933_v37, 0 }
 0x440   : > { %v931_v38 = vpack.c.bf16 %v930_v36, %v930_v36  ;;  %947 = vmatpush.bf16.msrb.mxu3 %v938_v18 }
 0x443   : > { %1262 = vmatmul.msk.bf16.vlgmr.msrb.gmra.mxu3 %vm658_vm1, %v931_v38 }
 0x447   : > { %v773_v39 = vpop.f32.mrf.mxu0 }
 0x448   : > { %v777_v40 = vpack.c.bf16 %v773_v39, %v773_v39 }
 0x44a   : > { %1255 = vmatmul.msk.bf16.vlgmr.msrb.gmra.mxu1 %vm658_vm1, %v777_v40  ;;  %v1326_v40 = vld [vmem:[%s1632_s14] ss:$0 sm:$0xff] }
 0x44b   : > { %1052 = vmatpush.bf16.msrb.mxu1 %v1298_v12 }
 0x44f   : > { %v775_v41 = vpop.f32.mrf.mxu0  ;;  %1053 = vmatpush.bf16.msrb.mxu1 %v1297_v13 }
 0x457   : > { %v870_v42 = vpop.f32.mrf.mxu0 }
 0x458   : > { %v874_v43 = vpack.c.bf16 %v870_v42, %v870_v42 }
 0x45a   : > { %1260 = vmatmul.msk.bf16.vlgmr.msra.gmra.mxu1 %vm658_vm1, %v874_v43 }
 0x45f   : > { %v872_v44 = vpop.f32.mrf.mxu0 }
 0x4c6   : > { %v949_v47 = vpop.f32.mrf.mxu3 }
 0x4c7   : > { %v953_v48 = vpack.c.bf16 %v949_v47, %v949_v47  ;;  %v795_v49 = vpop.f32.mrf.mxu1 }
 0x4c8   : > { %v815_v52 = vadd.f32 %v1536_v59, %v795_v49  ;;  %v1346_v59 = vpop.eup %1345 }
 0x4c9   : > { %1264 = vmatmul.msk.bf16.vlgmr.msrb.gmra.mxu0 %vm658_vm1, %v953_v48  ;;  %v989_v2 = vmul.f32 32.0, %v1346_v59  ;;  %vm993_vm5 = vweird.f32 %v1346_v59 }
 0x4cb   : > { %v990_v3 = vsub.f32 1.0, %v989_v2 }
 0x4cd   : > { %v991_v5 = vmul.f32 %v1346_v59, %v990_v3 }
 0x4ce   : > { %v951_v50 = vpop.f32.mrf.mxu3 }
 0x4cf   : > { %v797_v51 = vpop.f32.mrf.mxu1  ;;  %v992_v6 = vadd.f32 %v1346_v59, %v991_v5 }
 0x4d1   : > { %v994_v7 = vsel %vm993_vm5, %v1346_v59, %v992_v6 }
 0x4d7   : > { %v892_v53 = vpop.f32.mrf.mxu1 }
 0x4d8   : > { %v896_v54 = vadd.f32 %v892_v53, %v815_v52 }
 0x4df   : > { %v894_v55 = vpop.f32.mrf.mxu1 }
 0x546   : > { %v971_v57 = vpop.f32.mrf.mxu0 }
 0x547   : > { %v975_v60 = vadd.f32 %v971_v57, %v896_v54 }
 0x549   : > { %v980_v61 = vadd.f32 %v1322_v56, %v975_v60 }
 0x54b   : > { %v981_v62 = vadd.f32 %v980_v61, %v578_v58  ;;  %v1327_v61 = vld [vmem:[%s1633_s15] ss:$0 sm:$0xff] }
 0x54d   : > { %v985_v63 = vsel %vm984_vm4, %v981_v62, 0.0 }
 0x54e   : > { %v973_v0 = vpop.f32.mrf.mxu0  ;;  %986 = vadd.xlane.f32.xlu1 %v985_v63  ;;  %v1328_v63 = vld [vmem:[%s1634_s16] ss:$0 sm:$0xff] }
 0x5c1   : > { %v987_v8 = vpop.xlane.xlu1 %986 }
 0x5c2   : > { %v995_v9 = vmul.f32 %v994_v7, %v987_v8 }
 0x5c4   : > { %v996_v4 = vsub.f32 %v981_v62, %v995_v9 }
 0x5c6   : > { %v997_v10 = vmul.f32 %v996_v4, %v996_v4 }
 0x5c8   : > { %v998_v11 = vsel %vm984_vm4, %v997_v10, 0.0 }
 0x5c9   : > { %999 = vadd.xlane.f32.xlu2 %v998_v11 }
 0x63c   : > { %v1000_v15 = vpop.xlane.xlu2 %999 }
 0x63d   : > { %v1001_v16 = vmul.f32 %v1000_v15, %v994_v7 }
 0x63f   : > { %v1002_v19 = vadd.f32 1e-05, %v1001_v16 }
 0x641   : > { %1347 = vrsqrt.f32 %v1002_v19  ;;  %vm1009_vm7 = vweird.f32 %v1002_v19 }
 0x647   : > { %v1348_v20 = vpop.eup %1347 }
 0x648   : > { %v1004_v21 = vmul.f32 %v1348_v20, %v1002_v19  ;;  %vm1010_vm6 = vweird.f32 %v1348_v20 }
 0x649   : > { %vm1011_vm8 = vmor %vm1009_vm7, %vm1010_vm6 }
 0x64a   : > { %v1005_v22 = vmul.f32 %v1348_v20, %v1004_v21 }
 0x64c   : > { %v1006_v23 = vmul.f32 0.5, %v1005_v22 }
 0x64e   : > { %v1007_v24 = vsub.f32 1.5, %v1006_v23 }
 0x650   : > { %v1008_v25 = vmul.f32 %v1348_v20, %v1007_v24 }
 0x652   : > { %v1012_v27 = vsel %vm1011_vm8, %v1348_v20, %v1008_v25 }
 0x653   : > { %v1013_v29 = vmul.f32 %v1012_v27, %v996_v4 }
 0x655   : > { %v1017_v30 = vmul.f32 %v1323_v26, %v1013_v29 }
 0x657   : > { %v1021_v31 = vadd.f32 %v1324_v28, %v1017_v30 }
 0x659   : > { %v1022_v32 = vpack.c.bf16 %v1021_v31, %v1021_v31 }
 0x65b   : > { %1273 = vmatmul.msk.bf16.vlgmr.msrb.gmra.mxu1 %vm599_vm0, %v1022_v32 }
 0x6d8   : > { %v1055_v36 = vpop.f32.mrf.mxu1 }
 0x6d9   : > { %v1056_v37 = vadd.f32 %v1325_v35, %v1055_v36 }
 0x6db   : > { %v1059_v18 = vmax.f32 %v1056_v37, 0.0 }
 0x6dd   : > { %v1060_v38 = vpack.c.bf16 %v1059_v18, %v1059_v18 }
 0x6df   : > { %1290 = vmatmul.msk.bf16.vlgmr.msrb.gmra.mxu2 %vm1097_vm9, %v1060_v38 }
 0x6e0   : > { %v1057_v39 = vpop.f32.mrf.mxu1 }
 0x762   : > { %v1110_v41 = vpop.f32.mrf.mxu2 }
 0x763   : > { %v1111_v42 = vadd.f32 %v1326_v40, %v1110_v41 }
 0x765   : > { %v1114_v43 = vadd.f32 %v1111_v42, %v1021_v31 }
 0x767   : > { %v1117_v44 = vsel %vm984_vm4, %v1114_v43, 0.0 }
 0x768   : > { %1118 = vadd.xlane.f32.xlu0 %v1117_v44 }
 0x76a   : > { %v1112_v45 = vpop.f32.mrf.mxu2 }
 0x7db   : > { %v1119_v46 = vpop.xlane.xlu0 %1118 }
 0x7dc   : > { %v1120_v47 = vmul.f32 %v1119_v46, %v994_v7 }
 0x7de   : > { %v1121_v48 = vsub.f32 %v1114_v43, %v1120_v47 }
 0x7e0   : > { %v1122_v49 = vmul.f32 %v1121_v48, %v1121_v48 }
 0x7e2   : > { %v1123_v50 = vsel %vm984_vm4, %v1122_v49, 0.0 }
 0x7e3   : > { %1124 = vadd.xlane.f32.xlu1 %v1123_v50 }
 0x856   : > { %v1125_v51 = vpop.xlane.xlu1 %1124 }
 0x857   : > { %v1126_v52 = vmul.f32 %v1125_v51, %v994_v7 }
 0x859   : > { %v1127_v53 = vadd.f32 1e-05, %v1126_v52 }
 0x85b   : > { %1349 = vrsqrt.f32 %v1127_v53  ;;  %vm1134_vm11 = vweird.f32 %v1127_v53 }
 0x861   : > { %v1350_v54 = vpop.eup %1349 }
 0x862   : > { %v1129_v55 = vmul.f32 %v1350_v54, %v1127_v53  ;;  %vm1135_vm10 = vweird.f32 %v1350_v54 }
 0x863   : > { %vm1136_vm12 = vmor %vm1134_vm11, %vm1135_vm10 }
 0x864   : > { %v1130_v56 = vmul.f32 %v1350_v54, %v1129_v55 }
 0x866   : > { %v1131_v57 = vmul.f32 0.5, %v1130_v56 }
 0x868   : > { %v1132_v58 = vsub.f32 1.5, %v1131_v57 }
 0x86a   : > { %v1133_v60 = vmul.f32 %v1350_v54, %v1132_v58 }
 0x86c   : > { %v1137_v62 = vsel %vm1136_vm12, %v1350_v54, %v1133_v60 }
 0x86d   : > { %v1138_v0 = vmul.f32 %v1137_v62, %v1121_v48 }
 0x86f   : > { %v1142_v1 = vmul.f32 %v1327_v61, %v1138_v0 }
 0x871   : > { %v1146_v59 = vadd.f32 %v1328_v63, %v1142_v1 }
 0x873   : > { %v1147_v2 = vpack.c.bf16 %v1146_v59, %v1146_v59 }
 0x875   : > { %1149 = vst.msk [vmem:[%s574_s18] sm:$0x7] %vm1148_vm13, %v1147_v2 }
 0x876 PF: > { %s27_s24 = sadd.s32 1, %s1357_s24  }
 0x877   : > { %p24_p4 = scmp.ge.s32.totalorder %s27_s24, 4  }
 0x879   :  { %26 = sbr.rel (!%p24_p4) target bundleno = 3 (0x3), region = 127 }

// kernel: seq2seq_transformer_forward.11
= control target key start
LH: loop header
LB: loop body
LE: loop exit
PB: predicated region body
PF: predicated region fallthrough
CT: control target
= control target key end

     0   :  { %s969_s30 = smov 0   ;;  %s1096_s0 = inlined_call_operand.vmem [shape: bf16[2,6,32], index: 0, kind: input, shape index: {}]   ;;  %s1097_s1 = inlined_call_operand.vmem [shape: f32[2,1,6], index: 1, kind: input, shape index: {}]   ;;  %s1098_s2 = inlined_call_operand.vmem [shape: f32[6,6], index: 2, kind: input, shape index: {}]   ;;  %s1099_s3 = inlined_call_operand.vmem [shape: bf16[32,96], index: 3, kind: input, shape index: {}]   ;;  %s1100_s4 = inlined_call_operand.vmem [shape: f32[1,96], index: 4, kind: input, shape index: {}]   ;;  %s1101_s5 = inlined_call_operand.vmem [shape: bf16[4,8,32], index: 5, kind: input, shape index: {}]   ;;  %s1102_s6 = inlined_call_operand.vmem [shape: f32[1,32], index: 6, kind: input, shape index: {}]   ;;  %s1103_s7 = inlined_call_operand.vmem [shape: f32[1,32], index: 7, kind: input, shape index: {}]   ;;  %s1104_s8 = inlined_call_operand.vmem [shape: f32[1,32], index: 8, kind: input, shape index: {}]   ;;  %s1105_s9 = inlined_call_operand.vmem [shape: bf16[2,6,32], index: 9, kind: output, shape index: {}]  }
   0x1 LB: > { %s819_s10 = sadd.s32 4294967295, %s905_s30   ;;  %p823_p0 = scmp.ge.s32.totalorder %s905_s30, 1  ;;  %s905_s30 = sphi %s969_s30, %s19_s30  }
   0x2   : > { %p294_p1 = scmp.lt.s32.totalorder %s905_s30, 3 }
   0x4   : > { %p295_p2 = pnand %p823_p0, %p294_p1 }
   0x5   : > { %p331_p3 = scmp.lt.s32.totalorder (!%p295_p2), %s819_s10, 1  ;;  %s907_s24 = smov (!%p295_p2), 88  }
   0x6   : > { %298 = sbr.rel (%p295_p2) target bundleno = 1754 (0x6da), region = 56  ;;  %s908_s25 = smov (!%p295_p2), 96  }
   0x7   : > { %s909_s26 = smov (!%p295_p2), 120   ;;  %s910_s27 = smov (!%p295_p2), 80  }
   0x8   : > { %s911_s28 = smov (!%p295_p2), 72   ;;  %s912_s29 = smov (!%p295_p2), 112  }
   0x9   : > { %s914_s19 = smov (!%p295_p2), 40   ;;  %s915_s20 = smov (!%p295_p2), 64  }
   0xb   : > { %v853_v0 = vld [vmem:[%s1099_s3 + $0x8] sm:$0xff]  ;;  %v852_v1 = vld [vmem:[%s1099_s3] sm:$0xff]  ;;  %s1107_s10 = smov (!%p331_p3, %s819_s10), 1  ;;  %vm365_vm0 = vcmask 261120   ;;  %vm394_vm1 = vcmask 64512   ;;  %vm514_vm2 = vcmask 1043456  }
   0xc   : > { %375 = vmatpush.bf16.msra.mxu0 %v853_v0  ;;  %s824_s15 = sshll.u32 %s1107_s10, 2  ;;  %s337_s18 = scalar_lea.vmem %s1097_s1, %s1107_s10  ;;  %v875_v3 = vld [vmem:[%s1100_s4] ss:$0 sm:$0xff]  ;;  %vm414_vm3 = vcmask 46080   ;;  %vm433_vm4 = vcmask 1042432   ;;  %vm429_vm5 = vcmask 48128  }
   0xd   : > { %s334_s21 = scalar_lea.vmem %s1096_s0, %s824_s15  ;;  %v451_v15 = vld [vmem:[%s1101_s5] sm:$0xf]  ;;  %v839_v62 = vld [vmem:[%s1101_s5 + $0x4] sm:$0xf]  ;;  %vm716_vm6 = vcmask 259072   ;;  %vm755_vm11 = vcmask 256000  }
   0xe   : > { %v995_v2 = vld [vmem:[%s334_s21] sm:$0x7]  ;;  %v535_v18 = vsel %vm514_vm2, %v451_v15, 0  ;;  %s916_s21 = smov 104   ;;  %v516_v63 = vsel %vm514_vm2, %v839_v62, 0 }
   0xf   : > { %v874_v22 = vld [vmem:[%s337_s18] ss:$0 sm:$0xff]  ;;  %s913_s18 = smov 56  }
  0x10   : > { %376 = vmatpush.bf16.msra.mxu0 %v852_v1  ;;  %v382_v23 = vld [vmem:[%s1098_s2] sm:$0x3f] }
  0x11   : > { %v1028_v24 = vadd.f32 %v874_v22, %v382_v23 }
  0x13   : > { %834 = vmatmul.msk.bf16.vlgmr.msra.gmra.mxu0 %vm365_vm0, %v995_v2 }
  0x14   : > { %525 = vmatpush.bf16.msrb.mxu0 %v516_v63 }
  0x90   : > { %v378_v4 = vpop.f32.mrf.mxu0 }
  0x91   : > { %v379_v5 = vadd.f32 %v875_v3, %v378_v4 }
  0x93   : > { %v388_v6 = vpack.c.bf16 %v379_v5, %v379_v5 }
  0x95   : > { %v390_v7 = vunpack.c.l.b16 %v388_v6 }
  0x97   : > { %v1001_v8 = vpack.c.b16 %v390_v7, %v390_v7 }
  0x98   : > { %v380_v9 = vpop.f32.mrf.mxu0 }
  0x99   : > { %454 = vrot.lane.b32.xlu2 %v1001_v8, %s907_s24  ;;  %392 = vrot.lane.b32.xlu0 %v1001_v8, %s908_s25  ;;  %s917_s24 = smov 48  }
  0xa1   : > { %452 = vrot.lane.b32.xlu2 %v1001_v8, %s909_s26 }
  0xa9   : > { %552 = vrot.lane.b32.xlu2 %v1001_v8, %s910_s27 }
  0xb1   : > { %631 = vrot.lane.b32.xlu2 %v1001_v8, %s911_s28 }
  0xb9   : > { %550 = vrot.lane.b32.xlu2 %v1001_v8, %s912_s29 }
  0xf3   : > { %v455_v10 = vpop.permute.xlu2 %454 }
  0xf4   : > { %v460_v11 = vsel %vm394_vm1, %v455_v10, 0 }
  0xf5   : > { %469 = vmatpush.bf16.xpose.msra.mxu3 %v460_v11 }
  0xfb   : > { %v453_v12 = vpop.permute.xlu2 %452 }
  0xfc   : > { %837 = vmatmul.msk.bf16.vlgmr.msra.gmra.mxu3 %vm394_vm1, %v453_v12 }
 0x103   : > { %v553_v13 = vpop.permute.xlu2 %552 }
 0x104   : > { %v558_v14 = vsel %vm394_vm1, %v553_v13, 0 }
 0x105   : > { %567 = vmatpush.bf16.xpose.msrb.mxu3 %v558_v14 }
 0x10b   : > { %v632_v16 = vpop.permute.xlu2 %631  ;;  %v393_v17 = vpop.permute.xlu0 %392 }
 0x10c   : > { %v399_v19 = vsel %vm394_vm1, %v393_v17, 0  ;;  %v637_v21 = vsel %vm394_vm1, %v632_v16, 0 }
 0x10d   : > { %408 = vmatpush.bf16.xpose.msra.mxu1 %v399_v19 }
 0x113   : > { %v551_v20 = vpop.permute.xlu2 %550 }
 0x114   : > { %835 = vmatmul.msk.bf16.vlgmr.msra.gmra.mxu1 %vm394_vm1, %v388_v6  ;;  %842 = vmatmul.msk.bf16.vlgmr.msrb.gmra.mxu3 %vm394_vm1, %v551_v20 }
 0x115   : > { %544 = vmatpush.bf16.msrb.mxu1 %v535_v18 }
 0x119   : > { %646 = vmatpush.bf16.xpose.msra.mxu1 %v637_v21 }
 0x17f   : > { %v471_v25 = vpop.f32.mrf.mxu3 }
 0x180   : > { %v472_v26 = vadd.f32 %v471_v25, %v1028_v24 }
 0x182   : > { %v475_v27 = vsel %vm414_vm3, %v472_v26, -inf }
 0x183   : > { %476 = vmax.xlane.f32.xlu2 %v475_v27 }
 0x187   : > { %v473_v28 = vpop.f32.mrf.mxu3 }
 0x191   : > { %v410_v29 = vpop.f32.mrf.mxu1 }
 0x192   : > { %v411_v30 = vadd.f32 %v410_v29, %v1028_v24 }
 0x194   : > { %v415_v31 = vsel %vm414_vm3, %v411_v30, -inf }
 0x195   : > { %416 = vmax.xlane.f32.xlu0 %v415_v31 }
 0x197   : > { %v569_v32 = vpop.f32.mrf.mxu3 }
 0x198   : > { %v1035_v33 = vadd.f32 %v569_v32, %v1028_v24 }
 0x199   : > { %v412_v34 = vpop.f32.mrf.mxu1 }
 0x19a   : > { %v573_v35 = vsel %vm414_vm3, %v1035_v33, -inf }
 0x19d   : > { %574 = vmax.xlane.f32.xlu0 %v573_v35 }
 0x19f   : > { %v571_v36 = vpop.f32.mrf.mxu3 }
 0x1f6   : > { %v477_v37 = vpop.xlane.xlu2 %476 }
 0x1f7   : > { %v478_v38 = vsub.f32 %v472_v26, %v477_v37 }
 0x1f9   : > { %v479_v39 = vmul.f32 1.442695, %v478_v38  ;;  %v844_v38 = vld [vmem:[%s1101_s5 + $0x8] sm:$0xf] }
 0x1fb   : > { %879 = vpow2.f32 %v479_v39  ;;  %v613_v39 = vsel %vm514_vm2, %v844_v38, 0 }
 0x1fc   : > { %622 = vmatpush.bf16.msra.mxu0 %v613_v39 }
 0x201   : > { %v880_v40 = vpop.eup %879 }
 0x202   : > { %v481_v41 = vsel %vm414_vm3, %v880_v40, 0.0 }
 0x203   : > { %482 = vadd.xlane.f32.xlu0 %v481_v41 }
 0x208   : > { %v417_v42 = vpop.xlane.xlu0 %416 }
 0x209   : > { %v418_v43 = vsub.f32 %v411_v30, %v417_v42  ;;  %v848_v30 = vld [vmem:[%s1101_s5 + $0xc] sm:$0xf] }
 0x20a   : > { %v692_v35 = vsel %vm514_vm2, %v848_v30, 0 }
 0x20b   : > { %v419_v44 = vmul.f32 1.442695, %v418_v43 }
 0x20d   : > { %881 = vpow2.f32 %v419_v44 }
 0x210   : > { %v575_v47 = vpop.xlane.xlu0 %574 }
 0x211   : > { %v576_v11 = vsub.f32 %v1035_v33, %v575_v47 }
 0x213   : > { %v882_v45 = vpop.eup %881  ;;  %v577_v12 = vmul.f32 1.442695, %v576_v11 }
 0x214   : > { %v421_v46 = vsel %vm414_vm3, %v882_v45, 0.0 }
 0x215   : > { %422 = vadd.xlane.f32.xlu1 %v421_v46 }
 0x217   : > { %487 = vrot.lane.b32.xlu0 %v1001_v8, %s913_s18 }
 0x21f   : > { %664 = vrot.lane.b32.xlu0 %v1001_v8, %s914_s19  ;;  %s341_s19 = scalar_lea.vmem %s1105_s9, %s824_s15 }
 0x22e   : > { %427 = vrot.lane.b32.xlu1 %v1001_v8, %s915_s20 }
 0x236   : > { %629 = vrot.lane.b32.xlu1 %v1001_v8, %s916_s21 }
 0x276   : > { %v483_v48 = vpop.xlane.xlu0 %482 }
 0x288   : > { %v423_v52 = vpop.xlane.xlu1 %422 }
 0x289   : > { %v488_v49 = vpop.permute.xlu0 %487  ;;  %883 = vrcp.f32 %v423_v52 }
 0x28a   : > { %v493_v57 = vsel %vm433_vm4, %v488_v49, 0  ;;  %885 = vrcp.f32 %v483_v48  ;;  %v876_v48 = vld [vmem:[%s1102_s6] ss:$0 sm:$0xff] }
 0x28b   : > { %887 = vpow2.f32 %v577_v12 }
 0x28f   : > { %v884_v53 = vpop.eup %883 }
 0x290   : > { %v425_v54 = vmul.f32 %v884_v53, %v882_v45  ;;  %v886_v59 = vpop.eup %885 }
 0x291   : > { %v665_v50 = vpop.permute.xlu0 %664  ;;  %v485_v60 = vmul.f32 %v886_v59, %v880_v40  ;;  %v888_v18 = vpop.eup %887 }
 0x292   : > { %v670_v51 = vsel %vm433_vm4, %v665_v50, 0  ;;  %v426_v58 = vpack.c.bf16 %v425_v54, %v425_v54  ;;  %v579_v21 = vsel %vm414_vm3, %v888_v18, 0.0  ;;  %v344_v50 = vunpack.c.l.bf16 %v995_v2 }
 0x293   : > { %679 = vmatpush.bf16.msra.mxu3 %v670_v51  ;;  %v486_v61 = vpack.c.bf16 %v485_v60, %v485_v60 }
 0x2a0   : > { %v428_v55 = vpop.permute.xlu1 %427 }
 0x2a1   : > { %v435_v56 = vsel %vm433_vm4, %v428_v55, 0 }
 0x2a2   : > { %444 = vmatpush.bf16.msra.mxu2 %v435_v56 }
 0x2a5   : > { %836 = vmatmul.msk.bf16.vlgmr.msra.gmra.mxu2 %vm429_vm5, %v426_v58 }
 0x2a6   : > { %502 = vmatpush.bf16.msrb.mxu2 %v493_v57  ;;  %v918_v57 = vmov 32.0  }
 0x2a8   : > { %v630_v6 = vpop.permute.xlu1 %629 }
 0x2b5   : > { %838 = vmatmul.msk.bf16.vlgmr.msrb.gmra.mxu2 %vm429_vm5, %v486_v61 }
 0x328   : > { %v446_v0 = vpop.f32.mrf.mxu2 }
 0x329   : > { %v450_v1 = vpack.c.bf16 %v446_v0, %v446_v0 }
 0x32b   : > { %841 = vmatmul.msk.bf16.vlgmr.msrb.gmra.mxu1 %vm394_vm1, %v450_v1 }
 0x330   : > { %v448_v3 = vpop.f32.mrf.mxu2 }
 0x338   : > { %v504_v4 = vpop.f32.mrf.mxu2 }
 0x339   : > { %v508_v5 = vpack.c.bf16 %v504_v4, %v504_v4 }
 0x33b   : > { %840 = vmatmul.msk.bf16.vlgmr.msrb.gmra.mxu0 %vm394_vm1, %v508_v5  ;;  %846 = vmatmul.msk.bf16.vlgmr.msra.gmra.mxu1 %vm394_vm1, %v630_v6 }
 0x340   : > { %v506_v7 = vpop.f32.mrf.mxu2 }
 0x3a8   : > { %v546_v9 = vpop.f32.mrf.mxu1 }
 0x3b0   : > { %v548_v10 = vpop.f32.mrf.mxu1 }
 0x3b8   : > { %v527_v13 = vpop.f32.mrf.mxu0  ;;  %v648_v14 = vpop.f32.mrf.mxu1 }
 0x3b9   : > { %v547_v15 = vadd.f32 %v546_v9, %v527_v13  ;;  %v649_v16 = vadd.f32 %v648_v14, %v1028_v24 }
 0x3bb   : > { %v652_v17 = vsel %vm414_vm3, %v649_v16, -inf }
 0x3bc   : > { %653 = vmax.xlane.f32.xlu1 %v652_v17  ;;  %v878_v17 = vld [vmem:[%s1104_s8] ss:$0 sm:$0xff] }
 0x3c0   : > { %v529_v19 = vpop.f32.mrf.mxu0  ;;  %v650_v20 = vpop.f32.mrf.mxu1 }
 0x3c4   : > { %580 = vadd.xlane.f32.xlu1 %v579_v21 }
 0x42f   : > { %v654_v22 = vpop.xlane.xlu1 %653 }
 0x430   : > { %v655_v23 = vsub.f32 %v649_v16, %v654_v22 }
 0x432   : > { %v656_v25 = vmul.f32 1.442695, %v655_v23 }
 0x434   : > { %889 = vpow2.f32 %v656_v25 }
 0x437   : > { %v581_v24 = vpop.xlane.xlu1 %580 }
 0x438   : > { %891 = vrcp.f32 %v581_v24 }
 0x43a   : > { %v890_v26 = vpop.eup %889 }
 0x43b   : > { %v658_v27 = vsel %vm414_vm3, %v890_v26, 0.0 }
 0x43c   : > { %659 = vadd.xlane.f32.xlu2 %v658_v27 }
 0x43e   : > { %v892_v29 = vpop.eup %891 }
 0x43f   : > { %v583_v32 = vmul.f32 %v892_v29, %v888_v18 }
 0x454   : > { %585 = vrot.lane.b32.xlu2 %v1001_v8, %s917_s24  ;;  %v584_v8 = vpack.c.bf16 %v583_v32, %v583_v32 }
 0x4af   : > { %v660_v28 = vpop.xlane.xlu2 %659 }
 0x4b0   : > { %893 = vrcp.f32 %v660_v28 }
 0x4b1   : > { %895 = vrcp.f32 %v918_v57 }
 0x4b6   : > { %v894_v31 = vpop.eup %893 }
 0x4b7   : > { %v662_v33 = vmul.f32 %v894_v31, %v890_v26  ;;  %v586_v34 = vpop.permute.xlu2 %585  ;;  %v896_v58 = vpop.eup %895 }
 0x4b8   : > { %v591_v36 = vsel %vm433_vm4, %v586_v34, 0  ;;  %v721_v59 = vmul.f32 32.0, %v896_v58  ;;  %vm725_vm7 = vweird.f32 %v896_v58 }
 0x4b9   : > { %v663_v37 = vpack.c.bf16 %v662_v33, %v662_v33  ;;  %600 = vmatpush.bf16.msra.mxu2 %v591_v36 }
 0x4ba   : > { %v722_v60 = vsub.f32 1.0, %v721_v59 }
 0x4bb   : > { %847 = vmatmul.msk.bf16.vlgmr.msra.gmra.mxu3 %vm429_vm5, %v663_v37 }
 0x4bc   : > { %843 = vmatmul.msk.bf16.vlgmr.msra.gmra.mxu2 %vm429_vm5, %v584_v8  ;;  %v723_v61 = vmul.f32 %v896_v58, %v722_v60 }
 0x4bd   : > { %701 = vmatpush.bf16.msrb.mxu2 %v692_v35 }
 0x4be   : > { %v724_v62 = vadd.f32 %v896_v58, %v723_v61 }
 0x4c0   : > { %v726_v63 = vsel %vm725_vm7, %v896_v58, %v724_v62 }
 0x53e   : > { %v681_v40 = vpop.f32.mrf.mxu3 }
 0x53f   : > { %v685_v41 = vpack.c.bf16 %v681_v40, %v681_v40  ;;  %v602_v42 = vpop.f32.mrf.mxu2 }
 0x540   : > { %v606_v43 = vpack.c.bf16 %v602_v42, %v602_v42 }
 0x541   : > { %849 = vmatmul.msk.bf16.vlgmr.msrb.gmra.mxu2 %vm394_vm1, %v685_v41 }
 0x542   : > { %845 = vmatmul.msk.bf16.vlgmr.msra.gmra.mxu0 %vm394_vm1, %v606_v43 }
 0x546   : > { %v683_v44 = vpop.f32.mrf.mxu3 }
 0x547   : > { %v604_v45 = vpop.f32.mrf.mxu2 }
 0x5bf   : > { %v624_v46 = vpop.f32.mrf.mxu0 }
 0x5c0   : > { %v628_v47 = vadd.f32 %v624_v46, %v547_v15  ;;  %v877_v15 = vld [vmem:[%s1103_s7] ss:$0 sm:$0xff] }
 0x5c4   : > { %v703_v49 = vpop.f32.mrf.mxu2 }
 0x5c5   : > { %v707_v51 = vadd.f32 %v703_v49, %v628_v47 }
 0x5c7   : > { %v712_v52 = vadd.f32 %v876_v48, %v707_v51  ;;  %v626_v53 = vpop.f32.mrf.mxu0 }
 0x5c9   : > { %v713_v54 = vadd.f32 %v712_v52, %v344_v50 }
 0x5cb   : > { %v717_v55 = vsel %vm716_vm6, %v713_v54, 0.0 }
 0x5cc   : > { %v705_v56 = vpop.f32.mrf.mxu2  ;;  %718 = vadd.xlane.f32.xlu1 %v717_v55 }
 0x63f   : > { %v719_v0 = vpop.xlane.xlu1 %718 }
 0x640   : > { %v727_v2 = vmul.f32 %v726_v63, %v719_v0 }
 0x642   : > { %v728_v1 = vsub.f32 %v713_v54, %v727_v2 }
 0x644   : > { %v729_v3 = vmul.f32 %v728_v1, %v728_v1 }
 0x646   : > { %v730_v4 = vsel %vm716_vm6, %v729_v3, 0.0 }
 0x647   : > { %731 = vadd.xlane.f32.xlu0 %v730_v4 }
 0x6ba   : > { %v732_v5 = vpop.xlane.xlu0 %731 }
 0x6bb   : > { %v733_v6 = vmul.f32 %v732_v5, %v726_v63 }
 0x6bd   : > { %v734_v7 = vadd.f32 1e-05, %v733_v6 }
 0x6bf   : > { %897 = vrsqrt.f32 %v734_v7  ;;  %vm741_vm9 = vweird.f32 %v734_v7 }
 0x6c5   : > { %v898_v9 = vpop.eup %897 }
 0x6c6   : > { %v736_v10 = vmul.f32 %v898_v9, %v734_v7  ;;  %vm742_vm8 = vweird.f32 %v898_v9 }
 0x6c7   : > { %vm743_vm10 = vmor %vm741_vm9, %vm742_vm8 }
 0x6c8   : > { %v737_v11 = vmul.f32 %v898_v9, %v736_v10 }
 0x6ca   : > { %v738_v12 = vmul.f32 0.5, %v737_v11 }
 0x6cc   : > { %v739_v13 = vsub.f32 1.5, %v738_v12 }
 0x6ce   : > { %v740_v14 = vmul.f32 %v898_v9, %v739_v13 }
 0x6d0   : > { %v744_v16 = vsel %vm743_vm10, %v898_v9, %v740_v14 }
 0x6d1   : > { %v745_v18 = vmul.f32 %v744_v16, %v728_v1 }
 0x6d3   : > { %v749_v19 = vmul.f32 %v877_v15, %v745_v18 }
 0x6d5   : > { %v753_v20 = vadd.f32 %v878_v17, %v749_v19 }
 0x6d7   : > { %v754_v21 = vpack.c.bf16 %v753_v20, %v753_v20 }
 0x6d9   : > { %756 = vst.msk [vmem:[%s341_s19] sm:$0x7] %vm755_vm11, %v754_v21 }
 0x6da PF: > { %s19_s30 = sadd.s32 1, %s905_s30  }
 0x6db   : > { %p16_p4 = scmp.ge.s32.totalorder %s19_s30, 4  }
 0x6dd   :  { %18 = sbr.rel (!%p16_p4) target bundleno = 1 (0x1), region = 92 }

// kernel: seq2seq_transformer_forward.15
= control target key start
LH: loop header
LB: loop body
LE: loop exit
PB: predicated region body
PF: predicated region fallthrough
CT: control target
= control target key end

     0   :  { %10 = vsyncpa [#allocation3], 0  ;;  %s343_s0 = inlined_call_operand.vmem [shape: bf16[12,32], index: 0, kind: input, shape index: {}]   ;;  %s344_s1 = inlined_call_operand.hbm [shape: f32[1,32], index: 1, kind: input, shape index: {}]   ;;  %s345_s2 = inlined_call_operand.hbm [shape: f32[1,32], index: 2, kind: input, shape index: {}]   ;;  %s346_s3 = inlined_call_operand.vmem [shape: bf16[32,128], index: 3, kind: input, shape index: {}]   ;;  %s347_s4 = inlined_call_operand.hbm [shape: f32[1,128], index: 4, kind: input, shape index: {}]   ;;  %s348_s5 = inlined_call_operand.vmem [shape: f32[12,128], index: 5, kind: output, shape index: {}]  }
   0x1   :  { %11 = vsyncpa [#allocation5], 0  ;;  %s30_s20 = sshll.u32 %s345_s2, 4  ;;  %s277_s21 = smov [#allocation4]   ;;  %s31_s20 = int_to_ptr.hbm [resolvable:$true] %s30_s20 }
   0x2   :  { %s32_s22 = sshll.u32 %s277_s21, 4  ;;  %s19_s25 = sshll.u32 %s344_s1, 4  ;;  %s33_s22 = int_to_ptr.vmem [resolvable:$true] %s32_s22  ;;  %s20_s25 = int_to_ptr.hbm [resolvable:$true] %s19_s25 }
   0x3   :  { %35 = dma.hbm_to_vmem [thread:$0]  %s31_s20, 16, %s33_s22, [#allocation5]  }
   0x4   :  { %s278_s26 = smov [#allocation2]   ;;  %s43_s30 = sshll.u32 %s347_s4, 4  ;;  %s44_s30 = int_to_ptr.hbm [resolvable:$true] %s43_s30 }
   0x5   :  { %s21_s27 = sshll.u32 %s278_s26, 4  ;;  %s279_s2 = smov [#allocation6]   ;;  %s22_s27 = int_to_ptr.vmem [resolvable:$true] %s21_s27 }
   0x6   :  { %24 = dma.hbm_to_vmem [thread:$0]  %s20_s25, 16, %s22_s27, [#allocation3]  }
   0x7   :  { %s45_s6 = sshll.u32 %s279_s2, 4  ;;  %s46_s6 = int_to_ptr.vmem [resolvable:$true] %s45_s6 }
   0x8   :  { %48 = dma.hbm_to_vmem [thread:$0]  %s44_s30, 16, %s46_s6, [#allocation5]  }
   0x9   :  { %273 = dma.done.wait [#allocation3], 16  }
   0xa   :  { %274 = vsyncadd [#allocation3], 4294967280 }
   0xb   :  { %275 = dma.done.wait [#allocation5], 32  }
   0xc   :  { %276 = vsyncadd [#allocation5], 4294967264  ;;  %v62_v0 = vld [vmem:[%s343_s0] sm:$0xf]  ;;  %vm68_vm0 = vcmask 261120   ;;  %vm72_vm1 = vcmask 257024  }
   0xd   :  { %v64_v1 = vunpack.c.l.bf16 %v62_v0  ;;  %v63_v2 = vld [vmem:[%s343_s0 + $0x4] sm:$0x3]  ;;  %v280_v6 = vmov 32.0   ;;  %v187_v23 = vld [vmem:[%s346_s3 + $0x8] sm:$0xff]  ;;  %v192_v44 = vld [vmem:[#allocation2] ss:$0 sm:$0xff] }
   0xe   :  { %v65_v4 = vunpack.c.l.bf16 %v63_v2  ;;  %195 = vrcp.f32 %v280_v6  ;;  %161 = vmatpush.bf16.msra.mxu0 %v187_v23  ;;  %v186_v25 = vld [vmem:[%s346_s3] sm:$0xff] }
   0xf   :  { %v69_v3 = vsel %vm68_vm0, %v64_v1, 0.0  ;;  %v193_v49 = vld [vmem:[#allocation4] ss:$0 sm:$0xff]  ;;  %v194_v54 = vld [vmem:[#allocation6] ss:$0 sm:$0xff] }
  0x10   :  { %70 = vadd.xlane.f32.xlu0 %v69_v3  ;;  %v73_v5 = vsel %vm72_vm1, %v65_v4, 0.0 }
  0x12   :  { %162 = vmatpush.bf16.msra.mxu0 %v186_v25 }
  0x14   :  { %v196_v7 = vpop.eup %195 }
  0x15   :  { %v77_v8 = vmul.f32 32.0, %v196_v7  ;;  %vm81_vm2 = vweird.f32 %v196_v7 }
  0x17   :  { %v78_v9 = vsub.f32 1.0, %v77_v8 }
  0x18   :  { %74 = vadd.xlane.f32.xlu0 %v73_v5 }
  0x19   :  { %v79_v10 = vmul.f32 %v196_v7, %v78_v9 }
  0x1b   :  { %v80_v11 = vadd.f32 %v196_v7, %v79_v10 }
  0x1d   :  { %v82_v12 = vsel %vm81_vm2, %v196_v7, %v80_v11 }
  0x83   :  { %v71_v13 = vpop.xlane.xlu0 %70 }
  0x84   :  { %v83_v14 = vmul.f32 %v82_v12, %v71_v13 }
  0x86   :  { %v85_v15 = vsub.f32 %v64_v1, %v83_v14 }
  0x88   :  { %v87_v16 = vmul.f32 %v85_v15, %v85_v15 }
  0x8a   :  { %v89_v17 = vsel %vm68_vm0, %v87_v16, 0.0 }
  0x8b   :  { %90 = vadd.xlane.f32.xlu1 %v89_v17  ;;  %v75_v18 = vpop.xlane.xlu0 %74 }
  0x8c   :  { %v84_v19 = vmul.f32 %v82_v12, %v75_v18 }
  0x8e   :  { %v86_v20 = vsub.f32 %v65_v4, %v84_v19 }
  0x90   :  { %v88_v21 = vmul.f32 %v86_v20, %v86_v20 }
  0x92   :  { %v92_v22 = vsel %vm72_vm1, %v88_v21, 0.0 }
  0x93   :  { %93 = vadd.xlane.f32.xlu1 %v92_v22 }
  0xfe   :  { %v91_v24 = vpop.xlane.xlu1 %90 }
  0xff   :  { %v95_v26 = vmul.f32 %v91_v24, %v82_v12 }
 0x101   :  { %v97_v27 = vadd.f32 1e-05, %v95_v26 }
 0x103   :  { %197 = vrsqrt.f32 %v97_v27  ;;  %vm105_vm4 = vweird.f32 %v97_v27 }
 0x106   :  { %v94_v28 = vpop.xlane.xlu1 %93 }
 0x107   :  { %v96_v29 = vmul.f32 %v94_v28, %v82_v12 }
 0x109   :  { %v198_v30 = vpop.eup %197  ;;  %v98_v31 = vadd.f32 1e-05, %v96_v29 }
 0x10a   :  { %v100_v32 = vmul.f32 %v198_v30, %v97_v27  ;;  %vm106_vm3 = vweird.f32 %v198_v30 }
 0x10b   :  { %199 = vrsqrt.f32 %v98_v31  ;;  %vm107_vm5 = vmor %vm105_vm4, %vm106_vm3  ;;  %vm115_vm7 = vweird.f32 %v98_v31 }
 0x10c   :  { %v101_v33 = vmul.f32 %v198_v30, %v100_v32 }
 0x10e   :  { %v102_v34 = vmul.f32 0.5, %v101_v33 }
 0x110   :  { %v103_v35 = vsub.f32 1.5, %v102_v34 }
 0x111   :  { %v200_v36 = vpop.eup %199 }
 0x112   :  { %v104_v37 = vmul.f32 %v198_v30, %v103_v35  ;;  %v110_v38 = vmul.f32 %v200_v36, %v98_v31  ;;  %vm116_vm6 = vweird.f32 %v200_v36 }
 0x113   :  { %vm117_vm8 = vmor %vm115_vm7, %vm116_vm6 }
 0x114   :  { %v111_v39 = vmul.f32 %v200_v36, %v110_v38  ;;  %v108_v40 = vsel %vm107_vm5, %v198_v30, %v104_v37 }
 0x115   :  { %v119_v43 = vmul.f32 %v108_v40, %v85_v15 }
 0x116   :  { %v112_v41 = vmul.f32 0.5, %v111_v39 }
 0x117   :  { %v124_v48 = vmul.f32 %v192_v44, %v119_v43 }
 0x118   :  { %v113_v42 = vsub.f32 1.5, %v112_v41 }
 0x119   :  { %v129_v51 = vadd.f32 %v193_v49, %v124_v48 }
 0x11a   :  { %v114_v45 = vmul.f32 %v200_v36, %v113_v42 }
 0x11c   :  { %v118_v46 = vsel %vm117_vm8, %v200_v36, %v114_v45 }
 0x11d   :  { %v120_v47 = vmul.f32 %v118_v46, %v86_v20 }
 0x11f   :  { %v125_v50 = vmul.f32 %v192_v44, %v120_v47 }
 0x121   :  { %v130_v52 = vadd.f32 %v193_v49, %v125_v50 }
 0x123   :  { %v131_v53 = vpack.c.bf16 %v130_v52, %v129_v51 }
 0x125   :  { %185 = vmatmul.msk.bf16.vlgmr.msra.gmra.mxu0 %vm68_vm0, %v131_v53 }
 0x1a2   :  { %v164_v55 = vpop.f32.mrf.mxu0 }
 0x1a3   :  { %v165_v56 = vadd.f32 %v194_v54, %v164_v55 }
 0x1a5   :  { %169 = vst [vmem:[%s348_s5] sm:$0xff] %v165_v56 }
 0x1aa   :  { %v166_v57 = vpop.f32.mrf.mxu0 }
 0x1ab   :  { %v167_v58 = vadd.f32 %v194_v54, %v166_v57 }
 0x1ad   :  { %170 = vst [vmem:[%s348_s5 + $0x8] sm:$0xf] %v167_v58 }
 0x1ae   :  { %175 = vsyncpa [#allocation3], 1 }
 0x1af   :  { %176 = vsyncpa [#allocation5], 1 }

// kernel: seq2seq_transformer_forward.14
= control target key start
LH: loop header
LB: loop body
LE: loop exit
PB: predicated region body
PF: predicated region fallthrough
CT: control target
= control target key end

     0   :  { %s1942_s0 = inlined_call_operand.vmem [shape: bf16[2,6,32], index: 0, kind: input, shape index: {}]   ;;  %s1943_s1 = inlined_call_operand.vmem [shape: bf16[2,8,32], index: 1, kind: input, shape index: {}]   ;;  %s1944_s2 = inlined_call_operand.vmem [shape: f32[2,1,8], index: 2, kind: input, shape index: {}]   ;;  %s1945_s3 = inlined_call_operand.vmem [shape: bf16[32,32], index: 3, kind: input, shape index: {}]   ;;  %s1946_s4 = inlined_call_operand.vmem [shape: f32[1,32], index: 4, kind: input, shape index: {}]   ;;  %s1947_s5 = inlined_call_operand.vmem [shape: bf16[32,64], index: 5, kind: input, shape index: {}]   ;;  %s1948_s6 = inlined_call_operand.vmem [shape: f32[1,64], index: 6, kind: input, shape index: {}]   ;;  %s1949_s7 = inlined_call_operand.vmem [shape: bf16[4,8,32], index: 7, kind: input, shape index: {}]   ;;  %s1950_s8 = inlined_call_operand.vmem [shape: f32[1,32], index: 8, kind: input, shape index: {}]   ;;  %s1951_s9 = inlined_call_operand.vmem [shape: f32[1,32], index: 9, kind: input, shape index: {}]   ;;  %s1952_s10 = inlined_call_operand.vmem [shape: f32[1,32], index: 10, kind: input, shape index: {}]   ;;  %s1953_s11 = inlined_call_operand.vmem [shape: bf16[32,64], index: 11, kind: input, shape index: {}]   ;;  %s1954_s12 = inlined_call_operand.hbm [shape: f32[1,64], index: 12, kind: input, shape index: {}]   ;;  %s1955_s13 = inlined_call_operand.vmem [shape: bf16[64,32], index: 13, kind: input, shape index: {}]   ;;  %s1956_s14 = inlined_call_operand.hbm [shape: f32[1,32], index: 14, kind: input, shape index: {}]   ;;  %s1957_s15 = inlined_call_operand.hbm [shape: f32[1,32], index: 15, kind: input, shape index: {}]   ;;  %s1958_s16 = inlined_call_operand.hbm [shape: f32[1,32], index: 16, kind: input, shape index: {}]   ;;  %s1959_s17 = inlined_call_operand.vmem [shape: bf16[2,6,32], index: 17, kind: output, shape index: {}]  }
   0x1   :  { %1960 = sst [smem:[#allocation12_spill]] %s1942_s0 }
   0x2   :  { %1961 = sst [smem:[#allocation13_spill]] %s1943_s1 }
   0x3   :  { %1962 = sst [smem:[#allocation14_spill]] %s1954_s12 }
   0x4   :  { %1963 = sst [smem:[#allocation15_spill]] %s1956_s14 }
   0x5   :  { %22 = vsyncpa [#allocation3], 0 }
   0x6   :  { %23 = vsyncpa [#allocation5], 0 }
   0x7   :  { %24 = vsyncpa [#allocation8], 0  ;;  %s1742_s24 = smov 0  }
   0x8 LB: > { %s1964_s14 = sld [smem:[#allocation15_spill]]  ;;  %s1751_s28 = sadd.s32 4294967295, %s1638_s24   ;;  %s1638_s24 = sphi %s1742_s24, %s30_s24  }
   0x9   : > { %p1326_p0 = scmp.ge.s32.totalorder %s1638_s24, 1  ;;  %p433_p1 = scmp.lt.s32.totalorder %s1638_s24, 3 }
   0xa   : > { %p1440_p2 = scmp.eq.s32.totalorder %s1751_s28, 0  ;;  %s1640_s0 = smov [#allocation4]  }
   0xb   : > { %p1756_p3 = pnand %p1326_p0, %p433_p1  ;;  %s489_s30 = sshll.u32 %s1640_s0, 4  ;;  %s490_s30 = int_to_ptr.vmem [resolvable:$true] %s489_s30 }
   0xc   : > { %s1966_s12 = sld [smem:[#allocation14_spill]]  ;;  %s499_s22 = sshll.u32 %s1957_s15, 4  ;;  %s500_s22 = int_to_ptr.hbm [resolvable:$true] %s499_s22 }
   0xd   : > { %p1427_p4 = pneg %p1756_p3  ;;  %s1641_s25 = smov [#allocation2]  }
   0xe   : > { %s487_s27 = sshll.u32 %s1964_s14, 4  ;;  %s474_s26 = sshll.u32 %s1641_s25, 4  ;;  %s488_s27 = int_to_ptr.hbm [resolvable:$true] %s487_s27  ;;  %s475_s26 = int_to_ptr.vmem [resolvable:$true] %s474_s26 }
   0xf   : > { %p1770_p5 = pnand %p1440_p2, %p1427_p4  ;;  %s1642_s0 = smov [#allocation6]  }
  0x10   : > { %s501_s18 = sshll.u32 %s1642_s0, 4  ;;  %s511_s21 = sshll.u32 %s1958_s16, 4  ;;  %s502_s18 = int_to_ptr.vmem [resolvable:$true] %s501_s18  ;;  %s512_s21 = int_to_ptr.hbm [resolvable:$true] %s511_s21 }
  0x11   : > { %1433 = dma.hbm_to_vmem [thread:$0]  (!%p1770_p5), %s488_s27, 16, %s490_s30, [#allocation5]  }
  0x12   : > { %s472_s1 = sshll.u32 %s1966_s12, 4  ;;  %s1643_s12 = smov [#allocation7]   ;;  %s473_s1 = int_to_ptr.hbm [resolvable:$true] %s472_s1 }
  0x13   : > { %1430 = dma.hbm_to_vmem [thread:$0]  (!%p1770_p5), %s473_s1, 16, %s475_s26, [#allocation3]  }
  0x14   : > { %1436 = dma.hbm_to_vmem [thread:$0]  (!%p1770_p5), %s500_s22, 16, %s502_s18, [#allocation5]  }
  0x15   : > { %s513_s14 = sshll.u32 %s1643_s12, 4  ;;  %546 = sbr.rel (%p1756_p3) target bundleno = 2184 (0x888), region = 88  ;;  %s514_s14 = int_to_ptr.vmem [resolvable:$true] %s513_s14 }
  0x16   : > { %1439 = dma.hbm_to_vmem [thread:$0]  (!%p1770_p5), %s512_s21, 16, %s514_s14, [#allocation8]  }
  0x1a   : > { %1625 = dma.done.wait (%p1440_p2), [#allocation3], 16  }
  0x1b   : > { %1627 = vsyncadd (%p1440_p2), [#allocation3], 4294967280 }
  0x1c   : > { %1629 = dma.done.wait (%p1440_p2), [#allocation5], 32  }
  0x1d   : > { %1631 = vsyncadd (%p1440_p2), [#allocation5], 4294967264 }
  0x1e   : > { %1633 = dma.done.wait (%p1440_p2), [#allocation8], 16  }
  0x1f   : > { %1635 = vsyncadd (%p1440_p2), [#allocation8], 4294967280  ;;  %p619_p6 = scmp.lt.s32.totalorder %s1751_s28, 1  ;;  %v1402_v0 = vld [vmem:[%s1945_s3 + $0x8] sm:$0xff]  ;;  %v1401_v2 = vld [vmem:[%s1945_s3] sm:$0xff]  ;;  %s1968_s21 = sld [smem:[#allocation12_spill]] }
  0x20   : > { %v1404_v1 = vld [vmem:[%s1947_s5 + $0x8] sm:$0xff]  ;;  %668 = vmatpush.bf16.msra.mxu0 %v1402_v0  ;;  %v1403_v3 = vld [vmem:[%s1947_s5] sm:$0xff]  ;;  %s1969_s29 = sld [smem:[#allocation13_spill]]  ;;  %vm658_vm0 = vcmask 261120   ;;  %vm717_vm1 = vcmask 64512   ;;  %s1644_s0 = smov 96  }
  0x21   : > { %s1971_s28 = smov (!%p619_p6, %s1751_s28), 1  ;;  %704 = vmatpush.bf16.msra.mxu1 %v1404_v1  ;;  %v1468_v6 = vld [vmem:[%s1946_s4] ss:$0 sm:$0xff]  ;;  %s1645_s19 = smov 120   ;;  %vm758_vm2 = vcmask 1043456   ;;  %vm737_vm3 = vcmask 62464  }
  0x22   : > { %s1810_s30 = sshll.u32 %s1971_s28, 2  ;;  %s629_s18 = scalar_lea.vmem %s1944_s2, %s1971_s28  ;;  %v1469_v7 = vld [vmem:[%s1948_s6] ss:$0 sm:$0xff]  ;;  %vm1043_vm4 = vcmask 259072   ;;  %vm1156_vm9 = vcmask 523264   ;;  %vm1207_vm13 = vcmask 256000  }
  0x23   : > { %s1646_s20 = smov 104   ;;  %v776_v21 = vld [vmem:[%s1949_s7] sm:$0xf]  ;;  %s1648_s28 = smov 88  }
  0x24   : > { %669 = vmatpush.bf16.msra.mxu0 %v1401_v2  ;;  %v862_v22 = vsel %vm758_vm2, %v776_v21, 0  ;;  %v1470_v30 = vld [vmem:[%s629_s18] ss:$0 sm:$0xff]  ;;  %s1649_s18 = smov 80  }
  0x25   : > { %s622_s12 = scalar_lea.vmem %s1968_s21, %s1810_s30  ;;  %705 = vmatpush.bf16.msra.mxu1 %v1403_v3  ;;  %s1647_s21 = smov 112  }
  0x26   : > { %s626_s1 = scalar_lea.vmem %s1969_s29, %s1810_s30  ;;  %v1830_v4 = vld [vmem:[%s622_s12] sm:$0x7]  ;;  %s633_s29 = scalar_lea.vmem %s1959_s17, %s1810_s30 }
  0x27   : > { %v636_v5 = vld [vmem:[%s626_s1] sm:$0xf]  ;;  %1348 = vmatmul.msk.bf16.vlgmr.msra.gmra.mxu0 %vm658_vm0, %v1830_v4  ;;  %s1650_s1 = smov 72  }
  0x28   : > { %1357 = vmatmul.msk.bf16.vlgmr.msra.gmra.mxu1 %vm658_vm0, %v636_v5 }
  0xa4   : > { %v671_v8 = vpop.f32.mrf.mxu0 }
  0xa5   : > { %v707_v9 = vpop.f32.mrf.mxu1  ;;  %v672_v10 = vadd.f32 %v1468_v6, %v671_v8 }
  0xa6   : > { %v708_v11 = vadd.f32 %v1469_v7, %v707_v9 }
  0xa7   : > { %v712_v12 = vpack.c.bf16 %v672_v10, %v672_v10 }
  0xa8   : > { %v713_v13 = vpack.c.bf16 %v708_v11, %v708_v11 }
  0xa9   : > { %v778_v14 = vunpack.c.l.b16 %v712_v12 }
  0xaa   : > { %v751_v15 = vunpack.c.l.b16 %v713_v13  ;;  %v722_v16 = vsel %vm717_vm1, %v713_v13, 0 }
  0xab   : > { %731 = vmatpush.bf16.xpose.msra.mxu2 %v722_v16  ;;  %v779_v17 = vpack.c.b16 %v778_v14, %v778_v14 }
  0xac   : > { %v1842_v18 = vpack.c.b16 %v751_v15, %v751_v15  ;;  %v673_v19 = vpop.f32.mrf.mxu0 }
  0xad   : > { %v709_v20 = vpop.f32.mrf.mxu1  ;;  %780 = vrot.lane.b32.xlu2 %v779_v17, %s1645_s19 }
  0xae   : > { %753 = vrot.lane.b32.xlu1 %v1842_v18, %s1644_s0 }
  0xb2   : > { %1358 = vmatmul.msk.bf16.vlgmr.msra.gmra.mxu2 %vm717_vm1, %v712_v12 }
  0xb3   : > { %871 = vmatpush.bf16.msrb.mxu2 %v862_v22 }
  0xb5   : > { %958 = vrot.lane.b32.xlu2 %v1842_v18, %s1646_s20 }
  0xb6   : > { %782 = vrot.lane.b32.xlu1 %v1842_v18, %s1645_s19 }
  0xbd   : > { %877 = vrot.lane.b32.xlu2 %v779_v17, %s1647_s21 }
  0xbe   : > { %956 = vrot.lane.b32.xlu1 %v779_v17, %s1646_s20 }
 0x107   : > { %v781_v23 = vpop.permute.xlu2 %780 }
 0x10f   : > { %v959_v24 = vpop.permute.xlu2 %958 }
 0x110   : > { %v964_v25 = vsel %vm717_vm1, %v959_v24, 0 }
 0x111   : > { %973 = vmatpush.bf16.xpose.msra.mxu2 %v964_v25 }
 0x117   : > { %v878_v46 = vpop.permute.xlu2 %877 }
 0x120   : > { %v754_v26 = vpop.permute.xlu1 %753 }
 0x121   : > { %v760_v27 = vsel %vm758_vm2, %v754_v26, 0 }
 0x122   : > { %769 = vmatpush.bf16.msra.mxu3 %v760_v27 }
 0x128   : > { %v783_v28 = vpop.permute.xlu1 %782 }
 0x129   : > { %v788_v29 = vsel %vm717_vm1, %v783_v28, 0 }
 0x12a   : > { %797 = vmatpush.bf16.xpose.msrb.mxu3 %v788_v29 }
 0x130   : > { %v957_v52 = vpop.permute.xlu1 %956 }
 0x135   : > { %v733_v31 = vpop.f32.mrf.mxu2 }
 0x136   : > { %v734_v32 = vadd.f32 %v1470_v30, %v733_v31 }
 0x138   : > { %v738_v33 = vsel %vm737_vm3, %v734_v32, -inf }
 0x139   : > { %739 = vmax.xlane.f32.xlu0 %v738_v33 }
 0x13d   : > { %v735_v34 = vpop.f32.mrf.mxu2 }
 0x1ac   : > { %v740_v35 = vpop.xlane.xlu0 %739 }
 0x1ad   : > { %v741_v36 = vsub.f32 %v734_v32, %v740_v35  ;;  %v1367_v32 = vld [vmem:[%s1949_s7 + $0x8] sm:$0xf] }
 0x1ae   : > { %v940_v34 = vsel %vm758_vm2, %v1367_v32, 0 }
 0x1af   : > { %v742_v37 = vmul.f32 1.442695, %v741_v36 }
 0x1b1   : > { %1478 = vpow2.f32 %v742_v37 }
 0x1b7   : > { %v1479_v38 = vpop.eup %1478 }
 0x1b8   : > { %v744_v39 = vsel %vm737_vm3, %v1479_v38, 0.0 }
 0x1b9   : > { %745 = vadd.xlane.f32.xlu0 %v744_v39 }
 0x1cd   : > { %879 = vrot.lane.b32.xlu0 %v1842_v18, %s1647_s21 }
 0x22c   : > { %v746_v40 = vpop.xlane.xlu0 %745 }
 0x22d   : > { %1480 = vrcp.f32 %v746_v40 }
 0x233   : > { %v1481_v41 = vpop.eup %1480 }
 0x234   : > { %v748_v42 = vmul.f32 %v1481_v41, %v1479_v38 }
 0x236   : > { %v749_v43 = vpack.c.bf16 %v748_v42, %v748_v42 }
 0x238   : > { %1359 = vmatmul.msk.bf16.vlgmr.msra.gmra.mxu3 %vm717_vm1, %v749_v43 }
 0x23f   : > { %v880_v44 = vpop.permute.xlu0 %879 }
 0x240   : > { %v885_v45 = vsel %vm717_vm1, %v880_v44, 0 }
 0x241   : > { %894 = vmatpush.bf16.xpose.msra.mxu3 %v885_v45  ;;  %v1371_v45 = vld [vmem:[%s1949_s7 + $0xc] sm:$0xf] }
 0x248   : > { %1360 = vmatmul.msk.bf16.vlgmr.msrb.gmra.mxu3 %vm717_vm1, %v781_v23 }
 0x258   : > { %1365 = vmatmul.msk.bf16.vlgmr.msra.gmra.mxu3 %vm717_vm1, %v878_v46  ;;  %v1019_v46 = vsel %vm758_vm2, %v1371_v45, 0 }
 0x2bb   : > { %v771_v47 = vpop.f32.mrf.mxu3 }
 0x2bc   : > { %v775_v48 = vpack.c.bf16 %v771_v47, %v771_v47 }
 0x2be   : > { %1364 = vmatmul.msk.bf16.vlgmr.msrb.gmra.mxu2 %vm717_vm1, %v775_v48 }
 0x2c3   : > { %v773_v49 = vpop.f32.mrf.mxu3 }
 0x2cb   : > { %v799_v50 = vpop.f32.mrf.mxu3 }
 0x2cc   : > { %v800_v51 = vadd.f32 %v1470_v30, %v799_v50 }
 0x2ce   : > { %1369 = vmatmul.msk.bf16.vlgmr.msra.gmra.mxu2 %vm717_vm1, %v957_v52  ;;  %v803_v53 = vsel %vm737_vm3, %v800_v51, -inf }
 0x2cf   : > { %804 = vmax.xlane.f32.xlu1 %v803_v53 }
 0x2d3   : > { %v801_v54 = vpop.f32.mrf.mxu3 }
 0x2db   : > { %v896_v55 = vpop.f32.mrf.mxu3 }
 0x2dc   : > { %v897_v56 = vadd.f32 %v1470_v30, %v896_v55 }
 0x2de   : > { %v900_v57 = vsel %vm737_vm3, %v897_v56, -inf }
 0x2df   : > { %901 = vmax.xlane.f32.xlu0 %v900_v57 }
 0x2e3   : > { %v898_v58 = vpop.f32.mrf.mxu3 }
 0x2e4   : > { %v637_v58 = vunpack.c.l.bf16 %v1830_v4 }
 0x2e8   : > { %815 = vrot.lane.b32.xlu1 %v1842_v18, %s1648_s28 }
 0x341   : > { %v1872_v59 = vpop.f32.mrf.mxu2 }
 0x342   : > { %v805_v60 = vpop.xlane.xlu1 %804 }
 0x343   : > { %v806_v62 = vsub.f32 %v800_v51, %v805_v60 }
 0x345   : > { %v807_v63 = vmul.f32 1.442695, %v806_v62 }
 0x347   : > { %1482 = vpow2.f32 %v807_v63 }
 0x349   : > { %v875_v61 = vpop.f32.mrf.mxu2 }
 0x34d   : > { %v1483_v7 = vpop.eup %1482 }
 0x34e   : > { %v809_v11 = vsel %vm737_vm3, %v1483_v7, 0.0 }
 0x351   : > { %v975_v0 = vpop.f32.mrf.mxu2 }
 0x352   : > { %v976_v1 = vadd.f32 %v1470_v30, %v975_v0  ;;  %v902_v2 = vpop.xlane.xlu0 %901  ;;  %v1362_v30 = vld [vmem:[%s1949_s7 + $0x4] sm:$0xf] }
 0x353   : > { %v903_v3 = vsub.f32 %v897_v56, %v902_v2  ;;  %v843_v31 = vsel %vm758_vm2, %v1362_v30, 0  ;;  %v1471_v56 = vld [vmem:[%s1950_s8] ss:$0 sm:$0xff] }
 0x354   : > { %v979_v5 = vsel %vm737_vm3, %v976_v1, -inf  ;;  %852 = vmatpush.bf16.msrb.mxu1 %v843_v31 }
 0x355   : > { %v904_v6 = vmul.f32 1.442695, %v903_v3  ;;  %980 = vmax.xlane.f32.xlu2 %v979_v5 }
 0x357   : > { %1484 = vpow2.f32 %v904_v6 }
 0x358   : > { %949 = vmatpush.bf16.msra.mxu1 %v940_v34  ;;  %v1407_v34 = vld [vmem:[%s1955_s13] sm:$0xff] }
 0x359   : > { %v977_v8 = vpop.f32.mrf.mxu2 }
 0x35a   : > { %v816_v9 = vpop.permute.xlu1 %815 }
 0x35b   : > { %v821_v10 = vsel %vm758_vm2, %v816_v9, 0 }
 0x35c   : > { %830 = vmatpush.bf16.msrb.mxu0 %v821_v10 }
 0x35d   : > { %v1485_v12 = vpop.eup %1484  ;;  %810 = vadd.xlane.f32.xlu2 %v809_v11 }
 0x35e   : > { %v906_v13 = vsel %vm737_vm3, %v1485_v12, 0.0 }
 0x35f   : > { %907 = vadd.xlane.f32.xlu0 %v906_v13  ;;  %v1405_v13 = vld [vmem:[%s1953_s11] sm:$0xff] }
 0x373   : > { %912 = vrot.lane.b32.xlu0 %v1842_v18, %s1649_s18 }
 0x3c8   : > { %v981_v14 = vpop.xlane.xlu2 %980 }
 0x3c9   : > { %v982_v15 = vsub.f32 %v976_v1, %v981_v14  ;;  %v1651_v1 = vmov 32.0   ;;  %v1410_v14 = vld [vmem:[%s1955_s13 + $0x18] sm:$0xff] }
 0x3ca   : > { %1164 = vmatpush.bf16.msrb.mxu2 %v1410_v14 }
 0x3cb   : > { %v983_v16 = vmul.f32 1.442695, %v982_v15 }
 0x3cd   : > { %1486 = vpow2.f32 %v983_v16 }
 0x3d0   : > { %v811_v17 = vpop.xlane.xlu2 %810 }
 0x3d1   : > { %1488 = vrcp.f32 %v811_v17  ;;  %v1409_v17 = vld [vmem:[%s1955_s13 + $0x10] sm:$0xff] }
 0x3d2   : > { %v908_v23 = vpop.xlane.xlu0 %907  ;;  %1165 = vmatpush.bf16.msrb.mxu2 %v1409_v17 }
 0x3d3   : > { %v1487_v19 = vpop.eup %1486  ;;  %1490 = vrcp.f32 %v908_v23 }
 0x3d4   : > { %v985_v20 = vsel %vm737_vm3, %v1487_v19, 0.0 }
 0x3d5   : > { %986 = vadd.xlane.f32.xlu2 %v985_v20 }
 0x3d7   : > { %v1489_v21 = vpop.eup %1488 }
 0x3d8   : > { %v813_v22 = vmul.f32 %v1489_v21, %v1483_v7 }
 0x3d9   : > { %v1491_v25 = vpop.eup %1490 }
 0x3da   : > { %v814_v24 = vpack.c.bf16 %v813_v22, %v813_v22  ;;  %v910_v27 = vmul.f32 %v1491_v25, %v1485_v12  ;;  %v1406_v12 = vld [vmem:[%s1953_s11 + $0x8] sm:$0xff] }
 0x3dc   : > { %1361 = vmatmul.msk.bf16.vlgmr.msrb.gmra.mxu0 %vm717_vm1, %v814_v24  ;;  %v911_v29 = vpack.c.bf16 %v910_v27, %v910_v27 }
 0x3e5   : > { %v913_v26 = vpop.permute.xlu0 %912 }
 0x3e6   : > { %v918_v28 = vsel %vm758_vm2, %v913_v26, 0  ;;  %v1472_v26 = vld [vmem:[%s1951_s9] ss:$0 sm:$0xff] }
 0x3e7   : > { %927 = vmatpush.bf16.msra.mxu0 %v918_v28  ;;  %v1473_v28 = vld [vmem:[%s1952_s10] ss:$0 sm:$0xff] }
 0x3eb   : > { %1028 = vmatpush.bf16.msrb.mxu0 %v1019_v46 }
 0x3ec   : > { %1366 = vmatmul.msk.bf16.vlgmr.msra.gmra.mxu0 %vm717_vm1, %v911_v29 }
 0x3ed   : > { %991 = vrot.lane.b32.xlu2 %v1842_v18, %s1650_s1 }
 0x448   : > { %v987_v33 = vpop.xlane.xlu2 %986 }
 0x449   : > { %1492 = vrcp.f32 %v987_v33  ;;  %v1408_v33 = vld [vmem:[%s1955_s13 + $0x8] sm:$0xff] }
 0x44a   : > { %1494 = vrcp.f32 %v1651_v1  ;;  %1166 = vmatpush.bf16.msrb.mxu2 %v1408_v33 }
 0x44e   : > { %1167 = vmatpush.bf16.msrb.mxu2 %v1407_v34 }
 0x44f   : > { %v1493_v35 = vpop.eup %1492 }
 0x450   : > { %v989_v36 = vmul.f32 %v1493_v35, %v1487_v19  ;;  %v992_v37 = vpop.permute.xlu2 %991  ;;  %v1474_v35 = vld [vmem:[#allocation2] ss:$0 sm:$0xff] }
 0x451   : > { %v997_v18 = vsel %vm758_vm2, %v992_v37, 0 }
 0x452   : > { %v990_v38 = vpack.c.bf16 %v989_v36, %v989_v36  ;;  %1006 = vmatpush.bf16.msrb.mxu3 %v997_v18 }
 0x455   : > { %1370 = vmatmul.msk.bf16.vlgmr.msrb.gmra.mxu3 %vm717_vm1, %v990_v38 }
 0x459   : > { %v832_v39 = vpop.f32.mrf.mxu0 }
 0x45a   : > { %v836_v40 = vpack.c.bf16 %v832_v39, %v832_v39 }
 0x45c   : > { %1363 = vmatmul.msk.bf16.vlgmr.msrb.gmra.mxu1 %vm717_vm1, %v836_v40  ;;  %v1475_v40 = vld [vmem:[#allocation4] ss:$0 sm:$0xff] }
 0x45d   : > { %1111 = vmatpush.bf16.msrb.mxu1 %v1406_v12 }
 0x461   : > { %v834_v41 = vpop.f32.mrf.mxu0  ;;  %1112 = vmatpush.bf16.msrb.mxu1 %v1405_v13 }
 0x469   : > { %v929_v42 = vpop.f32.mrf.mxu0 }
 0x46a   : > { %v933_v43 = vpack.c.bf16 %v929_v42, %v929_v42 }
 0x46c   : > { %1368 = vmatmul.msk.bf16.vlgmr.msra.gmra.mxu1 %vm717_vm1, %v933_v43 }
 0x471   : > { %v931_v44 = vpop.f32.mrf.mxu0 }
 0x4d8   : > { %v1008_v47 = vpop.f32.mrf.mxu3 }
 0x4d9   : > { %v1012_v48 = vpack.c.bf16 %v1008_v47, %v1008_v47  ;;  %v854_v49 = vpop.f32.mrf.mxu1 }
 0x4da   : > { %v874_v52 = vadd.f32 %v1872_v59, %v854_v49  ;;  %v1495_v59 = vpop.eup %1494 }
 0x4db   : > { %1372 = vmatmul.msk.bf16.vlgmr.msrb.gmra.mxu0 %vm717_vm1, %v1012_v48  ;;  %v1048_v2 = vmul.f32 32.0, %v1495_v59  ;;  %vm1052_vm5 = vweird.f32 %v1495_v59 }
 0x4dd   : > { %v1049_v3 = vsub.f32 1.0, %v1048_v2 }
 0x4df   : > { %v1050_v5 = vmul.f32 %v1495_v59, %v1049_v3 }
 0x4e0   : > { %v1010_v50 = vpop.f32.mrf.mxu3 }
 0x4e1   : > { %v856_v51 = vpop.f32.mrf.mxu1  ;;  %v1051_v6 = vadd.f32 %v1495_v59, %v1050_v5 }
 0x4e3   : > { %v1053_v7 = vsel %vm1052_vm5, %v1495_v59, %v1051_v6 }
 0x4e9   : > { %v951_v53 = vpop.f32.mrf.mxu1 }
 0x4ea   : > { %v955_v54 = vadd.f32 %v951_v53, %v874_v52 }
 0x4f1   : > { %v953_v55 = vpop.f32.mrf.mxu1 }
 0x558   : > { %v1030_v57 = vpop.f32.mrf.mxu0 }
 0x559   : > { %v1034_v60 = vadd.f32 %v1030_v57, %v955_v54 }
 0x55b   : > { %v1039_v61 = vadd.f32 %v1471_v56, %v1034_v60 }
 0x55d   : > { %v1040_v62 = vadd.f32 %v1039_v61, %v637_v58  ;;  %v1476_v61 = vld [vmem:[#allocation6] ss:$0 sm:$0xff] }
 0x55f   : > { %v1044_v63 = vsel %vm1043_vm4, %v1040_v62, 0.0 }
 0x560   : > { %v1032_v0 = vpop.f32.mrf.mxu0  ;;  %1045 = vadd.xlane.f32.xlu1 %v1044_v63  ;;  %v1477_v63 = vld [vmem:[#allocation7] ss:$0 sm:$0xff] }
 0x5d3   : > { %v1046_v8 = vpop.xlane.xlu1 %1045 }
 0x5d4   : > { %v1054_v9 = vmul.f32 %v1053_v7, %v1046_v8 }
 0x5d6   : > { %v1055_v4 = vsub.f32 %v1040_v62, %v1054_v9 }
 0x5d8   : > { %v1056_v10 = vmul.f32 %v1055_v4, %v1055_v4 }
 0x5da   : > { %v1057_v11 = vsel %vm1043_vm4, %v1056_v10, 0.0 }
 0x5db   : > { %1058 = vadd.xlane.f32.xlu2 %v1057_v11 }
 0x64e   : > { %v1059_v15 = vpop.xlane.xlu2 %1058 }
 0x64f   : > { %v1060_v16 = vmul.f32 %v1059_v15, %v1053_v7 }
 0x651   : > { %v1061_v19 = vadd.f32 1e-05, %v1060_v16 }
 0x653   : > { %1496 = vrsqrt.f32 %v1061_v19  ;;  %vm1068_vm7 = vweird.f32 %v1061_v19 }
 0x659   : > { %v1497_v20 = vpop.eup %1496 }
 0x65a   : > { %v1063_v21 = vmul.f32 %v1497_v20, %v1061_v19  ;;  %vm1069_vm6 = vweird.f32 %v1497_v20 }
 0x65b   : > { %vm1070_vm8 = vmor %vm1068_vm7, %vm1069_vm6 }
 0x65c   : > { %v1064_v22 = vmul.f32 %v1497_v20, %v1063_v21 }
 0x65e   : > { %v1065_v23 = vmul.f32 0.5, %v1064_v22 }
 0x660   : > { %v1066_v24 = vsub.f32 1.5, %v1065_v23 }
 0x662   : > { %v1067_v25 = vmul.f32 %v1497_v20, %v1066_v24 }
 0x664   : > { %v1071_v27 = vsel %vm1070_vm8, %v1497_v20, %v1067_v25 }
 0x665   : > { %v1072_v29 = vmul.f32 %v1071_v27, %v1055_v4 }
 0x667   : > { %v1076_v30 = vmul.f32 %v1472_v26, %v1072_v29 }
 0x669   : > { %v1080_v31 = vadd.f32 %v1473_v28, %v1076_v30 }
 0x66b   : > { %v1081_v32 = vpack.c.bf16 %v1080_v31, %v1080_v31 }
 0x66d   : > { %1381 = vmatmul.msk.bf16.vlgmr.msrb.gmra.mxu1 %vm658_vm0, %v1081_v32 }
 0x6ea   : > { %v1114_v36 = vpop.f32.mrf.mxu1 }
 0x6eb   : > { %v1115_v37 = vadd.f32 %v1474_v35, %v1114_v36 }
 0x6ed   : > { %v1118_v18 = vmax.f32 %v1115_v37, 0.0 }
 0x6ef   : > { %v1119_v38 = vpack.c.bf16 %v1118_v18, %v1118_v18 }
 0x6f1   : > { %1398 = vmatmul.msk.bf16.vlgmr.msrb.gmra.mxu2 %vm1156_vm9, %v1119_v38 }
 0x6f2   : > { %v1116_v39 = vpop.f32.mrf.mxu1 }
 0x774   : > { %v1169_v41 = vpop.f32.mrf.mxu2 }
 0x775   : > { %v1170_v42 = vadd.f32 %v1475_v40, %v1169_v41 }
 0x777   : > { %v1173_v43 = vadd.f32 %v1170_v42, %v1080_v31 }
 0x779   : > { %v1176_v44 = vsel %vm1043_vm4, %v1173_v43, 0.0 }
 0x77a   : > { %1177 = vadd.xlane.f32.xlu0 %v1176_v44 }
 0x77c   : > { %v1171_v45 = vpop.f32.mrf.mxu2 }
 0x7ed   : > { %v1178_v46 = vpop.xlane.xlu0 %1177 }
 0x7ee   : > { %v1179_v47 = vmul.f32 %v1178_v46, %v1053_v7 }
 0x7f0   : > { %v1180_v48 = vsub.f32 %v1173_v43, %v1179_v47 }
 0x7f2   : > { %v1181_v49 = vmul.f32 %v1180_v48, %v1180_v48 }
 0x7f4   : > { %v1182_v50 = vsel %vm1043_vm4, %v1181_v49, 0.0 }
 0x7f5   : > { %1183 = vadd.xlane.f32.xlu1 %v1182_v50 }
 0x868   : > { %v1184_v51 = vpop.xlane.xlu1 %1183 }
 0x869   : > { %v1185_v52 = vmul.f32 %v1184_v51, %v1053_v7 }
 0x86b   : > { %v1186_v53 = vadd.f32 1e-05, %v1185_v52 }
 0x86d   : > { %1498 = vrsqrt.f32 %v1186_v53  ;;  %vm1193_vm11 = vweird.f32 %v1186_v53 }
 0x873   : > { %v1499_v54 = vpop.eup %1498 }
 0x874   : > { %v1188_v55 = vmul.f32 %v1499_v54, %v1186_v53  ;;  %vm1194_vm10 = vweird.f32 %v1499_v54 }
 0x875   : > { %vm1195_vm12 = vmor %vm1193_vm11, %vm1194_vm10 }
 0x876   : > { %v1189_v56 = vmul.f32 %v1499_v54, %v1188_v55 }
 0x878   : > { %v1190_v57 = vmul.f32 0.5, %v1189_v56 }
 0x87a   : > { %v1191_v58 = vsub.f32 1.5, %v1190_v57 }
 0x87c   : > { %v1192_v60 = vmul.f32 %v1499_v54, %v1191_v58 }
 0x87e   : > { %v1196_v62 = vsel %vm1195_vm12, %v1499_v54, %v1192_v60 }
 0x87f   : > { %v1197_v0 = vmul.f32 %v1196_v62, %v1180_v48 }
 0x881   : > { %v1201_v1 = vmul.f32 %v1476_v61, %v1197_v0 }
 0x883   : > { %v1205_v59 = vadd.f32 %v1477_v63, %v1201_v1 }
 0x885   : > { %v1206_v2 = vpack.c.bf16 %v1205_v59, %v1205_v59 }
 0x887   : > { %1208 = vst.msk [vmem:[%s633_s29] sm:$0x7] %vm1207_vm13, %v1206_v2 }
 0x888 PF: > { %s30_s24 = sadd.s32 1, %s1638_s24  }
 0x889   : > { %p27_p7 = scmp.ge.s32.totalorder %s30_s24, 4  }
 0x88b   :  { %29 = sbr.rel (!%p27_p7) target bundleno = 8 (0x8), region = 144 }
 0x890   :  { %1228 = vsyncpa [#allocation3], 1 }
 0x891   :  { %1230 = vsyncpa [#allocation3 + $0x1], 1 }
 0x892   :  { %1231 = vsyncpa [#allocation5], 1 }
 0x893   :  { %1232 = vsyncpa [#allocation8], 1 }

</bundles_post_ra>
